<compile_context>
chip_gen: v6e
topology: v6e:2x2x1
jax: 0.10.0
libtpu: 0.0.40
codegen_flags: <defaults>
</compile_context>

<pallas_src>
import functools

import numpy as np
import jax
import jax.numpy as jnp
from jax import lax
from jax.experimental import pallas as pl
from jax.experimental.pallas import tpu as pltpu

_EPS = 1e-5  # GroupNorm eps (PyTorch default)

# ---- column layout of the packed per-channel constant array (C, _NCH) ----
_GN1_W, _GN1_B, _GNA_W, _GNA_B, _GN2_W, _GN2_B = 0, 1, 2, 3, 4, 5
_LS1, _LS2 = 6, 7
_P0_B, _P1_B, _P2_B, _FC2_B = 8, 9, 10, 11
_P0_W, _P1_W, _P2_W = 12, 21, 30            # 9 depthwise taps each
_NCH = 39

# ---- row layout of the packed per-position constant array (8, N_pad) ----
_INVC, _MW_M1, _MW_P1, _MH_M1, _MH_P1, _VALID = 0, 1, 2, 3, 4, 5


def _gelu_tanh(x):
    # tanh-form GELU: the transcendental runs on the EUP, freeing VALU slots.
    c0 = jnp.float32(0.7978845608028654)     # sqrt(2/pi)
    c1 = jnp.float32(0.044715)
    return jnp.float32(0.5) * x * (jnp.float32(1.0)
                                   + jnp.tanh(c0 * (x + c1 * x * x * x)))


# ------------------------- fused PoolFormerBlock kernel -------------------------
def _poolformer_kernel(x_ref, cc_ref, pc_ref, sc_ref, ma_ref, mb_ref,
                       eh_ref, ew_ref, fc1w_ref, fc1b_ref, fc2wt_ref,
                       o_ref, *, hid_tile):
    C = x_ref.shape[1]
    Np = x_ref.shape[2]                      # padded H*W (multiple of 128)
    H = eh_ref.shape[0]
    W = ew_ref.shape[0]
    N = H * W                                # real spatial size
    hidden = fc1w_ref.shape[0]
    has_pad = Np != N

    x = x_ref[0].astype(jnp.float32)         # (C, Np) lane-dense

    def col(j):                              # per-channel constant (C, 1)
        return cc_ref[:, j:j + 1]

    def row(r):                              # per-position constant (1, Np)
        return pc_ref[r:r + 1, :]

    invc = row(_INVC)
    mw_m1, mw_p1 = row(_MW_M1), row(_MW_P1)
    mh_m1, mh_p1 = row(_MH_M1), row(_MH_P1)
    valid = row(_VALID) if has_pad else None

    def fetch(v, off):                       # y[n] = v[n + off] (cyclic over Np)
        return pltpu.roll(v, (-off) % Np, axis=1)

    inv_cnt = jnp.float32(1.0 / (C * N))

    def gnorm(v, wj, bj):                    # GroupNorm(1, C), two-pass stats
        vs = v * valid if has_pad else v
        mu = jnp.sum(vs) * inv_cnt
        d = v - mu
        if has_pad:
            d = d * valid                    # keep padded lanes out of the stats
        var = jnp.sum(d * d) * inv_cnt
        return d * lax.rsqrt(var + jnp.float32(_EPS)) * col(wj) + col(bj)

    def conv3x3(v, tap0, bias_j):            # depthwise 3x3, zero padding
        zw = (fetch(v, -1) * mw_m1, v, fetch(v, 1) * mw_p1)
        acc = None
        for di, dh in enumerate((-1, 0, 1)):
            for dj in range(3):
                t = zw[dj]
                if dh != 0:
                    t = fetch(t, dh * W) * (mh_m1 if dh < 0 else mh_p1)
                term = t * col(tap0 + di * 3 + dj)
                acc = term if acc is None else acc + term
        return acc + col(bias_j)

    # ----------------------------- norm1 -----------------------------
    xn = gnorm(x, _GN1_W, _GN1_B)
    xnb = xn.astype(jnp.bfloat16)            # bf16 MXU operand

    # Pooling(): x - AvgPool2d(3, stride=1, pad=1, count_include_pad=False)(x)
    rowsum = fetch(xn, -1) * mw_m1 + xn + fetch(xn, 1) * mw_p1
    nsum = rowsum + fetch(rowsum, -W) * mh_m1 + fetch(rowsum, W) * mh_p1
    x_pool = xn - nsum * invc

    # patch attention: AdaPool_W(x) @ AdaPool_H(x), per channel, rank-4.
    # Both contractions are single concatenated bf16 MXU matmuls.
    a_all = jnp.dot(xnb, ma_ref[...], preferred_element_type=jnp.float32)  # (C, 4H)
    b_all = jnp.dot(xnb, mb_ref[...], preferred_element_type=jnp.float32)  # (C, 4W)
    a_all = a_all.astype(jnp.bfloat16)
    b_all = b_all.astype(jnp.bfloat16)
    patch = None
    for k in range(4):
        # one-hot broadcasts kept on the MXU (bf16, small constants)
        a_b = jnp.dot(a_all[:, k * H:(k + 1) * H], eh_ref[...],
                      preferred_element_type=jnp.float32)                  # (C, Np)
        b_b = jnp.dot(b_all[:, k * W:(k + 1) * W], ew_ref[...],
                      preferred_element_type=jnp.float32)                  # (C, Np)
        term = a_b * b_b
        patch = term if patch is None else patch + term
    patch = conv3x3(patch, _P0_W, _P0_B)     # proj0 (dw 3x3)

    # embed-dim attention collapses exactly to x * (sum_c sc[c] * x[c]);
    # the channel reduction runs on the MXU instead of the XLU.
    tsum = jnp.dot(sc_ref[...], xnb, preferred_element_type=jnp.float32)   # (1, Np)
    emb = conv3x3(xn * tsum, _P1_W, _P1_B)   # proj1 (dw 3x3)

    # PoolAttn.norm + proj2, then residual + layer_scale_1 (drop_path = identity)
    y = patch + emb + x_pool
    mixed = conv3x3(gnorm(y, _GNA_W, _GNA_B), _P2_W, _P2_B)
    x_mid = x + col(_LS1) * mixed

    # ------------- norm2 + Mlp (1x1 convs), tiled over the hidden dim -------------
    xn2b = gnorm(x_mid, _GN2_W, _GN2_B).astype(jnp.bfloat16)
    n_tiles = hidden // hid_tile

    def mlp_step(t, m_acc):
        s = pl.multiple_of(t * hid_tile, hid_tile)
        w1 = fc1w_ref[pl.ds(s, hid_tile), :]                 # (ht, C)  bf16
        b1 = fc1b_ref[pl.ds(s, hid_tile), :]                 # (ht, 1)  f32
        h = jnp.dot(w1, xn2b, preferred_element_type=jnp.float32) + b1
        h = _gelu_tanh(h).astype(jnp.bfloat16)               # dropout: eval identity
        w2t = fc2wt_ref[pl.ds(s, hid_tile), :]               # (ht, C)  bf16 (fc2^T)
        return m_acc + lax.dot_general(
            w2t, h, (((0,), (0,)), ((), ())),
            preferred_element_type=jnp.float32)               # (C, Np)

    m = lax.fori_loop(0, n_tiles, mlp_step,
                      jnp.zeros((C, Np), jnp.float32), unroll=n_tiles <= 4)

    o_ref[0] = (x_mid + col(_LS2) * (m + col(_FC2_B))).astype(o_ref.dtype)


# ----------------------------- constants / wrapper -----------------------------
def _adaptive_pool_matrix(n_in, n_out):
    p = np.zeros((n_in, n_out), np.float32)
    for k in range(n_out):
        s = (k * n_in) // n_out
        e = -((-(k + 1) * n_in) // n_out)    # ceil((k+1)*n_in/n_out)
        p[s:e, k] = 1.0 / (e - s)
    return p


def _avgpool_inv_count(H, W):
    cnt = np.zeros((H, W), np.float32)
    ah, aw = np.arange(H), np.arange(W)
    for dh in (-1, 0, 1):
        for dw in (-1, 0, 1):
            hv = ((ah + dh) >= 0) & ((ah + dh) < H)
            wv = ((aw + dw) >= 0) & ((aw + dw) < W)
            cnt += (hv[:, None] & wv[None, :]).astype(np.float32)
    return (1.0 / cnt).astype(np.float32)    # (H, W)


def make_poolformer_constants(params, C, H, W):
    """Build (once per layer) all packed constants used by the fused kernel."""
    N = H * W
    N_pad = -(-N // 128) * 128

    # packed per-channel constants (C, _NCH), f32
    cols = [None] * _NCH
    cols[_GN1_W], cols[_GN1_B] = params["gn1_w"], params["gn1_b"]
    cols[_GNA_W], cols[_GNA_B] = params["gna_w"], params["gna_b"]
    cols[_GN2_W], cols[_GN2_B] = params["gn2_w"], params["gn2_b"]
    cols[_LS1], cols[_LS2] = params["ls1"], params["ls2"]
    cols[_P0_B], cols[_P1_B] = params["proj0_b"], params["proj1_b"]
    cols[_P2_B], cols[_FC2_B] = params["proj2_b"], params["fc2_b"]
    for name, base in (("proj0_w", _P0_W), ("proj1_w", _P1_W), ("proj2_w", _P2_W)):
        wt = params[name].reshape(C, 9)
        for t in range(9):
            cols[base + t] = wt[:, t]
    cc = jnp.stack([jnp.asarray(c, jnp.float32) for c in cols], axis=1)

    # packed per-position constants (8, N_pad), f32 (padded lanes -> masks = 0)
    hh = np.repeat(np.arange(H), W)
    ww = np.tile(np.arange(W), H)
    pc = np.zeros((8, N_pad), np.float32)
    pc[_INVC, :N] = _avgpool_inv_count(H, W).reshape(N)
    pc[_MW_M1, :N] = (ww >= 1)
    pc[_MW_P1, :N] = (ww <= W - 2)
    pc[_MH_M1, :N] = (hh >= 1)
    pc[_MH_P1, :N] = (hh <= H - 2)
    pc[_VALID, :N] = 1.0

    # channel adaptive-pool row vector (1, C) for the embed-dim attention
    sc = _adaptive_pool_matrix(C, 4).sum(axis=1).astype(np.float32).reshape(1, C)

    # concatenated adaptive-pool contraction matrices + one-hot broadcast matrices
    PW = _adaptive_pool_matrix(W, 4)                         # (W, 4)
    PH = _adaptive_pool_matrix(H, 4)                         # (H, 4)
    ma = np.zeros((H, W, 4, H), np.float32)
    ma[np.arange(H), :, :, np.arange(H)] = PW                # ma[h,w',k,h] = PW[w',k]
    ma = ma.reshape(N, 4 * H)
    mb = np.zeros((H, W, 4, W), np.float32)
    mb[:, np.arange(W), :, np.arange(W)] = PH                # mb[h',w,k,w] = PH[h',k]
    mb = mb.reshape(N, 4 * W)
    eh = np.zeros((H, H, W), np.float32)
    eh[np.arange(H), np.arange(H), :] = 1.0                  # eh[h, h*W+w] = 1
    eh = eh.reshape(H, N)
    ew = np.zeros((W, H, W), np.float32)
    ew[np.arange(W), :, np.arange(W)] = 1.0                  # ew[w, h*W+w] = 1
    ew = ew.reshape(W, N)
    if N_pad != N:
        pad = N_pad - N
        ma = np.pad(ma, ((0, pad), (0, 0)))
        mb = np.pad(mb, ((0, pad), (0, 0)))
        eh = np.pad(eh, ((0, 0), (0, pad)))
        ew = np.pad(ew, ((0, 0), (0, pad)))

    return (cc,
            jnp.asarray(pc),
            jnp.asarray(sc, jnp.bfloat16),
            jnp.asarray(ma, jnp.bfloat16),
            jnp.asarray(mb, jnp.bfloat16),
            jnp.asarray(eh, jnp.bfloat16),
            jnp.asarray(ew, jnp.bfloat16),
            params["fc1_w"].astype(jnp.bfloat16),
            params["fc1_b"].reshape(-1, 1).astype(jnp.float32),
            params["fc2_w"].T.astype(jnp.bfloat16))


def init_params(key, dim, mlp_ratio=4.0, layer_scale_init_value=1e-5):
    hidden = int(dim * mlp_ratio)
    ks = jax.random.split(key, 8)

    def tn(k, shape, std=0.02):
        return std * jax.random.normal(k, shape, jnp.float32)

    return dict(
        gn1_w=jnp.ones((dim,), jnp.float32), gn1_b=jnp.zeros((dim,), jnp.float32),
        gna_w=jnp.ones((dim,), jnp.float32), gna_b=jnp.zeros((dim,), jnp.float32),
        gn2_w=jnp.ones((dim,), jnp.float32), gn2_b=jnp.zeros((dim,), jnp.float32),
        proj0_w=tn(ks[0], (dim, 3, 3)), proj0_b=tn(ks[1], (dim,)),
        proj1_w=tn(ks[2], (dim, 3, 3)), proj1_b=tn(ks[3], (dim,)),
        proj2_w=tn(ks[4], (dim, 3, 3)), proj2_b=tn(ks[5], (dim,)),
        fc1_w=tn(ks[6], (hidden, dim)), fc1_b=jnp.zeros((hidden,), jnp.float32),
        fc2_w=tn(ks[7], (dim, hidden)), fc2_b=jnp.zeros((dim,), jnp.float32),
        ls1=jnp.full((dim,), layer_scale_init_value, jnp.float32),
        ls2=jnp.full((dim,), layer_scale_init_value, jnp.float32),
    )


def poolformer_block(x, params, constants=None, mlp_hidden_tile=None):
    """Fused PoolFormerBlock forward.  x: (B, C, H, W) float32."""
    B, C, H, W = x.shape
    N = H * W
    N_pad = -(-N // 128) * 128               # lane-dense: pad H*W to 128 multiple
    if constants is None:
        constants = make_poolformer_constants(params, C, H, W)
    cc, pc, sc, ma, mb, eh, ew, fc1w, fc1b, fc2wt = constants
    hidden = fc1w.shape[0]

    if mlp_hidden_tile is None:
        mlp_hidden_tile = next((t for t in (128, 64, 32, 16, 8) if hidden % t == 0),
                               hidden)
    assert hidden % mlp_hidden_tile == 0

    x3 = x.reshape(B, C, N)
    if N_pad != N:
        x3 = jnp.pad(x3, ((0, 0), (0, 0), (0, N_pad - N)))

    args = (x3, cc, pc, sc, ma, mb, eh, ew, fc1w, fc1b, fc2wt)

    # explicit VMEM budget from the block math (+25% headroom), floor 32 MiB.
    const_bytes = sum(int(np.prod(a.shape)) * a.dtype.itemsize for a in args[1:])
    io_bytes = 2 * C * N_pad * x.dtype.itemsize
    temp_bytes = (14 * C + 2 * mlp_hidden_tile) * N_pad * 4

    def _call(single_buffer_consts):
        def _const_spec(a):
            nd = a.ndim
            idx = lambda b, _nd=nd: (0,) * _nd
            if single_buffer_consts:
                # constant block index never changes -> no need to double-buffer
                return pl.BlockSpec(a.shape, idx, pipeline_mode=pl.Buffered(1))
            return pl.BlockSpec(a.shape, idx)

        in_specs = [pl.BlockSpec((1, C, N_pad), lambda b: (b, 0, 0))]
        in_specs += [_const_spec(a) for a in args[1:]]
        cmult = 1 if single_buffer_consts else 2
        need = 2 * io_bytes + cmult * const_bytes + temp_bytes
        vmem_limit = int(min(64 << 20, max(32 << 20, int(need * 1.25))))
        kern = functools.partial(_poolformer_kernel, hid_tile=mlp_hidden_tile)
        return pl.pallas_call(
            kern,
            grid=(B,),
            in_specs=in_specs,
            out_specs=pl.BlockSpec((1, C, N_pad), lambda b: (b, 0, 0)),
            out_shape=jax.ShapeDtypeStruct((B, C, N_pad), x.dtype),
            compiler_params=pltpu.CompilerParams(
                dimension_semantics=("parallel",),
                vmem_limit_bytes=vmem_limit),
        )(*args)

    try:
        out = _call(True)                    # single-buffered constants
    except Exception:
        out = _call(False)                   # fallback: default double-buffering

    if N_pad != N:
        out = out[:, :, :N]
    return out.reshape(B, C, H, W)


# ----------------- pure-JAX reference (mirrors the PyTorch module) -----------------
def _reference_forward(x, params):
    B, C, H, W = x.shape
    hp = jax.lax.Precision.HIGHEST

    def gn(v, w, b):
        mu = jnp.mean(v, axis=(1, 2, 3), keepdims=True)
        var = jnp.mean((v - mu) ** 2, axis=(1, 2, 3), keepdims=True)
        return (v - mu) / jnp.sqrt(var + _EPS) * w.reshape(1, C, 1, 1) + b.reshape(1, C, 1, 1)

    def dwconv(v, w, b):
        vp = jnp.pad(v, ((0, 0), (0, 0), (1, 1), (1, 1)))
        out = jnp.zeros_like(v)
        for i in range(3):
            for j in range(3):
                out = out + vp[:, :, i:i + H, j:j + W] * w[:, i, j].reshape(1, C, 1, 1)
        return out + b.reshape(1, C, 1, 1)

    def avgpool3(v):
        vp = jnp.pad(v, ((0, 0), (0, 0), (1, 1), (1, 1)))
        cp = jnp.pad(jnp.ones((1, 1, H, W), jnp.float32), ((0, 0), (0, 0), (1, 1), (1, 1)))
        s = jnp.zeros_like(v)
        c = jnp.zeros((1, 1, H, W), jnp.float32)
        for i in range(3):
            for j in range(3):
                s = s + vp[:, :, i:i + H, j:j + W]
                c = c + cp[:, :, i:i + H, j:j + W]
        return s / c

    PW = jnp.asarray(_adaptive_pool_matrix(W, 4))
    PH = jnp.asarray(_adaptive_pool_matrix(H, 4))
    PC = jnp.asarray(_adaptive_pool_matrix(C, 4))

    xn = gn(x, params["gn1_w"], params["gn1_b"])
    pool = xn - avgpool3(xn)
    attn1 = jnp.einsum("bchw,wk->bchk", xn, PW, precision=hp)
    attn2 = jnp.einsum("bchw,hk->bckw", xn, PH, precision=hp)
    patch = jnp.einsum("bchk,bckw->bchw", attn1, attn2, precision=hp)
    patch = dwconv(patch, params["proj0_w"], params["proj0_b"])
    x1 = xn.reshape(B, C, H * W).transpose(0, 2, 1)                 # (B, HW, C)
    e1 = jnp.broadcast_to(x1[..., None], (B, H * W, C, 4))
    e2 = jnp.einsum("bnc,ck->bnk", x1, PC, precision=hp)[..., None]
    emb = jnp.matmul(e1, e2, precision=hp)[..., 0]                  # (B, HW, C)
    emb = emb.transpose(0, 2, 1).reshape(B, C, H, W)
    emb = dwconv(emb, params["proj1_w"], params["proj1_b"])
    yt = gn(patch + emb + pool, params["gna_w"], params["gna_b"])
    yt = dwconv(yt, params["proj2_w"], params["proj2_b"])
    x = x + params["ls1"].reshape(1, C, 1, 1) * yt
    xn2 = gn(x, params["gn2_w"], params["gn2_b"])
    h = jnp.einsum("oc,bchw->bohw", params["fc1_w"], xn2, precision=hp) \
        + params["fc1_b"].reshape(1, -1, 1, 1)
    h = jax.nn.gelu(h, approximate=False)
    m = jnp.einsum("co,bohw->bchw", params["fc2_w"], h, precision=hp) \
        + params["fc2_b"].reshape(1, C, 1, 1)
    return x + params["ls2"].reshape(1, C, 1, 1) * m


if __name__ == "__main__":
    key = jax.random.PRNGKey(0)
    k_x1, k_p1, k_x2, k_p2 = jax.random.split(key, 4)

    # --- case 1: lane-aligned spatial size (H*W % 128 == 0), 2-tile MLP loop ---
    B, C, H, W = 2, 8, 16, 16
    x = jax.random.normal(k_x1, (B, C, H, W), jnp.float32)
    # layer_scale_init_value=0.5 so the numerical check exercises both branches
    # at a visible magnitude.
    params = init_params(k_p1, C, mlp_ratio=4.0, layer_scale_init_value=0.5)
    consts = make_poolformer_constants(params, C, H, W)     # hoisted, built once
    y = jax.block_until_ready(
        poolformer_block(x, params, constants=consts, mlp_hidden_tile=16))
    assert y.shape == (B, C, H, W)
    assert bool(jnp.all(jnp.isfinite(y)))
    err = float(jnp.max(jnp.abs(y - _reference_forward(x, params))))
    # bf16 MXU operands + tanh GELU: tolerance loosened vs the all-f32 version.
    assert err < 1e-2, f"kernel deviates from reference: max|diff|={err}"

    # --- case 2: H*W not a multiple of 128 -> exercises the lane-padding path ---
    B2, C2, H2, W2 = 1, 8, 12, 12
    x2 = jax.random.normal(k_x2, (B2, C2, H2, W2), jnp.float32)
    params2 = init_params(k_p2, C2, mlp_ratio=4.0, layer_scale_init_value=0.5)
    y2 = jax.block_until_ready(poolformer_block(x2, params2))
    assert y2.shape == (B2, C2, H2, W2)
    assert bool(jnp.all(jnp.isfinite(y2)))
    err2 = float(jnp.max(jnp.abs(y2 - _reference_forward(x2, params2))))
    assert err2 < 1e-2, f"padded-lane case deviates from reference: max|diff|={err2}"

    print("KERNEL_OK")
</pallas_src>

<mosaic_0001>
module attributes {stable_mosaic.version = 11 : i64} {
  func.func @_poolformer_kernel(%arg0: i32, %arg1: memref<1x8x256xf32, #tpu.memory_space<vmem>>, %arg2: memref<8x39xf32, #tpu.memory_space<vmem>>, %arg3: memref<8x256xf32, #tpu.memory_space<vmem>>, %arg4: memref<1x8xbf16, #tpu.memory_space<vmem>>, %arg5: memref<256x64xbf16, #tpu.memory_space<vmem>>, %arg6: memref<256x64xbf16, #tpu.memory_space<vmem>>, %arg7: memref<16x256xbf16, #tpu.memory_space<vmem>>, %arg8: memref<16x256xbf16, #tpu.memory_space<vmem>>, %arg9: memref<32x8xbf16, #tpu.memory_space<vmem>>, %arg10: memref<32x1xf32, #tpu.memory_space<vmem>>, %arg11: memref<32x8xbf16, #tpu.memory_space<vmem>>, %arg12: memref<1x8x256xf32, #tpu.memory_space<vmem>>) attributes {dimension_semantics = [#tpu.dimension_semantics<parallel>], iteration_bounds = array<i64: 2>, scalar_prefetch = 0 : i64, scratch_operands = 0 : i64, tpu.core_type = #tpu.core_type<tc>, window_params = [{transform_indices = @transform_0, window_bounds = array<i64: 1, 8, 256>}, {pipeline_mode = #tpu.pipeline_mode<synchronous>, transform_indices = @transform_1, window_bounds = array<i64: 8, 39>}, {pipeline_mode = #tpu.pipeline_mode<synchronous>, transform_indices = @transform_2, window_bounds = array<i64: 8, 256>}, {pipeline_mode = #tpu.pipeline_mode<synchronous>, transform_indices = @transform_3, window_bounds = array<i64: 1, 8>}, {pipeline_mode = #tpu.pipeline_mode<synchronous>, transform_indices = @transform_4, window_bounds = array<i64: 256, 64>}, {pipeline_mode = #tpu.pipeline_mode<synchronous>, transform_indices = @transform_5, window_bounds = array<i64: 256, 64>}, {pipeline_mode = #tpu.pipeline_mode<synchronous>, transform_indices = @transform_6, window_bounds = array<i64: 16, 256>}, {pipeline_mode = #tpu.pipeline_mode<synchronous>, transform_indices = @transform_7, window_bounds = array<i64: 16, 256>}, {pipeline_mode = #tpu.pipeline_mode<synchronous>, transform_indices = @transform_8, window_bounds = array<i64: 32, 8>}, {pipeline_mode = #tpu.pipeline_mode<synchronous>, transform_indices = @transform_9, window_bounds = array<i64: 32, 1>}, {pipeline_mode = #tpu.pipeline_mode<synchronous>, transform_indices = @transform_10, window_bounds = array<i64: 32, 8>}, {transform_indices = @transform_11, window_bounds = array<i64: 1, 8, 256>}]} {
    %c0 = arith.constant 0 : index
    %c0_0 = arith.constant 0 : index
    %c0_1 = arith.constant 0 : index
    %0 = vector.load %arg1[%c0, %c0_0, %c0_1] : memref<1x8x256xf32, #tpu.memory_space<vmem>>, vector<1x8x256xf32>
    %1 = vector.shape_cast %0 : vector<1x8x256xf32> to vector<8x256xf32>
    %c0_2 = arith.constant 0 : index
    %c0_3 = arith.constant 0 : index
    %2 = vector.load %arg3[%c0_2, %c0_3] : memref<8x256xf32, #tpu.memory_space<vmem>>, vector<1x256xf32>
    %c1 = arith.constant 1 : index
    %c0_4 = arith.constant 0 : index
    %3 = vector.load %arg3[%c1, %c0_4] : memref<8x256xf32, #tpu.memory_space<vmem>>, vector<1x256xf32>
    %c2 = arith.constant 2 : index
    %c0_5 = arith.constant 0 : index
    %4 = vector.load %arg3[%c2, %c0_5] : memref<8x256xf32, #tpu.memory_space<vmem>>, vector<1x256xf32>
    %c3 = arith.constant 3 : index
    %c0_6 = arith.constant 0 : index
    %5 = vector.load %arg3[%c3, %c0_6] : memref<8x256xf32, #tpu.memory_space<vmem>>, vector<1x256xf32>
    %c4 = arith.constant 4 : index
    %c0_7 = arith.constant 0 : index
    %6 = vector.load %arg3[%c4, %c0_7] : memref<8x256xf32, #tpu.memory_space<vmem>>, vector<1x256xf32>
    %7 = vector.shape_cast %1 : vector<8x256xf32> to vector<1x8x256xf32>
    %cst = arith.constant dense<0.000000e+00> : vector<1xf32>
    %8 = vector.multi_reduction <add>, %7, %cst [1, 2] : vector<1x8x256xf32> to vector<1xf32>
    %9 = vector.shape_cast %8 : vector<1xf32> to vector<1x1x1xf32>
    %10 = vector.extract %9[0, 0, 0] : f32 from vector<1x1x1xf32>
    %cst_8 = arith.constant 4.8828125E-4 : f32
    %11 = arith.mulf %10, %cst_8 : f32
    %12 = vector.broadcast %11 : f32 to vector<8x256xf32>
    %13 = arith.subf %1, %12 : vector<8x256xf32>
    %14 = arith.mulf %13, %13 : vector<8x256xf32>
    %15 = vector.shape_cast %14 : vector<8x256xf32> to vector<1x8x256xf32>
    %cst_9 = arith.constant dense<0.000000e+00> : vector<1xf32>
    %16 = vector.multi_reduction <add>, %15, %cst_9 [1, 2] : vector<1x8x256xf32> to vector<1xf32>
    %17 = vector.shape_cast %16 : vector<1xf32> to vector<1x1x1xf32>
    %18 = vector.extract %17[0, 0, 0] : f32 from vector<1x1x1xf32>
    %cst_10 = arith.constant 4.8828125E-4 : f32
    %19 = arith.mulf %18, %cst_10 : f32
    %cst_11 = arith.constant 9.99999974E-6 : f32
    %20 = arith.addf %19, %cst_11 : f32
    %21 = math.rsqrt %20 : f32
    %22 = vector.broadcast %21 : f32 to vector<8x256xf32>
    %23 = arith.mulf %13, %22 : vector<8x256xf32>
    %c0_12 = arith.constant 0 : index
    %c0_13 = arith.constant 0 : index
    %24 = vector.load %arg2[%c0_12, %c0_13] : memref<8x39xf32, #tpu.memory_space<vmem>>, vector<8x1xf32>
    %25 = vector.broadcast %24 : vector<8x1xf32> to vector<8x256xf32>
    %26 = arith.mulf %23, %25 : vector<8x256xf32>
    %c0_14 = arith.constant 0 : index
    %c1_15 = arith.constant 1 : index
    %27 = vector.load %arg2[%c0_14, %c1_15] : memref<8x39xf32, #tpu.memory_space<vmem>>, vector<8x1xf32>
    %28 = vector.broadcast %27 : vector<8x1xf32> to vector<8x256xf32>
    %29 = arith.addf %26, %28 : vector<8x256xf32>
    %30 = arith.truncf %29 : vector<8x256xf32> to vector<8x256xbf16>
    %c1_i32 = arith.constant 1 : i32
    %31 = tpu.dynamic_rotate %29 by %c1_i32 dim 1 : vector<8x256xf32>, i32 -> vector<8x256xf32>
    %32 = vector.broadcast %3 : vector<1x256xf32> to vector<8x256xf32>
    %33 = arith.mulf %31, %32 : vector<8x256xf32>
    %34 = arith.addf %33, %29 : vector<8x256xf32>
    %c255_i32 = arith.constant 255 : i32
    %35 = tpu.dynamic_rotate %29 by %c255_i32 dim 1 : vector<8x256xf32>, i32 -> vector<8x256xf32>
    %36 = vector.broadcast %4 : vector<1x256xf32> to vector<8x256xf32>
    %37 = arith.mulf %35, %36 : vector<8x256xf32>
    %38 = arith.addf %34, %37 : vector<8x256xf32>
    %c16_i32 = arith.constant 16 : i32
    %39 = tpu.dynamic_rotate %38 by %c16_i32 dim 1 : vector<8x256xf32>, i32 -> vector<8x256xf32>
    %40 = vector.broadcast %5 : vector<1x256xf32> to vector<8x256xf32>
    %41 = arith.mulf %39, %40 : vector<8x256xf32>
    %42 = arith.addf %38, %41 : vector<8x256xf32>
    %c240_i32 = arith.constant 240 : i32
    %43 = tpu.dynamic_rotate %38 by %c240_i32 dim 1 : vector<8x256xf32>, i32 -> vector<8x256xf32>
    %44 = vector.broadcast %6 : vector<1x256xf32> to vector<8x256xf32>
    %45 = arith.mulf %43, %44 : vector<8x256xf32>
    %46 = arith.addf %42, %45 : vector<8x256xf32>
    %47 = vector.broadcast %2 : vector<1x256xf32> to vector<8x256xf32>
    %48 = arith.mulf %46, %47 : vector<8x256xf32>
    %49 = arith.subf %29, %48 : vector<8x256xf32>
    %c0_16 = arith.constant 0 : index
    %c0_17 = arith.constant 0 : index
    %50 = vector.load %arg5[%c0_16, %c0_17] : memref<256x64xbf16, #tpu.memory_space<vmem>>, vector<256x64xbf16>
    %cst_18 = arith.constant dense<0.000000e+00> : vector<8x64xf32>
    %51 = tpu.matmul %30, %50, %cst_18 {dimension_numbers = #tpu.dot_dimension_numbers<[1], [0], [0], [1], [0, 0, 1, 1], [], []>} : vector<8x256xbf16>, vector<256x64xbf16>, vector<8x64xf32> -> vector<8x64xf32>
    %c0_19 = arith.constant 0 : index
    %c0_20 = arith.constant 0 : index
    %52 = vector.load %arg6[%c0_19, %c0_20] : memref<256x64xbf16, #tpu.memory_space<vmem>>, vector<256x64xbf16>
    %cst_21 = arith.constant dense<0.000000e+00> : vector<8x64xf32>
    %53 = tpu.matmul %30, %52, %cst_21 {dimension_numbers = #tpu.dot_dimension_numbers<[1], [0], [0], [1], [0, 0, 1, 1], [], []>} : vector<8x256xbf16>, vector<256x64xbf16>, vector<8x64xf32> -> vector<8x64xf32>
    %54 = arith.truncf %51 : vector<8x64xf32> to vector<8x64xbf16>
    %55 = arith.truncf %53 : vector<8x64xf32> to vector<8x64xbf16>
    %56 = vector.extract_strided_slice %54 {offsets = [0, 0], sizes = [8, 16], strides = [1, 1]} : vector<8x64xbf16> to vector<8x16xbf16>
    %c0_22 = arith.constant 0 : index
    %c0_23 = arith.constant 0 : index
    %57 = vector.load %arg7[%c0_22, %c0_23] : memref<16x256xbf16, #tpu.memory_space<vmem>>, vector<16x256xbf16>
    %cst_24 = arith.constant dense<0.000000e+00> : vector<8x256xf32>
    %58 = tpu.matmul %56, %57, %cst_24 {dimension_numbers = #tpu.dot_dimension_numbers<[1], [0], [0], [1], [0, 0, 1, 1], [], []>} : vector<8x16xbf16>, vector<16x256xbf16>, vector<8x256xf32> -> vector<8x256xf32>
    %59 = vector.extract_strided_slice %55 {offsets = [0, 0], sizes = [8, 16], strides = [1, 1]} : vector<8x64xbf16> to vector<8x16xbf16>
    %c0_25 = arith.constant 0 : index
    %c0_26 = arith.constant 0 : index
    %60 = vector.load %arg8[%c0_25, %c0_26] : memref<16x256xbf16, #tpu.memory_space<vmem>>, vector<16x256xbf16>
    %cst_27 = arith.constant dense<0.000000e+00> : vector<8x256xf32>
    %61 = tpu.matmul %59, %60, %cst_27 {dimension_numbers = #tpu.dot_dimension_numbers<[1], [0], [0], [1], [0, 0, 1, 1], [], []>} : vector<8x16xbf16>, vector<16x256xbf16>, vector<8x256xf32> -> vector<8x256xf32>
    %62 = arith.mulf %58, %61 : vector<8x256xf32>
    %63 = vector.extract_strided_slice %54 {offsets = [0, 16], sizes = [8, 16], strides = [1, 1]} : vector<8x64xbf16> to vector<8x16xbf16>
    %c0_28 = arith.constant 0 : index
    %c0_29 = arith.constant 0 : index
    %64 = vector.load %arg7[%c0_28, %c0_29] : memref<16x256xbf16, #tpu.memory_space<vmem>>, vector<16x256xbf16>
    %cst_30 = arith.constant dense<0.000000e+00> : vector<8x256xf32>
    %65 = tpu.matmul %63, %64, %cst_30 {dimension_numbers = #tpu.dot_dimension_numbers<[1], [0], [0], [1], [0, 0, 1, 1], [], []>} : vector<8x16xbf16>, vector<16x256xbf16>, vector<8x256xf32> -> vector<8x256xf32>
    %66 = vector.extract_strided_slice %55 {offsets = [0, 16], sizes = [8, 16], strides = [1, 1]} : vector<8x64xbf16> to vector<8x16xbf16>
    %c0_31 = arith.constant 0 : index
    %c0_32 = arith.constant 0 : index
    %67 = vector.load %arg8[%c0_31, %c0_32] : memref<16x256xbf16, #tpu.memory_space<vmem>>, vector<16x256xbf16>
    %cst_33 = arith.constant dense<0.000000e+00> : vector<8x256xf32>
    %68 = tpu.matmul %66, %67, %cst_33 {dimension_numbers = #tpu.dot_dimension_numbers<[1], [0], [0], [1], [0, 0, 1, 1], [], []>} : vector<8x16xbf16>, vector<16x256xbf16>, vector<8x256xf32> -> vector<8x256xf32>
    %69 = arith.mulf %65, %68 : vector<8x256xf32>
    %70 = arith.addf %62, %69 : vector<8x256xf32>
    %71 = vector.extract_strided_slice %54 {offsets = [0, 32], sizes = [8, 16], strides = [1, 1]} : vector<8x64xbf16> to vector<8x16xbf16>
    %c0_34 = arith.constant 0 : index
    %c0_35 = arith.constant 0 : index
    %72 = vector.load %arg7[%c0_34, %c0_35] : memref<16x256xbf16, #tpu.memory_space<vmem>>, vector<16x256xbf16>
    %cst_36 = arith.constant dense<0.000000e+00> : vector<8x256xf32>
    %73 = tpu.matmul %71, %72, %cst_36 {dimension_numbers = #tpu.dot_dimension_numbers<[1], [0], [0], [1], [0, 0, 1, 1], [], []>} : vector<8x16xbf16>, vector<16x256xbf16>, vector<8x256xf32> -> vector<8x256xf32>
    %74 = vector.extract_strided_slice %55 {offsets = [0, 32], sizes = [8, 16], strides = [1, 1]} : vector<8x64xbf16> to vector<8x16xbf16>
    %c0_37 = arith.constant 0 : index
    %c0_38 = arith.constant 0 : index
    %75 = vector.load %arg8[%c0_37, %c0_38] : memref<16x256xbf16, #tpu.memory_space<vmem>>, vector<16x256xbf16>
    %cst_39 = arith.constant dense<0.000000e+00> : vector<8x256xf32>
    %76 = tpu.matmul %74, %75, %cst_39 {dimension_numbers = #tpu.dot_dimension_numbers<[1], [0], [0], [1], [0, 0, 1, 1], [], []>} : vector<8x16xbf16>, vector<16x256xbf16>, vector<8x256xf32> -> vector<8x256xf32>
    %77 = arith.mulf %73, %76 : vector<8x256xf32>
    %78 = arith.addf %70, %77 : vector<8x256xf32>
    %79 = vector.extract_strided_slice %54 {offsets = [0, 48], sizes = [8, 16], strides = [1, 1]} : vector<8x64xbf16> to vector<8x16xbf16>
    %c0_40 = arith.constant 0 : index
    %c0_41 = arith.constant 0 : index
    %80 = vector.load %arg7[%c0_40, %c0_41] : memref<16x256xbf16, #tpu.memory_space<vmem>>, vector<16x256xbf16>
    %cst_42 = arith.constant dense<0.000000e+00> : vector<8x256xf32>
    %81 = tpu.matmul %79, %80, %cst_42 {dimension_numbers = #tpu.dot_dimension_numbers<[1], [0], [0], [1], [0, 0, 1, 1], [], []>} : vector<8x16xbf16>, vector<16x256xbf16>, vector<8x256xf32> -> vector<8x256xf32>
    %82 = vector.extract_strided_slice %55 {offsets = [0, 48], sizes = [8, 16], strides = [1, 1]} : vector<8x64xbf16> to vector<8x16xbf16>
    %c0_43 = arith.constant 0 : index
    %c0_44 = arith.constant 0 : index
    %83 = vector.load %arg8[%c0_43, %c0_44] : memref<16x256xbf16, #tpu.memory_space<vmem>>, vector<16x256xbf16>
    %cst_45 = arith.constant dense<0.000000e+00> : vector<8x256xf32>
    %84 = tpu.matmul %82, %83, %cst_45 {dimension_numbers = #tpu.dot_dimension_numbers<[1], [0], [0], [1], [0, 0, 1, 1], [], []>} : vector<8x16xbf16>, vector<16x256xbf16>, vector<8x256xf32> -> vector<8x256xf32>
    %85 = arith.mulf %81, %84 : vector<8x256xf32>
    %86 = arith.addf %78, %85 : vector<8x256xf32>
    %c1_i32_46 = arith.constant 1 : i32
    %87 = tpu.dynamic_rotate %86 by %c1_i32_46 dim 1 : vector<8x256xf32>, i32 -> vector<8x256xf32>
    %88 = vector.broadcast %3 : vector<1x256xf32> to vector<8x256xf32>
    %89 = arith.mulf %87, %88 : vector<8x256xf32>
    %c255_i32_47 = arith.constant 255 : i32
    %90 = tpu.dynamic_rotate %86 by %c255_i32_47 dim 1 : vector<8x256xf32>, i32 -> vector<8x256xf32>
    %91 = vector.broadcast %4 : vector<1x256xf32> to vector<8x256xf32>
    %92 = arith.mulf %90, %91 : vector<8x256xf32>
    %c16_i32_48 = arith.constant 16 : i32
    %93 = tpu.dynamic_rotate %89 by %c16_i32_48 dim 1 : vector<8x256xf32>, i32 -> vector<8x256xf32>
    %94 = vector.broadcast %5 : vector<1x256xf32> to vector<8x256xf32>
    %95 = arith.mulf %93, %94 : vector<8x256xf32>
    %c0_49 = arith.constant 0 : index
    %c12 = arith.constant 12 : index
    %96 = vector.load %arg2[%c0_49, %c12] : memref<8x39xf32, #tpu.memory_space<vmem>>, vector<8x1xf32>
    %97 = vector.broadcast %96 : vector<8x1xf32> to vector<8x256xf32>
    %98 = arith.mulf %95, %97 : vector<8x256xf32>
    %c16_i32_50 = arith.constant 16 : i32
    %99 = tpu.dynamic_rotate %86 by %c16_i32_50 dim 1 : vector<8x256xf32>, i32 -> vector<8x256xf32>
    %100 = vector.broadcast %5 : vector<1x256xf32> to vector<8x256xf32>
    %101 = arith.mulf %99, %100 : vector<8x256xf32>
    %c0_51 = arith.constant 0 : index
    %c13 = arith.constant 13 : index
    %102 = vector.load %arg2[%c0_51, %c13] : memref<8x39xf32, #tpu.memory_space<vmem>>, vector<8x1xf32>
    %103 = vector.broadcast %102 : vector<8x1xf32> to vector<8x256xf32>
    %104 = arith.mulf %101, %103 : vector<8x256xf32>
    %105 = arith.addf %98, %104 : vector<8x256xf32>
    %c16_i32_52 = arith.constant 16 : i32
    %106 = tpu.dynamic_rotate %92 by %c16_i32_52 dim 1 : vector<8x256xf32>, i32 -> vector<8x256xf32>
    %107 = vector.broadcast %5 : vector<1x256xf32> to vector<8x256xf32>
    %108 = arith.mulf %106, %107 : vector<8x256xf32>
    %c0_53 = arith.constant 0 : index
    %c14 = arith.constant 14 : index
    %109 = vector.load %arg2[%c0_53, %c14] : memref<8x39xf32, #tpu.memory_space<vmem>>, vector<8x1xf32>
    %110 = vector.broadcast %109 : vector<8x1xf32> to vector<8x256xf32>
    %111 = arith.mulf %108, %110 : vector<8x256xf32>
    %112 = arith.addf %105, %111 : vector<8x256xf32>
    %c0_54 = arith.constant 0 : index
    %c15 = arith.constant 15 : index
    %113 = vector.load %arg2[%c0_54, %c15] : memref<8x39xf32, #tpu.memory_space<vmem>>, vector<8x1xf32>
    %114 = vector.broadcast %113 : vector<8x1xf32> to vector<8x256xf32>
    %115 = arith.mulf %89, %114 : vector<8x256xf32>
    %116 = arith.addf %112, %115 : vector<8x256xf32>
    %c0_55 = arith.constant 0 : index
    %c16 = arith.constant 16 : index
    %117 = vector.load %arg2[%c0_55, %c16] : memref<8x39xf32, #tpu.memory_space<vmem>>, vector<8x1xf32>
    %118 = vector.broadcast %117 : vector<8x1xf32> to vector<8x256xf32>
    %119 = arith.mulf %86, %118 : vector<8x256xf32>
    %120 = arith.addf %116, %119 : vector<8x256xf32>
    %c0_56 = arith.constant 0 : index
    %c17 = arith.constant 17 : index
    %121 = vector.load %arg2[%c0_56, %c17] : memref<8x39xf32, #tpu.memory_space<vmem>>, vector<8x1xf32>
    %122 = vector.broadcast %121 : vector<8x1xf32> to vector<8x256xf32>
    %123 = arith.mulf %92, %122 : vector<8x256xf32>
    %124 = arith.addf %120, %123 : vector<8x256xf32>
    %c240_i32_57 = arith.constant 240 : i32
    %125 = tpu.dynamic_rotate %89 by %c240_i32_57 dim 1 : vector<8x256xf32>, i32 -> vector<8x256xf32>
    %126 = vector.broadcast %6 : vector<1x256xf32> to vector<8x256xf32>
    %127 = arith.mulf %125, %126 : vector<8x256xf32>
    %c0_58 = arith.constant 0 : index
    %c18 = arith.constant 18 : index
    %128 = vector.load %arg2[%c0_58, %c18] : memref<8x39xf32, #tpu.memory_space<vmem>>, vector<8x1xf32>
    %129 = vector.broadcast %128 : vector<8x1xf32> to vector<8x256xf32>
    %130 = arith.mulf %127, %129 : vector<8x256xf32>
    %131 = arith.addf %124, %130 : vector<8x256xf32>
    %c240_i32_59 = arith.constant 240 : i32
    %132 = tpu.dynamic_rotate %86 by %c240_i32_59 dim 1 : vector<8x256xf32>, i32 -> vector<8x256xf32>
    %133 = vector.broadcast %6 : vector<1x256xf32> to vector<8x256xf32>
    %134 = arith.mulf %132, %133 : vector<8x256xf32>
    %c0_60 = arith.constant 0 : index
    %c19 = arith.constant 19 : index
    %135 = vector.load %arg2[%c0_60, %c19] : memref<8x39xf32, #tpu.memory_space<vmem>>, vector<8x1xf32>
    %136 = vector.broadcast %135 : vector<8x1xf32> to vector<8x256xf32>
    %137 = arith.mulf %134, %136 : vector<8x256xf32>
    %138 = arith.addf %131, %137 : vector<8x256xf32>
    %c240_i32_61 = arith.constant 240 : i32
    %139 = tpu.dynamic_rotate %92 by %c240_i32_61 dim 1 : vector<8x256xf32>, i32 -> vector<8x256xf32>
    %140 = vector.broadcast %6 : vector<1x256xf32> to vector<8x256xf32>
    %141 = arith.mulf %139, %140 : vector<8x256xf32>
    %c0_62 = arith.constant 0 : index
    %c20 = arith.constant 20 : index
    %142 = vector.load %arg2[%c0_62, %c20] : memref<8x39xf32, #tpu.memory_space<vmem>>, vector<8x1xf32>
    %143 = vector.broadcast %142 : vector<8x1xf32> to vector<8x256xf32>
    %144 = arith.mulf %141, %143 : vector<8x256xf32>
    %145 = arith.addf %138, %144 : vector<8x256xf32>
    %c0_63 = arith.constant 0 : index
    %c8 = arith.constant 8 : index
    %146 = vector.load %arg2[%c0_63, %c8] : memref<8x39xf32, #tpu.memory_space<vmem>>, vector<8x1xf32>
    %147 = vector.broadcast %146 : vector<8x1xf32> to vector<8x256xf32>
    %148 = arith.addf %145, %147 : vector<8x256xf32>
    %c0_64 = arith.constant 0 : index
    %c0_65 = arith.constant 0 : index
    %149 = vector.load %arg4[%c0_64, %c0_65] : memref<1x8xbf16, #tpu.memory_space<vmem>>, vector<1x8xbf16>
    %cst_66 = arith.constant dense<0.000000e+00> : vector<1x256xf32>
    %150 = tpu.matmul %149, %30, %cst_66 {dimension_numbers = #tpu.dot_dimension_numbers<[1], [0], [0], [1], [0, 0, 1, 1], [], []>} : vector<1x8xbf16>, vector<8x256xbf16>, vector<1x256xf32> -> vector<1x256xf32>
    %151 = vector.broadcast %150 : vector<1x256xf32> to vector<8x256xf32>
    %152 = arith.mulf %29, %151 : vector<8x256xf32>
    %c1_i32_67 = arith.constant 1 : i32
    %153 = tpu.dynamic_rotate %152 by %c1_i32_67 dim 1 : vector<8x256xf32>, i32 -> vector<8x256xf32>
    %154 = vector.broadcast %3 : vector<1x256xf32> to vector<8x256xf32>
    %155 = arith.mulf %153, %154 : vector<8x256xf32>
    %c255_i32_68 = arith.constant 255 : i32
    %156 = tpu.dynamic_rotate %152 by %c255_i32_68 dim 1 : vector<8x256xf32>, i32 -> vector<8x256xf32>
    %157 = vector.broadcast %4 : vector<1x256xf32> to vector<8x256xf32>
    %158 = arith.mulf %156, %157 : vector<8x256xf32>
    %c16_i32_69 = arith.constant 16 : i32
    %159 = tpu.dynamic_rotate %155 by %c16_i32_69 dim 1 : vector<8x256xf32>, i32 -> vector<8x256xf32>
    %160 = vector.broadcast %5 : vector<1x256xf32> to vector<8x256xf32>
    %161 = arith.mulf %159, %160 : vector<8x256xf32>
    %c0_70 = arith.constant 0 : index
    %c21 = arith.constant 21 : index
    %162 = vector.load %arg2[%c0_70, %c21] : memref<8x39xf32, #tpu.memory_space<vmem>>, vector<8x1xf32>
    %163 = vector.broadcast %162 : vector<8x1xf32> to vector<8x256xf32>
    %164 = arith.mulf %161, %163 : vector<8x256xf32>
    %c16_i32_71 = arith.constant 16 : i32
    %165 = tpu.dynamic_rotate %152 by %c16_i32_71 dim 1 : vector<8x256xf32>, i32 -> vector<8x256xf32>
    %166 = vector.broadcast %5 : vector<1x256xf32> to vector<8x256xf32>
    %167 = arith.mulf %165, %166 : vector<8x256xf32>
    %c0_72 = arith.constant 0 : index
    %c22 = arith.constant 22 : index
    %168 = vector.load %arg2[%c0_72, %c22] : memref<8x39xf32, #tpu.memory_space<vmem>>, vector<8x1xf32>
    %169 = vector.broadcast %168 : vector<8x1xf32> to vector<8x256xf32>
    %170 = arith.mulf %167, %169 : vector<8x256xf32>
    %171 = arith.addf %164, %170 : vector<8x256xf32>
    %c16_i32_73 = arith.constant 16 : i32
    %172 = tpu.dynamic_rotate %158 by %c16_i32_73 dim 1 : vector<8x256xf32>, i32 -> vector<8x256xf32>
    %173 = vector.broadcast %5 : vector<1x256xf32> to vector<8x256xf32>
    %174 = arith.mulf %172, %173 : vector<8x256xf32>
    %c0_74 = arith.constant 0 : index
    %c23 = arith.constant 23 : index
    %175 = vector.load %arg2[%c0_74, %c23] : memref<8x39xf32, #tpu.memory_space<vmem>>, vector<8x1xf32>
    %176 = vector.broadcast %175 : vector<8x1xf32> to vector<8x256xf32>
    %177 = arith.mulf %174, %176 : vector<8x256xf32>
    %178 = arith.addf %171, %177 : vector<8x256xf32>
    %c0_75 = arith.constant 0 : index
    %c24 = arith.constant 24 : index
    %179 = vector.load %arg2[%c0_75, %c24] : memref<8x39xf32, #tpu.memory_space<vmem>>, vector<8x1xf32>
    %180 = vector.broadcast %179 : vector<8x1xf32> to vector<8x256xf32>
    %181 = arith.mulf %155, %180 : vector<8x256xf32>
    %182 = arith.addf %178, %181 : vector<8x256xf32>
    %c0_76 = arith.constant 0 : index
    %c25 = arith.constant 25 : index
    %183 = vector.load %arg2[%c0_76, %c25] : memref<8x39xf32, #tpu.memory_space<vmem>>, vector<8x1xf32>
    %184 = vector.broadcast %183 : vector<8x1xf32> to vector<8x256xf32>
    %185 = arith.mulf %152, %184 : vector<8x256xf32>
    %186 = arith.addf %182, %185 : vector<8x256xf32>
    %c0_77 = arith.constant 0 : index
    %c26 = arith.constant 26 : index
    %187 = vector.load %arg2[%c0_77, %c26] : memref<8x39xf32, #tpu.memory_space<vmem>>, vector<8x1xf32>
    %188 = vector.broadcast %187 : vector<8x1xf32> to vector<8x256xf32>
    %189 = arith.mulf %158, %188 : vector<8x256xf32>
    %190 = arith.addf %186, %189 : vector<8x256xf32>
    %c240_i32_78 = arith.constant 240 : i32
    %191 = tpu.dynamic_rotate %155 by %c240_i32_78 dim 1 : vector<8x256xf32>, i32 -> vector<8x256xf32>
    %192 = vector.broadcast %6 : vector<1x256xf32> to vector<8x256xf32>
    %193 = arith.mulf %191, %192 : vector<8x256xf32>
    %c0_79 = arith.constant 0 : index
    %c27 = arith.constant 27 : index
    %194 = vector.load %arg2[%c0_79, %c27] : memref<8x39xf32, #tpu.memory_space<vmem>>, vector<8x1xf32>
    %195 = vector.broadcast %194 : vector<8x1xf32> to vector<8x256xf32>
    %196 = arith.mulf %193, %195 : vector<8x256xf32>
    %197 = arith.addf %190, %196 : vector<8x256xf32>
    %c240_i32_80 = arith.constant 240 : i32
    %198 = tpu.dynamic_rotate %152 by %c240_i32_80 dim 1 : vector<8x256xf32>, i32 -> vector<8x256xf32>
    %199 = vector.broadcast %6 : vector<1x256xf32> to vector<8x256xf32>
    %200 = arith.mulf %198, %199 : vector<8x256xf32>
    %c0_81 = arith.constant 0 : index
    %c28 = arith.constant 28 : index
    %201 = vector.load %arg2[%c0_81, %c28] : memref<8x39xf32, #tpu.memory_space<vmem>>, vector<8x1xf32>
    %202 = vector.broadcast %201 : vector<8x1xf32> to vector<8x256xf32>
    %203 = arith.mulf %200, %202 : vector<8x256xf32>
    %204 = arith.addf %197, %203 : vector<8x256xf32>
    %c240_i32_82 = arith.constant 240 : i32
    %205 = tpu.dynamic_rotate %158 by %c240_i32_82 dim 1 : vector<8x256xf32>, i32 -> vector<8x256xf32>
    %206 = vector.broadcast %6 : vector<1x256xf32> to vector<8x256xf32>
    %207 = arith.mulf %205, %206 : vector<8x256xf32>
    %c0_83 = arith.constant 0 : index
    %c29 = arith.constant 29 : index
    %208 = vector.load %arg2[%c0_83, %c29] : memref<8x39xf32, #tpu.memory_space<vmem>>, vector<8x1xf32>
    %209 = vector.broadcast %208 : vector<8x1xf32> to vector<8x256xf32>
    %210 = arith.mulf %207, %209 : vector<8x256xf32>
    %211 = arith.addf %204, %210 : vector<8x256xf32>
    %c0_84 = arith.constant 0 : index
    %c9 = arith.constant 9 : index
    %212 = vector.load %arg2[%c0_84, %c9] : memref<8x39xf32, #tpu.memory_space<vmem>>, vector<8x1xf32>
    %213 = vector.broadcast %212 : vector<8x1xf32> to vector<8x256xf32>
    %214 = arith.addf %211, %213 : vector<8x256xf32>
    %215 = arith.addf %148, %214 : vector<8x256xf32>
    %216 = arith.addf %215, %49 : vector<8x256xf32>
    %217 = vector.shape_cast %216 : vector<8x256xf32> to vector<1x8x256xf32>
    %cst_85 = arith.constant dense<0.000000e+00> : vector<1xf32>
    %218 = vector.multi_reduction <add>, %217, %cst_85 [1, 2] : vector<1x8x256xf32> to vector<1xf32>
    %219 = vector.shape_cast %218 : vector<1xf32> to vector<1x1x1xf32>
    %220 = vector.extract %219[0, 0, 0] : f32 from vector<1x1x1xf32>
    %cst_86 = arith.constant 4.8828125E-4 : f32
    %221 = arith.mulf %220, %cst_86 : f32
    %222 = vector.broadcast %221 : f32 to vector<8x256xf32>
    %223 = arith.subf %216, %222 : vector<8x256xf32>
    %224 = arith.mulf %223, %223 : vector<8x256xf32>
    %225 = vector.shape_cast %224 : vector<8x256xf32> to vector<1x8x256xf32>
    %cst_87 = arith.constant dense<0.000000e+00> : vector<1xf32>
    %226 = vector.multi_reduction <add>, %225, %cst_87 [1, 2] : vector<1x8x256xf32> to vector<1xf32>
    %227 = vector.shape_cast %226 : vector<1xf32> to vector<1x1x1xf32>
    %228 = vector.extract %227[0, 0, 0] : f32 from vector<1x1x1xf32>
    %cst_88 = arith.constant 4.8828125E-4 : f32
    %229 = arith.mulf %228, %cst_88 : f32
    %cst_89 = arith.constant 9.99999974E-6 : f32
    %230 = arith.addf %229, %cst_89 : f32
    %231 = math.rsqrt %230 : f32
    %232 = vector.broadcast %231 : f32 to vector<8x256xf32>
    %233 = arith.mulf %223, %232 : vector<8x256xf32>
    %c0_90 = arith.constant 0 : index
    %c2_91 = arith.constant 2 : index
    %234 = vector.load %arg2[%c0_90, %c2_91] : memref<8x39xf32, #tpu.memory_space<vmem>>, vector<8x1xf32>
    %235 = vector.broadcast %234 : vector<8x1xf32> to vector<8x256xf32>
    %236 = arith.mulf %233, %235 : vector<8x256xf32>
    %c0_92 = arith.constant 0 : index
    %c3_93 = arith.constant 3 : index
    %237 = vector.load %arg2[%c0_92, %c3_93] : memref<8x39xf32, #tpu.memory_space<vmem>>, vector<8x1xf32>
    %238 = vector.broadcast %237 : vector<8x1xf32> to vector<8x256xf32>
    %239 = arith.addf %236, %238 : vector<8x256xf32>
    %c1_i32_94 = arith.constant 1 : i32
    %240 = tpu.dynamic_rotate %239 by %c1_i32_94 dim 1 : vector<8x256xf32>, i32 -> vector<8x256xf32>
    %241 = vector.broadcast %3 : vector<1x256xf32> to vector<8x256xf32>
    %242 = arith.mulf %240, %241 : vector<8x256xf32>
    %c255_i32_95 = arith.constant 255 : i32
    %243 = tpu.dynamic_rotate %239 by %c255_i32_95 dim 1 : vector<8x256xf32>, i32 -> vector<8x256xf32>
    %244 = vector.broadcast %4 : vector<1x256xf32> to vector<8x256xf32>
    %245 = arith.mulf %243, %244 : vector<8x256xf32>
    %c16_i32_96 = arith.constant 16 : i32
    %246 = tpu.dynamic_rotate %242 by %c16_i32_96 dim 1 : vector<8x256xf32>, i32 -> vector<8x256xf32>
    %247 = vector.broadcast %5 : vector<1x256xf32> to vector<8x256xf32>
    %248 = arith.mulf %246, %247 : vector<8x256xf32>
    %c0_97 = arith.constant 0 : index
    %c30 = arith.constant 30 : index
    %249 = vector.load %arg2[%c0_97, %c30] : memref<8x39xf32, #tpu.memory_space<vmem>>, vector<8x1xf32>
    %250 = vector.broadcast %249 : vector<8x1xf32> to vector<8x256xf32>
    %251 = arith.mulf %248, %250 : vector<8x256xf32>
    %c16_i32_98 = arith.constant 16 : i32
    %252 = tpu.dynamic_rotate %239 by %c16_i32_98 dim 1 : vector<8x256xf32>, i32 -> vector<8x256xf32>
    %253 = vector.broadcast %5 : vector<1x256xf32> to vector<8x256xf32>
    %254 = arith.mulf %252, %253 : vector<8x256xf32>
    %c0_99 = arith.constant 0 : index
    %c31 = arith.constant 31 : index
    %255 = vector.load %arg2[%c0_99, %c31] : memref<8x39xf32, #tpu.memory_space<vmem>>, vector<8x1xf32>
    %256 = vector.broadcast %255 : vector<8x1xf32> to vector<8x256xf32>
    %257 = arith.mulf %254, %256 : vector<8x256xf32>
    %258 = arith.addf %251, %257 : vector<8x256xf32>
    %c16_i32_100 = arith.constant 16 : i32
    %259 = tpu.dynamic_rotate %245 by %c16_i32_100 dim 1 : vector<8x256xf32>, i32 -> vector<8x256xf32>
    %260 = vector.broadcast %5 : vector<1x256xf32> to vector<8x256xf32>
    %261 = arith.mulf %259, %260 : vector<8x256xf32>
    %c0_101 = arith.constant 0 : index
    %c32 = arith.constant 32 : index
    %262 = vector.load %arg2[%c0_101, %c32] : memref<8x39xf32, #tpu.memory_space<vmem>>, vector<8x1xf32>
    %263 = vector.broadcast %262 : vector<8x1xf32> to vector<8x256xf32>
    %264 = arith.mulf %261, %263 : vector<8x256xf32>
    %265 = arith.addf %258, %264 : vector<8x256xf32>
    %c0_102 = arith.constant 0 : index
    %c33 = arith.constant 33 : index
    %266 = vector.load %arg2[%c0_102, %c33] : memref<8x39xf32, #tpu.memory_space<vmem>>, vector<8x1xf32>
    %267 = vector.broadcast %266 : vector<8x1xf32> to vector<8x256xf32>
    %268 = arith.mulf %242, %267 : vector<8x256xf32>
    %269 = arith.addf %265, %268 : vector<8x256xf32>
    %c0_103 = arith.constant 0 : index
    %c34 = arith.constant 34 : index
    %270 = vector.load %arg2[%c0_103, %c34] : memref<8x39xf32, #tpu.memory_space<vmem>>, vector<8x1xf32>
    %271 = vector.broadcast %270 : vector<8x1xf32> to vector<8x256xf32>
    %272 = arith.mulf %239, %271 : vector<8x256xf32>
    %273 = arith.addf %269, %272 : vector<8x256xf32>
    %c0_104 = arith.constant 0 : index
    %c35 = arith.constant 35 : index
    %274 = vector.load %arg2[%c0_104, %c35] : memref<8x39xf32, #tpu.memory_space<vmem>>, vector<8x1xf32>
    %275 = vector.broadcast %274 : vector<8x1xf32> to vector<8x256xf32>
    %276 = arith.mulf %245, %275 : vector<8x256xf32>
    %277 = arith.addf %273, %276 : vector<8x256xf32>
    %c240_i32_105 = arith.constant 240 : i32
    %278 = tpu.dynamic_rotate %242 by %c240_i32_105 dim 1 : vector<8x256xf32>, i32 -> vector<8x256xf32>
    %279 = vector.broadcast %6 : vector<1x256xf32> to vector<8x256xf32>
    %280 = arith.mulf %278, %279 : vector<8x256xf32>
    %c0_106 = arith.constant 0 : index
    %c36 = arith.constant 36 : index
    %281 = vector.load %arg2[%c0_106, %c36] : memref<8x39xf32, #tpu.memory_space<vmem>>, vector<8x1xf32>
    %282 = vector.broadcast %281 : vector<8x1xf32> to vector<8x256xf32>
    %283 = arith.mulf %280, %282 : vector<8x256xf32>
    %284 = arith.addf %277, %283 : vector<8x256xf32>
    %c240_i32_107 = arith.constant 240 : i32
    %285 = tpu.dynamic_rotate %239 by %c240_i32_107 dim 1 : vector<8x256xf32>, i32 -> vector<8x256xf32>
    %286 = vector.broadcast %6 : vector<1x256xf32> to vector<8x256xf32>
    %287 = arith.mulf %285, %286 : vector<8x256xf32>
    %c0_108 = arith.constant 0 : index
    %c37 = arith.constant 37 : index
    %288 = vector.load %arg2[%c0_108, %c37] : memref<8x39xf32, #tpu.memory_space<vmem>>, vector<8x1xf32>
    %289 = vector.broadcast %288 : vector<8x1xf32> to vector<8x256xf32>
    %290 = arith.mulf %287, %289 : vector<8x256xf32>
    %291 = arith.addf %284, %290 : vector<8x256xf32>
    %c240_i32_109 = arith.constant 240 : i32
    %292 = tpu.dynamic_rotate %245 by %c240_i32_109 dim 1 : vector<8x256xf32>, i32 -> vector<8x256xf32>
    %293 = vector.broadcast %6 : vector<1x256xf32> to vector<8x256xf32>
    %294 = arith.mulf %292, %293 : vector<8x256xf32>
    %c0_110 = arith.constant 0 : index
    %c38 = arith.constant 38 : index
    %295 = vector.load %arg2[%c0_110, %c38] : memref<8x39xf32, #tpu.memory_space<vmem>>, vector<8x1xf32>
    %296 = vector.broadcast %295 : vector<8x1xf32> to vector<8x256xf32>
    %297 = arith.mulf %294, %296 : vector<8x256xf32>
    %298 = arith.addf %291, %297 : vector<8x256xf32>
    %c0_111 = arith.constant 0 : index
    %c10 = arith.constant 10 : index
    %299 = vector.load %arg2[%c0_111, %c10] : memref<8x39xf32, #tpu.memory_space<vmem>>, vector<8x1xf32>
    %300 = vector.broadcast %299 : vector<8x1xf32> to vector<8x256xf32>
    %301 = arith.addf %298, %300 : vector<8x256xf32>
    %c0_112 = arith.constant 0 : index
    %c6 = arith.constant 6 : index
    %302 = vector.load %arg2[%c0_112, %c6] : memref<8x39xf32, #tpu.memory_space<vmem>>, vector<8x1xf32>
    %303 = vector.broadcast %302 : vector<8x1xf32> to vector<8x256xf32>
    %304 = arith.mulf %303, %301 : vector<8x256xf32>
    %305 = arith.addf %1, %304 : vector<8x256xf32>
    %306 = vector.shape_cast %305 : vector<8x256xf32> to vector<1x8x256xf32>
    %cst_113 = arith.constant dense<0.000000e+00> : vector<1xf32>
    %307 = vector.multi_reduction <add>, %306, %cst_113 [1, 2] : vector<1x8x256xf32> to vector<1xf32>
    %308 = vector.shape_cast %307 : vector<1xf32> to vector<1x1x1xf32>
    %309 = vector.extract %308[0, 0, 0] : f32 from vector<1x1x1xf32>
    %cst_114 = arith.constant 4.8828125E-4 : f32
    %310 = arith.mulf %309, %cst_114 : f32
    %311 = vector.broadcast %310 : f32 to vector<8x256xf32>
    %312 = arith.subf %305, %311 : vector<8x256xf32>
    %313 = arith.mulf %312, %312 : vector<8x256xf32>
    %314 = vector.shape_cast %313 : vector<8x256xf32> to vector<1x8x256xf32>
    %cst_115 = arith.constant dense<0.000000e+00> : vector<1xf32>
    %315 = vector.multi_reduction <add>, %314, %cst_115 [1, 2] : vector<1x8x256xf32> to vector<1xf32>
    %316 = vector.shape_cast %315 : vector<1xf32> to vector<1x1x1xf32>
    %317 = vector.extract %316[0, 0, 0] : f32 from vector<1x1x1xf32>
    %cst_116 = arith.constant 4.8828125E-4 : f32
    %318 = arith.mulf %317, %cst_116 : f32
    %cst_117 = arith.constant 9.99999974E-6 : f32
    %319 = arith.addf %318, %cst_117 : f32
    %320 = math.rsqrt %319 : f32
    %321 = vector.broadcast %320 : f32 to vector<8x256xf32>
    %322 = arith.mulf %312, %321 : vector<8x256xf32>
    %c0_118 = arith.constant 0 : index
    %c4_119 = arith.constant 4 : index
    %323 = vector.load %arg2[%c0_118, %c4_119] : memref<8x39xf32, #tpu.memory_space<vmem>>, vector<8x1xf32>
    %324 = vector.broadcast %323 : vector<8x1xf32> to vector<8x256xf32>
    %325 = arith.mulf %322, %324 : vector<8x256xf32>
    %c0_120 = arith.constant 0 : index
    %c5 = arith.constant 5 : index
    %326 = vector.load %arg2[%c0_120, %c5] : memref<8x39xf32, #tpu.memory_space<vmem>>, vector<8x1xf32>
    %327 = vector.broadcast %326 : vector<8x1xf32> to vector<8x256xf32>
    %328 = arith.addf %325, %327 : vector<8x256xf32>
    %329 = arith.truncf %328 : vector<8x256xf32> to vector<8x256xbf16>
    %cst_121 = arith.constant 0.000000e+00 : f32
    %330 = vector.broadcast %cst_121 : f32 to vector<8x256xf32>
    %c0_i32 = arith.constant 0 : i32
    %c16_i32_122 = arith.constant 16 : i32
    %331 = arith.muli %c0_i32, %c16_i32_122 : i32
    %332 = tpu.assume_multiple %331, 16 : i32
    %333 = arith.index_cast %332 : i32 to index
    %c0_123 = arith.constant 0 : index
    %334 = vector.load %arg9[%333, %c0_123] : memref<32x8xbf16, #tpu.memory_space<vmem>>, vector<16x8xbf16>
    %335 = arith.index_cast %332 : i32 to index
    %c0_124 = arith.constant 0 : index
    %336 = vector.load %arg10[%335, %c0_124] : memref<32x1xf32, #tpu.memory_space<vmem>>, vector<16x1xf32>
    %cst_125 = arith.constant dense<0.000000e+00> : vector<16x256xf32>
    %337 = tpu.matmul %334, %329, %cst_125 {dimension_numbers = #tpu.dot_dimension_numbers<[1], [0], [0], [1], [0, 0, 1, 1], [], []>} : vector<16x8xbf16>, vector<8x256xbf16>, vector<16x256xf32> -> vector<16x256xf32>
    %338 = vector.broadcast %336 : vector<16x1xf32> to vector<16x256xf32>
    %339 = arith.addf %337, %338 : vector<16x256xf32>
    %cst_126 = arith.constant 5.000000e-01 : f32
    %340 = vector.broadcast %cst_126 : f32 to vector<16x256xf32>
    %341 = arith.mulf %340, %339 : vector<16x256xf32>
    %cst_127 = arith.constant 4.471500e-02 : f32
    %342 = vector.broadcast %cst_127 : f32 to vector<16x256xf32>
    %343 = arith.mulf %342, %339 : vector<16x256xf32>
    %344 = arith.mulf %343, %339 : vector<16x256xf32>
    %345 = arith.mulf %344, %339 : vector<16x256xf32>
    %346 = arith.addf %339, %345 : vector<16x256xf32>
    %cst_128 = arith.constant 0.797884583 : f32
    %347 = vector.broadcast %cst_128 : f32 to vector<16x256xf32>
    %348 = arith.mulf %347, %346 : vector<16x256xf32>
    %349 = math.tanh %348 : vector<16x256xf32>
    %cst_129 = arith.constant 1.000000e+00 : f32
    %350 = vector.broadcast %cst_129 : f32 to vector<16x256xf32>
    %351 = arith.addf %350, %349 : vector<16x256xf32>
    %352 = arith.mulf %341, %351 : vector<16x256xf32>
    %353 = arith.truncf %352 : vector<16x256xf32> to vector<16x256xbf16>
    %354 = arith.index_cast %332 : i32 to index
    %c0_130 = arith.constant 0 : index
    %355 = vector.load %arg11[%354, %c0_130] : memref<32x8xbf16, #tpu.memory_space<vmem>>, vector<16x8xbf16>
    %cst_131 = arith.constant dense<0.000000e+00> : vector<8x256xf32>
    %356 = tpu.matmul %355, %353, %cst_131 {dimension_numbers = #tpu.dot_dimension_numbers<[0], [0], [1], [1], [0, 1, 1, 1], [], []>} : vector<16x8xbf16>, vector<16x256xbf16>, vector<8x256xf32> -> vector<8x256xf32>
    %357 = arith.addf %330, %356 : vector<8x256xf32>
    %c1_i32_132 = arith.constant 1 : i32
    %c16_i32_133 = arith.constant 16 : i32
    %358 = arith.muli %c1_i32_132, %c16_i32_133 : i32
    %359 = tpu.assume_multiple %358, 16 : i32
    %360 = arith.index_cast %359 : i32 to index
    %c0_134 = arith.constant 0 : index
    %361 = vector.load %arg9[%360, %c0_134] : memref<32x8xbf16, #tpu.memory_space<vmem>>, vector<16x8xbf16>
    %362 = arith.index_cast %359 : i32 to index
    %c0_135 = arith.constant 0 : index
    %363 = vector.load %arg10[%362, %c0_135] : memref<32x1xf32, #tpu.memory_space<vmem>>, vector<16x1xf32>
    %cst_136 = arith.constant dense<0.000000e+00> : vector<16x256xf32>
    %364 = tpu.matmul %361, %329, %cst_136 {dimension_numbers = #tpu.dot_dimension_numbers<[1], [0], [0], [1], [0, 0, 1, 1], [], []>} : vector<16x8xbf16>, vector<8x256xbf16>, vector<16x256xf32> -> vector<16x256xf32>
    %365 = vector.broadcast %363 : vector<16x1xf32> to vector<16x256xf32>
    %366 = arith.addf %364, %365 : vector<16x256xf32>
    %cst_137 = arith.constant 5.000000e-01 : f32
    %367 = vector.broadcast %cst_137 : f32 to vector<16x256xf32>
    %368 = arith.mulf %367, %366 : vector<16x256xf32>
    %cst_138 = arith.constant 4.471500e-02 : f32
    %369 = vector.broadcast %cst_138 : f32 to vector<16x256xf32>
    %370 = arith.mulf %369, %366 : vector<16x256xf32>
    %371 = arith.mulf %370, %366 : vector<16x256xf32>
    %372 = arith.mulf %371, %366 : vector<16x256xf32>
    %373 = arith.addf %366, %372 : vector<16x256xf32>
    %cst_139 = arith.constant 0.797884583 : f32
    %374 = vector.broadcast %cst_139 : f32 to vector<16x256xf32>
    %375 = arith.mulf %374, %373 : vector<16x256xf32>
    %376 = math.tanh %375 : vector<16x256xf32>
    %cst_140 = arith.constant 1.000000e+00 : f32
    %377 = vector.broadcast %cst_140 : f32 to vector<16x256xf32>
    %378 = arith.addf %377, %376 : vector<16x256xf32>
    %379 = arith.mulf %368, %378 : vector<16x256xf32>
    %380 = arith.truncf %379 : vector<16x256xf32> to vector<16x256xbf16>
    %381 = arith.index_cast %359 : i32 to index
    %c0_141 = arith.constant 0 : index
    %382 = vector.load %arg11[%381, %c0_141] : memref<32x8xbf16, #tpu.memory_space<vmem>>, vector<16x8xbf16>
    %cst_142 = arith.constant dense<0.000000e+00> : vector<8x256xf32>
    %383 = tpu.matmul %382, %380, %cst_142 {dimension_numbers = #tpu.dot_dimension_numbers<[0], [0], [1], [1], [0, 1, 1, 1], [], []>} : vector<16x8xbf16>, vector<16x256xbf16>, vector<8x256xf32> -> vector<8x256xf32>
    %384 = arith.addf %357, %383 : vector<8x256xf32>
    %c2_i32 = arith.constant 2 : i32
    %c0_143 = arith.constant 0 : index
    %c7 = arith.constant 7 : index
    %385 = vector.load %arg2[%c0_143, %c7] : memref<8x39xf32, #tpu.memory_space<vmem>>, vector<8x1xf32>
    %c0_144 = arith.constant 0 : index
    %c11 = arith.constant 11 : index
    %386 = vector.load %arg2[%c0_144, %c11] : memref<8x39xf32, #tpu.memory_space<vmem>>, vector<8x1xf32>
    %387 = vector.broadcast %386 : vector<8x1xf32> to vector<8x256xf32>
    %388 = arith.addf %384, %387 : vector<8x256xf32>
    %389 = vector.broadcast %385 : vector<8x1xf32> to vector<8x256xf32>
    %390 = arith.mulf %389, %388 : vector<8x256xf32>
    %391 = arith.addf %305, %390 : vector<8x256xf32>
    %c0_145 = arith.constant 0 : index
    %c0_146 = arith.constant 0 : index
    %c0_147 = arith.constant 0 : index
    %392 = vector.load %arg12[%c0_145, %c0_146, %c0_147] : memref<1x8x256xf32, #tpu.memory_space<vmem>>, vector<1x8x256xf32>
    %393 = vector.shape_cast %392 : vector<1x8x256xf32> to vector<8x256xf32>
    %394 = vector.shape_cast %391 : vector<8x256xf32> to vector<1x8x256xf32>
    tpu.vector_store %arg12[%c0_145, %c0_146, %c0_147], %394 {strides = array<i32>} : memref<1x8x256xf32, #tpu.memory_space<vmem>>, vector<1x8x256xf32>,
    return
  }
  func.func @transform_0(%arg0: i32) -> (i32, i32, i32) {
    %c0_i32 = arith.constant 0 : i32
    %c0_i32_0 = arith.constant 0 : i32
    %c0_i32_1 = arith.constant 0 : i32
    return %arg0, %c0_i32, %c0_i32_0 : i32, i32, i32
  }
  func.func @transform_1(%arg0: i32) -> (i32, i32) {
    %c0_i32 = arith.constant 0 : i32
    %c0_i32_0 = arith.constant 0 : i32
    %c0_i32_1 = arith.constant 0 : i32
    return %c0_i32, %c0_i32_0 : i32, i32
  }
  func.func @transform_2(%arg0: i32) -> (i32, i32) {
    %c0_i32 = arith.constant 0 : i32
    %c0_i32_0 = arith.constant 0 : i32
    %c0_i32_1 = arith.constant 0 : i32
    return %c0_i32, %c0_i32_0 : i32, i32
  }
  func.func @transform_3(%arg0: i32) -> (i32, i32) {
    %c0_i32 = arith.constant 0 : i32
    %c0_i32_0 = arith.constant 0 : i32
    %c0_i32_1 = arith.constant 0 : i32
    return %c0_i32, %c0_i32_0 : i32, i32
  }
  func.func @transform_4(%arg0: i32) -> (i32, i32) {
    %c0_i32 = arith.constant 0 : i32
    %c0_i32_0 = arith.constant 0 : i32
    %c0_i32_1 = arith.constant 0 : i32
    return %c0_i32, %c0_i32_0 : i32, i32
  }
  func.func @transform_5(%arg0: i32) -> (i32, i32) {
    %c0_i32 = arith.constant 0 : i32
    %c0_i32_0 = arith.constant 0 : i32
    %c0_i32_1 = arith.constant 0 : i32
    return %c0_i32, %c0_i32_0 : i32, i32
  }
  func.func @transform_6(%arg0: i32) -> (i32, i32) {
    %c0_i32 = arith.constant 0 : i32
    %c0_i32_0 = arith.constant 0 : i32
    %c0_i32_1 = arith.constant 0 : i32
    return %c0_i32, %c0_i32_0 : i32, i32
  }
  func.func @transform_7(%arg0: i32) -> (i32, i32) {
    %c0_i32 = arith.constant 0 : i32
    %c0_i32_0 = arith.constant 0 : i32
    %c0_i32_1 = arith.constant 0 : i32
    return %c0_i32, %c0_i32_0 : i32, i32
  }
  func.func @transform_8(%arg0: i32) -> (i32, i32) {
    %c0_i32 = arith.constant 0 : i32
    %c0_i32_0 = arith.constant 0 : i32
    %c0_i32_1 = arith.constant 0 : i32
    return %c0_i32, %c0_i32_0 : i32, i32
  }
  func.func @transform_9(%arg0: i32) -> (i32, i32) {
    %c0_i32 = arith.constant 0 : i32
    %c0_i32_0 = arith.constant 0 : i32
    %c0_i32_1 = arith.constant 0 : i32
    return %c0_i32, %c0_i32_0 : i32, i32
  }
  func.func @transform_10(%arg0: i32) -> (i32, i32) {
    %c0_i32 = arith.constant 0 : i32
    %c0_i32_0 = arith.constant 0 : i32
    %c0_i32_1 = arith.constant 0 : i32
    return %c0_i32, %c0_i32_0 : i32, i32
  }
  func.func @transform_11(%arg0: i32) -> (i32, i32, i32) {
    %c0_i32 = arith.constant 0 : i32
    %c0_i32_0 = arith.constant 0 : i32
    %c0_i32_1 = arith.constant 0 : i32
    return %arg0, %c0_i32, %c0_i32_0 : i32, i32, i32
  }
}

module attributes {stable_mosaic.version = 11 : i64} {
  func.func @_poolformer_kernel(%arg0: i32, %arg1: memref<1x8x256xf32, #tpu.memory_space<vmem>>, %arg2: memref<8x39xf32, #tpu.memory_space<vmem>>, %arg3: memref<8x256xf32, #tpu.memory_space<vmem>>, %arg4: memref<1x8xbf16, #tpu.memory_space<vmem>>, %arg5: memref<256x64xbf16, #tpu.memory_space<vmem>>, %arg6: memref<256x64xbf16, #tpu.memory_space<vmem>>, %arg7: memref<16x256xbf16, #tpu.memory_space<vmem>>, %arg8: memref<16x256xbf16, #tpu.memory_space<vmem>>, %arg9: memref<32x8xbf16, #tpu.memory_space<vmem>>, %arg10: memref<32x1xf32, #tpu.memory_space<vmem>>, %arg11: memref<32x8xbf16, #tpu.memory_space<vmem>>, %arg12: memref<1x8x256xf32, #tpu.memory_space<vmem>>) attributes {dimension_semantics = [#tpu.dimension_semantics<parallel>], iteration_bounds = array<i64: 2>, scalar_prefetch = 0 : i64, scratch_operands = 0 : i64, tpu.core_type = #tpu.core_type<tc>, window_params = [{transform_indices = @transform_0, window_bounds = array<i64: 1, 8, 256>}, {pipeline_mode = #tpu.pipeline_mode<synchronous>, transform_indices = @transform_1, window_bounds = array<i64: 8, 39>}, {pipeline_mode = #tpu.pipeline_mode<synchronous>, transform_indices = @transform_2, window_bounds = array<i64: 8, 256>}, {pipeline_mode = #tpu.pipeline_mode<synchronous>, transform_indices = @transform_3, window_bounds = array<i64: 1, 8>}, {pipeline_mode = #tpu.pipeline_mode<synchronous>, transform_indices = @transform_4, window_bounds = array<i64: 256, 64>}, {pipeline_mode = #tpu.pipeline_mode<synchronous>, transform_indices = @transform_5, window_bounds = array<i64: 256, 64>}, {pipeline_mode = #tpu.pipeline_mode<synchronous>, transform_indices = @transform_6, window_bounds = array<i64: 16, 256>}, {pipeline_mode = #tpu.pipeline_mode<synchronous>, transform_indices = @transform_7, window_bounds = array<i64: 16, 256>}, {pipeline_mode = #tpu.pipeline_mode<synchronous>, transform_indices = @transform_8, window_bounds = array<i64: 32, 8>}, {pipeline_mode = #tpu.pipeline_mode<synchronous>, transform_indices = @transform_9, window_bounds = array<i64: 32, 1>}, {pipeline_mode = #tpu.pipeline_mode<synchronous>, transform_indices = @transform_10, window_bounds = array<i64: 32, 8>}, {transform_indices = @transform_11, window_bounds = array<i64: 1, 8, 256>}]} {
    %c0 = arith.constant 0 : index
    %c0_0 = arith.constant 0 : index
    %c0_1 = arith.constant 0 : index
    %0 = vector.load %arg1[%c0, %c0_0, %c0_1] : memref<1x8x256xf32, #tpu.memory_space<vmem>>, vector<1x8x256xf32>
    %1 = vector.shape_cast %0 : vector<1x8x256xf32> to vector<8x256xf32>
    %c0_2 = arith.constant 0 : index
    %c0_3 = arith.constant 0 : index
    %2 = vector.load %arg3[%c0_2, %c0_3] : memref<8x256xf32, #tpu.memory_space<vmem>>, vector<1x256xf32>
    %c1 = arith.constant 1 : index
    %c0_4 = arith.constant 0 : index
    %3 = vector.load %arg3[%c1, %c0_4] : memref<8x256xf32, #tpu.memory_space<vmem>>, vector<1x256xf32>
    %c2 = arith.constant 2 : index
    %c0_5 = arith.constant 0 : index
    %4 = vector.load %arg3[%c2, %c0_5] : memref<8x256xf32, #tpu.memory_space<vmem>>, vector<1x256xf32>
    %c3 = arith.constant 3 : index
    %c0_6 = arith.constant 0 : index
    %5 = vector.load %arg3[%c3, %c0_6] : memref<8x256xf32, #tpu.memory_space<vmem>>, vector<1x256xf32>
    %c4 = arith.constant 4 : index
    %c0_7 = arith.constant 0 : index
    %6 = vector.load %arg3[%c4, %c0_7] : memref<8x256xf32, #tpu.memory_space<vmem>>, vector<1x256xf32>
    %7 = vector.shape_cast %1 : vector<8x256xf32> to vector<1x8x256xf32>
    %cst = arith.constant dense<0.000000e+00> : vector<1xf32>
    %8 = vector.multi_reduction <add>, %7, %cst [1, 2] : vector<1x8x256xf32> to vector<1xf32>
    %9 = vector.shape_cast %8 : vector<1xf32> to vector<1x1x1xf32>
    %10 = vector.extract %9[0, 0, 0] : f32 from vector<1x1x1xf32>
    %cst_8 = arith.constant 4.8828125E-4 : f32
    %11 = arith.mulf %10, %cst_8 : f32
    %12 = vector.broadcast %11 : f32 to vector<8x256xf32>
    %13 = arith.subf %1, %12 : vector<8x256xf32>
    %14 = arith.mulf %13, %13 : vector<8x256xf32>
    %15 = vector.shape_cast %14 : vector<8x256xf32> to vector<1x8x256xf32>
    %cst_9 = arith.constant dense<0.000000e+00> : vector<1xf32>
    %16 = vector.multi_reduction <add>, %15, %cst_9 [1, 2] : vector<1x8x256xf32> to vector<1xf32>
    %17 = vector.shape_cast %16 : vector<1xf32> to vector<1x1x1xf32>
    %18 = vector.extract %17[0, 0, 0] : f32 from vector<1x1x1xf32>
    %cst_10 = arith.constant 4.8828125E-4 : f32
    %19 = arith.mulf %18, %cst_10 : f32
    %cst_11 = arith.constant 9.99999974E-6 : f32
    %20 = arith.addf %19, %cst_11 : f32
    %21 = math.rsqrt %20 : f32
    %22 = vector.broadcast %21 : f32 to vector<8x256xf32>
    %23 = arith.mulf %13, %22 : vector<8x256xf32>
    %c0_12 = arith.constant 0 : index
    %c0_13 = arith.constant 0 : index
    %24 = vector.load %arg2[%c0_12, %c0_13] : memref<8x39xf32, #tpu.memory_space<vmem>>, vector<8x1xf32>
    %25 = vector.broadcast %24 : vector<8x1xf32> to vector<8x256xf32>
    %26 = arith.mulf %23, %25 : vector<8x256xf32>
    %c0_14 = arith.constant 0 : index
    %c1_15 = arith.constant 1 : index
    %27 = vector.load %arg2[%c0_14, %c1_15] : memref<8x39xf32, #tpu.memory_space<vmem>>, vector<8x1xf32>
    %28 = vector.broadcast %27 : vector<8x1xf32> to vector<8x256xf32>
    %29 = arith.addf %26, %28 : vector<8x256xf32>
    %30 = arith.truncf %29 : vector<8x256xf32> to vector<8x256xbf16>
    %c1_i32 = arith.constant 1 : i32
    %31 = tpu.dynamic_rotate %29 by %c1_i32 dim 1 : vector<8x256xf32>, i32 -> vector<8x256xf32>
    %32 = vector.broadcast %3 : vector<1x256xf32> to vector<8x256xf32>
    %33 = arith.mulf %31, %32 : vector<8x256xf32>
    %34 = arith.addf %33, %29 : vector<8x256xf32>
    %c255_i32 = arith.constant 255 : i32
    %35 = tpu.dynamic_rotate %29 by %c255_i32 dim 1 : vector<8x256xf32>, i32 -> vector<8x256xf32>
    %36 = vector.broadcast %4 : vector<1x256xf32> to vector<8x256xf32>
    %37 = arith.mulf %35, %36 : vector<8x256xf32>
    %38 = arith.addf %34, %37 : vector<8x256xf32>
    %c16_i32 = arith.constant 16 : i32
    %39 = tpu.dynamic_rotate %38 by %c16_i32 dim 1 : vector<8x256xf32>, i32 -> vector<8x256xf32>
    %40 = vector.broadcast %5 : vector<1x256xf32> to vector<8x256xf32>
    %41 = arith.mulf %39, %40 : vector<8x256xf32>
    %42 = arith.addf %38, %41 : vector<8x256xf32>
    %c240_i32 = arith.constant 240 : i32
    %43 = tpu.dynamic_rotate %38 by %c240_i32 dim 1 : vector<8x256xf32>, i32 -> vector<8x256xf32>
    %44 = vector.broadcast %6 : vector<1x256xf32> to vector<8x256xf32>
    %45 = arith.mulf %43, %44 : vector<8x256xf32>
    %46 = arith.addf %42, %45 : vector<8x256xf32>
    %47 = vector.broadcast %2 : vector<1x256xf32> to vector<8x256xf32>
    %48 = arith.mulf %46, %47 : vector<8x256xf32>
    %49 = arith.subf %29, %48 : vector<8x256xf32>
    %c0_16 = arith.constant 0 : index
    %c0_17 = arith.constant 0 : index
    %50 = vector.load %arg5[%c0_16, %c0_17] : memref<256x64xbf16, #tpu.memory_space<vmem>>, vector<256x64xbf16>
    %cst_18 = arith.constant dense<0.000000e+00> : vector<8x64xf32>
    %51 = tpu.matmul %30, %50, %cst_18 {dimension_numbers = #tpu.dot_dimension_numbers<[1], [0], [0], [1], [0, 0, 1, 1], [], []>} : vector<8x256xbf16>, vector<256x64xbf16>, vector<8x64xf32> -> vector<8x64xf32>
    %c0_19 = arith.constant 0 : index
    %c0_20 = arith.constant 0 : index
    %52 = vector.load %arg6[%c0_19, %c0_20] : memref<256x64xbf16, #tpu.memory_space<vmem>>, vector<256x64xbf16>
    %cst_21 = arith.constant dense<0.000000e+00> : vector<8x64xf32>
    %53 = tpu.matmul %30, %52, %cst_21 {dimension_numbers = #tpu.dot_dimension_numbers<[1], [0], [0], [1], [0, 0, 1, 1], [], []>} : vector<8x256xbf16>, vector<256x64xbf16>, vector<8x64xf32> -> vector<8x64xf32>
    %54 = arith.truncf %51 : vector<8x64xf32> to vector<8x64xbf16>
    %55 = arith.truncf %53 : vector<8x64xf32> to vector<8x64xbf16>
    %56 = vector.extract_strided_slice %54 {offsets = [0, 0], sizes = [8, 16], strides = [1, 1]} : vector<8x64xbf16> to vector<8x16xbf16>
    %c0_22 = arith.constant 0 : index
    %c0_23 = arith.constant 0 : index
    %57 = vector.load %arg7[%c0_22, %c0_23] : memref<16x256xbf16, #tpu.memory_space<vmem>>, vector<16x256xbf16>
    %cst_24 = arith.constant dense<0.000000e+00> : vector<8x256xf32>
    %58 = tpu.matmul %56, %57, %cst_24 {dimension_numbers = #tpu.dot_dimension_numbers<[1], [0], [0], [1], [0, 0, 1, 1], [], []>} : vector<8x16xbf16>, vector<16x256xbf16>, vector<8x256xf32> -> vector<8x256xf32>
    %59 = vector.extract_strided_slice %55 {offsets = [0, 0], sizes = [8, 16], strides = [1, 1]} : vector<8x64xbf16> to vector<8x16xbf16>
    %c0_25 = arith.constant 0 : index
    %c0_26 = arith.constant 0 : index
    %60 = vector.load %arg8[%c0_25, %c0_26] : memref<16x256xbf16, #tpu.memory_space<vmem>>, vector<16x256xbf16>
    %cst_27 = arith.constant dense<0.000000e+00> : vector<8x256xf32>
    %61 = tpu.matmul %59, %60, %cst_27 {dimension_numbers = #tpu.dot_dimension_numbers<[1], [0], [0], [1], [0, 0, 1, 1], [], []>} : vector<8x16xbf16>, vector<16x256xbf16>, vector<8x256xf32> -> vector<8x256xf32>
    %62 = arith.mulf %58, %61 : vector<8x256xf32>
    %63 = vector.extract_strided_slice %54 {offsets = [0, 16], sizes = [8, 16], strides = [1, 1]} : vector<8x64xbf16> to vector<8x16xbf16>
    %c0_28 = arith.constant 0 : index
    %c0_29 = arith.constant 0 : index
    %64 = vector.load %arg7[%c0_28, %c0_29] : memref<16x256xbf16, #tpu.memory_space<vmem>>, vector<16x256xbf16>
    %cst_30 = arith.constant dense<0.000000e+00> : vector<8x256xf32>
    %65 = tpu.matmul %63, %64, %cst_30 {dimension_numbers = #tpu.dot_dimension_numbers<[1], [0], [0], [1], [0, 0, 1, 1], [], []>} : vector<8x16xbf16>, vector<16x256xbf16>, vector<8x256xf32> -> vector<8x256xf32>
    %66 = vector.extract_strided_slice %55 {offsets = [0, 16], sizes = [8, 16], strides = [1, 1]} : vector<8x64xbf16> to vector<8x16xbf16>
    %c0_31 = arith.constant 0 : index
    %c0_32 = arith.constant 0 : index
    %67 = vector.load %arg8[%c0_31, %c0_32] : memref<16x256xbf16, #tpu.memory_space<vmem>>, vector<16x256xbf16>
    %cst_33 = arith.constant dense<0.000000e+00> : vector<8x256xf32>
    %68 = tpu.matmul %66, %67, %cst_33 {dimension_numbers = #tpu.dot_dimension_numbers<[1], [0], [0], [1], [0, 0, 1, 1], [], []>} : vector<8x16xbf16>, vector<16x256xbf16>, vector<8x256xf32> -> vector<8x256xf32>
    %69 = arith.mulf %65, %68 : vector<8x256xf32>
    %70 = arith.addf %62, %69 : vector<8x256xf32>
    %71 = vector.extract_strided_slice %54 {offsets = [0, 32], sizes = [8, 16], strides = [1, 1]} : vector<8x64xbf16> to vector<8x16xbf16>
    %c0_34 = arith.constant 0 : index
    %c0_35 = arith.constant 0 : index
    %72 = vector.load %arg7[%c0_34, %c0_35] : memref<16x256xbf16, #tpu.memory_space<vmem>>, vector<16x256xbf16>
    %cst_36 = arith.constant dense<0.000000e+00> : vector<8x256xf32>
    %73 = tpu.matmul %71, %72, %cst_36 {dimension_numbers = #tpu.dot_dimension_numbers<[1], [0], [0], [1], [0, 0, 1, 1], [], []>} : vector<8x16xbf16>, vector<16x256xbf16>, vector<8x256xf32> -> vector<8x256xf32>
    %74 = vector.extract_strided_slice %55 {offsets = [0, 32], sizes = [8, 16], strides = [1, 1]} : vector<8x64xbf16> to vector<8x16xbf16>
    %c0_37 = arith.constant 0 : index
    %c0_38 = arith.constant 0 : index
    %75 = vector.load %arg8[%c0_37, %c0_38] : memref<16x256xbf16, #tpu.memory_space<vmem>>, vector<16x256xbf16>
    %cst_39 = arith.constant dense<0.000000e+00> : vector<8x256xf32>
    %76 = tpu.matmul %74, %75, %cst_39 {dimension_numbers = #tpu.dot_dimension_numbers<[1], [0], [0], [1], [0, 0, 1, 1], [], []>} : vector<8x16xbf16>, vector<16x256xbf16>, vector<8x256xf32> -> vector<8x256xf32>
    %77 = arith.mulf %73, %76 : vector<8x256xf32>
    %78 = arith.addf %70, %77 : vector<8x256xf32>
    %79 = vector.extract_strided_slice %54 {offsets = [0, 48], sizes = [8, 16], strides = [1, 1]} : vector<8x64xbf16> to vector<8x16xbf16>
    %c0_40 = arith.constant 0 : index
    %c0_41 = arith.constant 0 : index
    %80 = vector.load %arg7[%c0_40, %c0_41] : memref<16x256xbf16, #tpu.memory_space<vmem>>, vector<16x256xbf16>
    %cst_42 = arith.constant dense<0.000000e+00> : vector<8x256xf32>
    %81 = tpu.matmul %79, %80, %cst_42 {dimension_numbers = #tpu.dot_dimension_numbers<[1], [0], [0], [1], [0, 0, 1, 1], [], []>} : vector<8x16xbf16>, vector<16x256xbf16>, vector<8x256xf32> -> vector<8x256xf32>
    %82 = vector.extract_strided_slice %55 {offsets = [0, 48], sizes = [8, 16], strides = [1, 1]} : vector<8x64xbf16> to vector<8x16xbf16>
    %c0_43 = arith.constant 0 : index
    %c0_44 = arith.constant 0 : index
    %83 = vector.load %arg8[%c0_43, %c0_44] : memref<16x256xbf16, #tpu.memory_space<vmem>>, vector<16x256xbf16>
    %cst_45 = arith.constant dense<0.000000e+00> : vector<8x256xf32>
    %84 = tpu.matmul %82, %83, %cst_45 {dimension_numbers = #tpu.dot_dimension_numbers<[1], [0], [0], [1], [0, 0, 1, 1], [], []>} : vector<8x16xbf16>, vector<16x256xbf16>, vector<8x256xf32> -> vector<8x256xf32>
    %85 = arith.mulf %81, %84 : vector<8x256xf32>
    %86 = arith.addf %78, %85 : vector<8x256xf32>
    %c1_i32_46 = arith.constant 1 : i32
    %87 = tpu.dynamic_rotate %86 by %c1_i32_46 dim 1 : vector<8x256xf32>, i32 -> vector<8x256xf32>
    %88 = vector.broadcast %3 : vector<1x256xf32> to vector<8x256xf32>
    %89 = arith.mulf %87, %88 : vector<8x256xf32>
    %c255_i32_47 = arith.constant 255 : i32
    %90 = tpu.dynamic_rotate %86 by %c255_i32_47 dim 1 : vector<8x256xf32>, i32 -> vector<8x256xf32>
    %91 = vector.broadcast %4 : vector<1x256xf32> to vector<8x256xf32>
    %92 = arith.mulf %90, %91 : vector<8x256xf32>
    %c16_i32_48 = arith.constant 16 : i32
    %93 = tpu.dynamic_rotate %89 by %c16_i32_48 dim 1 : vector<8x256xf32>, i32 -> vector<8x256xf32>
    %94 = vector.broadcast %5 : vector<1x256xf32> to vector<8x256xf32>
    %95 = arith.mulf %93, %94 : vector<8x256xf32>
    %c0_49 = arith.constant 0 : index
    %c12 = arith.constant 12 : index
    %96 = vector.load %arg2[%c0_49, %c12] : memref<8x39xf32, #tpu.memory_space<vmem>>, vector<8x1xf32>
    %97 = vector.broadcast %96 : vector<8x1xf32> to vector<8x256xf32>
    %98 = arith.mulf %95, %97 : vector<8x256xf32>
    %c16_i32_50 = arith.constant 16 : i32
    %99 = tpu.dynamic_rotate %86 by %c16_i32_50 dim 1 : vector<8x256xf32>, i32 -> vector<8x256xf32>
    %100 = vector.broadcast %5 : vector<1x256xf32> to vector<8x256xf32>
    %101 = arith.mulf %99, %100 : vector<8x256xf32>
    %c0_51 = arith.constant 0 : index
    %c13 = arith.constant 13 : index
    %102 = vector.load %arg2[%c0_51, %c13] : memref<8x39xf32, #tpu.memory_space<vmem>>, vector<8x1xf32>
    %103 = vector.broadcast %102 : vector<8x1xf32> to vector<8x256xf32>
    %104 = arith.mulf %101, %103 : vector<8x256xf32>
    %105 = arith.addf %98, %104 : vector<8x256xf32>
    %c16_i32_52 = arith.constant 16 : i32
    %106 = tpu.dynamic_rotate %92 by %c16_i32_52 dim 1 : vector<8x256xf32>, i32 -> vector<8x256xf32>
    %107 = vector.broadcast %5 : vector<1x256xf32> to vector<8x256xf32>
    %108 = arith.mulf %106, %107 : vector<8x256xf32>
    %c0_53 = arith.constant 0 : index
    %c14 = arith.constant 14 : index
    %109 = vector.load %arg2[%c0_53, %c14] : memref<8x39xf32, #tpu.memory_space<vmem>>, vector<8x1xf32>
    %110 = vector.broadcast %109 : vector<8x1xf32> to vector<8x256xf32>
    %111 = arith.mulf %108, %110 : vector<8x256xf32>
    %112 = arith.addf %105, %111 : vector<8x256xf32>
    %c0_54 = arith.constant 0 : index
    %c15 = arith.constant 15 : index
    %113 = vector.load %arg2[%c0_54, %c15] : memref<8x39xf32, #tpu.memory_space<vmem>>, vector<8x1xf32>
    %114 = vector.broadcast %113 : vector<8x1xf32> to vector<8x256xf32>
    %115 = arith.mulf %89, %114 : vector<8x256xf32>
    %116 = arith.addf %112, %115 : vector<8x256xf32>
    %c0_55 = arith.constant 0 : index
    %c16 = arith.constant 16 : index
    %117 = vector.load %arg2[%c0_55, %c16] : memref<8x39xf32, #tpu.memory_space<vmem>>, vector<8x1xf32>
    %118 = vector.broadcast %117 : vector<8x1xf32> to vector<8x256xf32>
    %119 = arith.mulf %86, %118 : vector<8x256xf32>
    %120 = arith.addf %116, %119 : vector<8x256xf32>
    %c0_56 = arith.constant 0 : index
    %c17 = arith.constant 17 : index
    %121 = vector.load %arg2[%c0_56, %c17] : memref<8x39xf32, #tpu.memory_space<vmem>>, vector<8x1xf32>
    %122 = vector.broadcast %121 : vector<8x1xf32> to vector<8x256xf32>
    %123 = arith.mulf %92, %122 : vector<8x256xf32>
    %124 = arith.addf %120, %123 : vector<8x256xf32>
    %c240_i32_57 = arith.constant 240 : i32
    %125 = tpu.dynamic_rotate %89 by %c240_i32_57 dim 1 : vector<8x256xf32>, i32 -> vector<8x256xf32>
    %126 = vector.broadcast %6 : vector<1x256xf32> to vector<8x256xf32>
    %127 = arith.mulf %125, %126 : vector<8x256xf32>
    %c0_58 = arith.constant 0 : index
    %c18 = arith.constant 18 : index
    %128 = vector.load %arg2[%c0_58, %c18] : memref<8x39xf32, #tpu.memory_space<vmem>>, vector<8x1xf32>
    %129 = vector.broadcast %128 : vector<8x1xf32> to vector<8x256xf32>
    %130 = arith.mulf %127, %129 : vector<8x256xf32>
    %131 = arith.addf %124, %130 : vector<8x256xf32>
    %c240_i32_59 = arith.constant 240 : i32
    %132 = tpu.dynamic_rotate %86 by %c240_i32_59 dim 1 : vector<8x256xf32>, i32 -> vector<8x256xf32>
    %133 = vector.broadcast %6 : vector<1x256xf32> to vector<8x256xf32>
    %134 = arith.mulf %132, %133 : vector<8x256xf32>
    %c0_60 = arith.constant 0 : index
    %c19 = arith.constant 19 : index
    %135 = vector.load %arg2[%c0_60, %c19] : memref<8x39xf32, #tpu.memory_space<vmem>>, vector<8x1xf32>
    %136 = vector.broadcast %135 : vector<8x1xf32> to vector<8x256xf32>
    %137 = arith.mulf %134, %136 : vector<8x256xf32>
    %138 = arith.addf %131, %137 : vector<8x256xf32>
    %c240_i32_61 = arith.constant 240 : i32
    %139 = tpu.dynamic_rotate %92 by %c240_i32_61 dim 1 : vector<8x256xf32>, i32 -> vector<8x256xf32>
    %140 = vector.broadcast %6 : vector<1x256xf32> to vector<8x256xf32>
    %141 = arith.mulf %139, %140 : vector<8x256xf32>
    %c0_62 = arith.constant 0 : index
    %c20 = arith.constant 20 : index
    %142 = vector.load %arg2[%c0_62, %c20] : memref<8x39xf32, #tpu.memory_space<vmem>>, vector<8x1xf32>
    %143 = vector.broadcast %142 : vector<8x1xf32> to vector<8x256xf32>
    %144 = arith.mulf %141, %143 : vector<8x256xf32>
    %145 = arith.addf %138, %144 : vector<8x256xf32>
    %c0_63 = arith.constant 0 : index
    %c8 = arith.constant 8 : index
    %146 = vector.load %arg2[%c0_63, %c8] : memref<8x39xf32, #tpu.memory_space<vmem>>, vector<8x1xf32>
    %147 = vector.broadcast %146 : vector<8x1xf32> to vector<8x256xf32>
    %148 = arith.addf %145, %147 : vector<8x256xf32>
    %c0_64 = arith.constant 0 : index
    %c0_65 = arith.constant 0 : index
    %149 = vector.load %arg4[%c0_64, %c0_65] : memref<1x8xbf16, #tpu.memory_space<vmem>>, vector<1x8xbf16>
    %cst_66 = arith.constant dense<0.000000e+00> : vector<1x256xf32>
    %150 = tpu.matmul %149, %30, %cst_66 {dimension_numbers = #tpu.dot_dimension_numbers<[1], [0], [0], [1], [0, 0, 1, 1], [], []>} : vector<1x8xbf16>, vector<8x256xbf16>, vector<1x256xf32> -> vector<1x256xf32>
    %151 = vector.broadcast %150 : vector<1x256xf32> to vector<8x256xf32>
    %152 = arith.mulf %29, %151 : vector<8x256xf32>
    %c1_i32_67 = arith.constant 1 : i32
    %153 = tpu.dynamic_rotate %152 by %c1_i32_67 dim 1 : vector<8x256xf32>, i32 -> vector<8x256xf32>
    %154 = vector.broadcast %3 : vector<1x256xf32> to vector<8x256xf32>
    %155 = arith.mulf %153, %154 : vector<8x256xf32>
    %c255_i32_68 = arith.constant 255 : i32
    %156 = tpu.dynamic_rotate %152 by %c255_i32_68 dim 1 : vector<8x256xf32>, i32 -> vector<8x256xf32>
    %157 = vector.broadcast %4 : vector<1x256xf32> to vector<8x256xf32>
    %158 = arith.mulf %156, %157 : vector<8x256xf32>
    %c16_i32_69 = arith.constant 16 : i32
    %159 = tpu.dynamic_rotate %155 by %c16_i32_69 dim 1 : vector<8x256xf32>, i32 -> vector<8x256xf32>
    %160 = vector.broadcast %5 : vector<1x256xf32> to vector<8x256xf32>
    %161 = arith.mulf %159, %160 : vector<8x256xf32>
    %c0_70 = arith.constant 0 : index
    %c21 = arith.constant 21 : index
    %162 = vector.load %arg2[%c0_70, %c21] : memref<8x39xf32, #tpu.memory_space<vmem>>, vector<8x1xf32>
    %163 = vector.broadcast %162 : vector<8x1xf32> to vector<8x256xf32>
    %164 = arith.mulf %161, %163 : vector<8x256xf32>
    %c16_i32_71 = arith.constant 16 : i32
    %165 = tpu.dynamic_rotate %152 by %c16_i32_71 dim 1 : vector<8x256xf32>, i32 -> vector<8x256xf32>
    %166 = vector.broadcast %5 : vector<1x256xf32> to vector<8x256xf32>
    %167 = arith.mulf %165, %166 : vector<8x256xf32>
    %c0_72 = arith.constant 0 : index
    %c22 = arith.constant 22 : index
    %168 = vector.load %arg2[%c0_72, %c22] : memref<8x39xf32, #tpu.memory_space<vmem>>, vector<8x1xf32>
    %169 = vector.broadcast %168 : vector<8x1xf32> to vector<8x256xf32>
    %170 = arith.mulf %167, %169 : vector<8x256xf32>
    %171 = arith.addf %164, %170 : vector<8x256xf32>
    %c16_i32_73 = arith.constant 16 : i32
    %172 = tpu.dynamic_rotate %158 by %c16_i32_73 dim 1 : vector<8x256xf32>, i32 -> vector<8x256xf32>
    %173 = vector.broadcast %5 : vector<1x256xf32> to vector<8x256xf32>
    %174 = arith.mulf %172, %173 : vector<8x256xf32>
    %c0_74 = arith.constant 0 : index
    %c23 = arith.constant 23 : index
    %175 = vector.load %arg2[%c0_74, %c23] : memref<8x39xf32, #tpu.memory_space<vmem>>, vector<8x1xf32>
    %176 = vector.broadcast %175 : vector<8x1xf32> to vector<8x256xf32>
    %177 = arith.mulf %174, %176 : vector<8x256xf32>
    %178 = arith.addf %171, %177 : vector<8x256xf32>
    %c0_75 = arith.constant 0 : index
    %c24 = arith.constant 24 : index
    %179 = vector.load %arg2[%c0_75, %c24] : memref<8x39xf32, #tpu.memory_space<vmem>>, vector<8x1xf32>
    %180 = vector.broadcast %179 : vector<8x1xf32> to vector<8x256xf32>
    %181 = arith.mulf %155, %180 : vector<8x256xf32>
    %182 = arith.addf %178, %181 : vector<8x256xf32>
    %c0_76 = arith.constant 0 : index
    %c25 = arith.constant 25 : index
    %183 = vector.load %arg2[%c0_76, %c25] : memref<8x39xf32, #tpu.memory_space<vmem>>, vector<8x1xf32>
    %184 = vector.broadcast %183 : vector<8x1xf32> to vector<8x256xf32>
    %185 = arith.mulf %152, %184 : vector<8x256xf32>
    %186 = arith.addf %182, %185 : vector<8x256xf32>
    %c0_77 = arith.constant 0 : index
    %c26 = arith.constant 26 : index
    %187 = vector.load %arg2[%c0_77, %c26] : memref<8x39xf32, #tpu.memory_space<vmem>>, vector<8x1xf32>
    %188 = vector.broadcast %187 : vector<8x1xf32> to vector<8x256xf32>
    %189 = arith.mulf %158, %188 : vector<8x256xf32>
    %190 = arith.addf %186, %189 : vector<8x256xf32>
    %c240_i32_78 = arith.constant 240 : i32
    %191 = tpu.dynamic_rotate %155 by %c240_i32_78 dim 1 : vector<8x256xf32>, i32 -> vector<8x256xf32>
    %192 = vector.broadcast %6 : vector<1x256xf32> to vector<8x256xf32>
    %193 = arith.mulf %191, %192 : vector<8x256xf32>
    %c0_79 = arith.constant 0 : index
    %c27 = arith.constant 27 : index
    %194 = vector.load %arg2[%c0_79, %c27] : memref<8x39xf32, #tpu.memory_space<vmem>>, vector<8x1xf32>
    %195 = vector.broadcast %194 : vector<8x1xf32> to vector<8x256xf32>
    %196 = arith.mulf %193, %195 : vector<8x256xf32>
    %197 = arith.addf %190, %196 : vector<8x256xf32>
    %c240_i32_80 = arith.constant 240 : i32
    %198 = tpu.dynamic_rotate %152 by %c240_i32_80 dim 1 : vector<8x256xf32>, i32 -> vector<8x256xf32>
    %199 = vector.broadcast %6 : vector<1x256xf32> to vector<8x256xf32>
    %200 = arith.mulf %198, %199 : vector<8x256xf32>
    %c0_81 = arith.constant 0 : index
    %c28 = arith.constant 28 : index
    %201 = vector.load %arg2[%c0_81, %c28] : memref<8x39xf32, #tpu.memory_space<vmem>>, vector<8x1xf32>
    %202 = vector.broadcast %201 : vector<8x1xf32> to vector<8x256xf32>
    %203 = arith.mulf %200, %202 : vector<8x256xf32>
    %204 = arith.addf %197, %203 : vector<8x256xf32>
    %c240_i32_82 = arith.constant 240 : i32
    %205 = tpu.dynamic_rotate %158 by %c240_i32_82 dim 1 : vector<8x256xf32>, i32 -> vector<8x256xf32>
    %206 = vector.broadcast %6 : vector<1x256xf32> to vector<8x256xf32>
    %207 = arith.mulf %205, %206 : vector<8x256xf32>
    %c0_83 = arith.constant 0 : index
    %c29 = arith.constant 29 : index
    %208 = vector.load %arg2[%c0_83, %c29] : memref<8x39xf32, #tpu.memory_space<vmem>>, vector<8x1xf32>
    %209 = vector.broadcast %208 : vector<8x1xf32> to vector<8x256xf32>
    %210 = arith.mulf %207, %209 : vector<8x256xf32>
    %211 = arith.addf %204, %210 : vector<8x256xf32>
    %c0_84 = arith.constant 0 : index
    %c9 = arith.constant 9 : index
    %212 = vector.load %arg2[%c0_84, %c9] : memref<8x39xf32, #tpu.memory_space<vmem>>, vector<8x1xf32>
    %213 = vector.broadcast %212 : vector<8x1xf32> to vector<8x256xf32>
    %214 = arith.addf %211, %213 : vector<8x256xf32>
    %215 = arith.addf %148, %214 : vector<8x256xf32>
    %216 = arith.addf %215, %49 : vector<8x256xf32>
    %217 = vector.shape_cast %216 : vector<8x256xf32> to vector<1x8x256xf32>
    %cst_85 = arith.constant dense<0.000000e+00> : vector<1xf32>
    %218 = vector.multi_reduction <add>, %217, %cst_85 [1, 2] : vector<1x8x256xf32> to vector<1xf32>
    %219 = vector.shape_cast %218 : vector<1xf32> to vector<1x1x1xf32>
    %220 = vector.extract %219[0, 0, 0] : f32 from vector<1x1x1xf32>
    %cst_86 = arith.constant 4.8828125E-4 : f32
    %221 = arith.mulf %220, %cst_86 : f32
    %222 = vector.broadcast %221 : f32 to vector<8x256xf32>
    %223 = arith.subf %216, %222 : vector<8x256xf32>
    %224 = arith.mulf %223, %223 : vector<8x256xf32>
    %225 = vector.shape_cast %224 : vector<8x256xf32> to vector<1x8x256xf32>
    %cst_87 = arith.constant dense<0.000000e+00> : vector<1xf32>
    %226 = vector.multi_reduction <add>, %225, %cst_87 [1, 2] : vector<1x8x256xf32> to vector<1xf32>
    %227 = vector.shape_cast %226 : vector<1xf32> to vector<1x1x1xf32>
    %228 = vector.extract %227[0, 0, 0] : f32 from vector<1x1x1xf32>
    %cst_88 = arith.constant 4.8828125E-4 : f32
    %229 = arith.mulf %228, %cst_88 : f32
    %cst_89 = arith.constant 9.99999974E-6 : f32
    %230 = arith.addf %229, %cst_89 : f32
    %231 = math.rsqrt %230 : f32
    %232 = vector.broadcast %231 : f32 to vector<8x256xf32>
    %233 = arith.mulf %223, %232 : vector<8x256xf32>
    %c0_90 = arith.constant 0 : index
    %c2_91 = arith.constant 2 : index
    %234 = vector.load %arg2[%c0_90, %c2_91] : memref<8x39xf32, #tpu.memory_space<vmem>>, vector<8x1xf32>
    %235 = vector.broadcast %234 : vector<8x1xf32> to vector<8x256xf32>
    %236 = arith.mulf %233, %235 : vector<8x256xf32>
    %c0_92 = arith.constant 0 : index
    %c3_93 = arith.constant 3 : index
    %237 = vector.load %arg2[%c0_92, %c3_93] : memref<8x39xf32, #tpu.memory_space<vmem>>, vector<8x1xf32>
    %238 = vector.broadcast %237 : vector<8x1xf32> to vector<8x256xf32>
    %239 = arith.addf %236, %238 : vector<8x256xf32>
    %c1_i32_94 = arith.constant 1 : i32
    %240 = tpu.dynamic_rotate %239 by %c1_i32_94 dim 1 : vector<8x256xf32>, i32 -> vector<8x256xf32>
    %241 = vector.broadcast %3 : vector<1x256xf32> to vector<8x256xf32>
    %242 = arith.mulf %240, %241 : vector<8x256xf32>
    %c255_i32_95 = arith.constant 255 : i32
    %243 = tpu.dynamic_rotate %239 by %c255_i32_95 dim 1 : vector<8x256xf32>, i32 -> vector<8x256xf32>
    %244 = vector.broadcast %4 : vector<1x256xf32> to vector<8x256xf32>
    %245 = arith.mulf %243, %244 : vector<8x256xf32>
    %c16_i32_96 = arith.constant 16 : i32
    %246 = tpu.dynamic_rotate %242 by %c16_i32_96 dim 1 : vector<8x256xf32>, i32 -> vector<8x256xf32>
    %247 = vector.broadcast %5 : vector<1x256xf32> to vector<8x256xf32>
    %248 = arith.mulf %246, %247 : vector<8x256xf32>
    %c0_97 = arith.constant 0 : index
    %c30 = arith.constant 30 : index
    %249 = vector.load %arg2[%c0_97, %c30] : memref<8x39xf32, #tpu.memory_space<vmem>>, vector<8x1xf32>
    %250 = vector.broadcast %249 : vector<8x1xf32> to vector<8x256xf32>
    %251 = arith.mulf %248, %250 : vector<8x256xf32>
    %c16_i32_98 = arith.constant 16 : i32
    %252 = tpu.dynamic_rotate %239 by %c16_i32_98 dim 1 : vector<8x256xf32>, i32 -> vector<8x256xf32>
    %253 = vector.broadcast %5 : vector<1x256xf32> to vector<8x256xf32>
    %254 = arith.mulf %252, %253 : vector<8x256xf32>
    %c0_99 = arith.constant 0 : index
    %c31 = arith.constant 31 : index
    %255 = vector.load %arg2[%c0_99, %c31] : memref<8x39xf32, #tpu.memory_space<vmem>>, vector<8x1xf32>
    %256 = vector.broadcast %255 : vector<8x1xf32> to vector<8x256xf32>
    %257 = arith.mulf %254, %256 : vector<8x256xf32>
    %258 = arith.addf %251, %257 : vector<8x256xf32>
    %c16_i32_100 = arith.constant 16 : i32
    %259 = tpu.dynamic_rotate %245 by %c16_i32_100 dim 1 : vector<8x256xf32>, i32 -> vector<8x256xf32>
    %260 = vector.broadcast %5 : vector<1x256xf32> to vector<8x256xf32>
    %261 = arith.mulf %259, %260 : vector<8x256xf32>
    %c0_101 = arith.constant 0 : index
    %c32 = arith.constant 32 : index
    %262 = vector.load %arg2[%c0_101, %c32] : memref<8x39xf32, #tpu.memory_space<vmem>>, vector<8x1xf32>
    %263 = vector.broadcast %262 : vector<8x1xf32> to vector<8x256xf32>
    %264 = arith.mulf %261, %263 : vector<8x256xf32>
    %265 = arith.addf %258, %264 : vector<8x256xf32>
    %c0_102 = arith.constant 0 : index
    %c33 = arith.constant 33 : index
    %266 = vector.load %arg2[%c0_102, %c33] : memref<8x39xf32, #tpu.memory_space<vmem>>, vector<8x1xf32>
    %267 = vector.broadcast %266 : vector<8x1xf32> to vector<8x256xf32>
    %268 = arith.mulf %242, %267 : vector<8x256xf32>
    %269 = arith.addf %265, %268 : vector<8x256xf32>
    %c0_103 = arith.constant 0 : index
    %c34 = arith.constant 34 : index
    %270 = vector.load %arg2[%c0_103, %c34] : memref<8x39xf32, #tpu.memory_space<vmem>>, vector<8x1xf32>
    %271 = vector.broadcast %270 : vector<8x1xf32> to vector<8x256xf32>
    %272 = arith.mulf %239, %271 : vector<8x256xf32>
    %273 = arith.addf %269, %272 : vector<8x256xf32>
    %c0_104 = arith.constant 0 : index
    %c35 = arith.constant 35 : index
    %274 = vector.load %arg2[%c0_104, %c35] : memref<8x39xf32, #tpu.memory_space<vmem>>, vector<8x1xf32>
    %275 = vector.broadcast %274 : vector<8x1xf32> to vector<8x256xf32>
    %276 = arith.mulf %245, %275 : vector<8x256xf32>
    %277 = arith.addf %273, %276 : vector<8x256xf32>
    %c240_i32_105 = arith.constant 240 : i32
    %278 = tpu.dynamic_rotate %242 by %c240_i32_105 dim 1 : vector<8x256xf32>, i32 -> vector<8x256xf32>
    %279 = vector.broadcast %6 : vector<1x256xf32> to vector<8x256xf32>
    %280 = arith.mulf %278, %279 : vector<8x256xf32>
    %c0_106 = arith.constant 0 : index
    %c36 = arith.constant 36 : index
    %281 = vector.load %arg2[%c0_106, %c36] : memref<8x39xf32, #tpu.memory_space<vmem>>, vector<8x1xf32>
    %282 = vector.broadcast %281 : vector<8x1xf32> to vector<8x256xf32>
    %283 = arith.mulf %280, %282 : vector<8x256xf32>
    %284 = arith.addf %277, %283 : vector<8x256xf32>
    %c240_i32_107 = arith.constant 240 : i32
    %285 = tpu.dynamic_rotate %239 by %c240_i32_107 dim 1 : vector<8x256xf32>, i32 -> vector<8x256xf32>
    %286 = vector.broadcast %6 : vector<1x256xf32> to vector<8x256xf32>
    %287 = arith.mulf %285, %286 : vector<8x256xf32>
    %c0_108 = arith.constant 0 : index
    %c37 = arith.constant 37 : index
    %288 = vector.load %arg2[%c0_108, %c37] : memref<8x39xf32, #tpu.memory_space<vmem>>, vector<8x1xf32>
    %289 = vector.broadcast %288 : vector<8x1xf32> to vector<8x256xf32>
    %290 = arith.mulf %287, %289 : vector<8x256xf32>
    %291 = arith.addf %284, %290 : vector<8x256xf32>
    %c240_i32_109 = arith.constant 240 : i32
    %292 = tpu.dynamic_rotate %245 by %c240_i32_109 dim 1 : vector<8x256xf32>, i32 -> vector<8x256xf32>
    %293 = vector.broadcast %6 : vector<1x256xf32> to vector<8x256xf32>
    %294 = arith.mulf %292, %293 : vector<8x256xf32>
    %c0_110 = arith.constant 0 : index
    %c38 = arith.constant 38 : index
    %295 = vector.load %arg2[%c0_110, %c38] : memref<8x39xf32, #tpu.memory_space<vmem>>, vector<8x1xf32>
    %296 = vector.broadcast %295 : vector<8x1xf32> to vector<8x256xf32>
    %297 = arith.mulf %294, %296 : vector<8x256xf32>
    %298 = arith.addf %291, %297 : vector<8x256xf32>
    %c0_111 = arith.constant 0 : index
    %c10 = arith.constant 10 : index
    %299 = vector.load %arg2[%c0_111, %c10] : memref<8x39xf32, #tpu.memory_space<vmem>>, vector<8x1xf32>
    %300 = vector.broadcast %299 : vector<8x1xf32> to vector<8x256xf32>
    %301 = arith.addf %298, %300 : vector<8x256xf32>
    %c0_112 = arith.constant 0 : index
    %c6 = arith.constant 6 : index
    %302 = vector.load %arg2[%c0_112, %c6] : memref<8x39xf32, #tpu.memory_space<vmem>>, vector<8x1xf32>
    %303 = vector.broadcast %302 : vector<8x1xf32> to vector<8x256xf32>
    %304 = arith.mulf %303, %301 : vector<8x256xf32>
    %305 = arith.addf %1, %304 : vector<8x256xf32>
    %306 = vector.shape_cast %305 : vector<8x256xf32> to vector<1x8x256xf32>
    %cst_113 = arith.constant dense<0.000000e+00> : vector<1xf32>
    %307 = vector.multi_reduction <add>, %306, %cst_113 [1, 2] : vector<1x8x256xf32> to vector<1xf32>
    %308 = vector.shape_cast %307 : vector<1xf32> to vector<1x1x1xf32>
    %309 = vector.extract %308[0, 0, 0] : f32 from vector<1x1x1xf32>
    %cst_114 = arith.constant 4.8828125E-4 : f32
    %310 = arith.mulf %309, %cst_114 : f32
    %311 = vector.broadcast %310 : f32 to vector<8x256xf32>
    %312 = arith.subf %305, %311 : vector<8x256xf32>
    %313 = arith.mulf %312, %312 : vector<8x256xf32>
    %314 = vector.shape_cast %313 : vector<8x256xf32> to vector<1x8x256xf32>
    %cst_115 = arith.constant dense<0.000000e+00> : vector<1xf32>
    %315 = vector.multi_reduction <add>, %314, %cst_115 [1, 2] : vector<1x8x256xf32> to vector<1xf32>
    %316 = vector.shape_cast %315 : vector<1xf32> to vector<1x1x1xf32>
    %317 = vector.extract %316[0, 0, 0] : f32 from vector<1x1x1xf32>
    %cst_116 = arith.constant 4.8828125E-4 : f32
    %318 = arith.mulf %317, %cst_116 : f32
    %cst_117 = arith.constant 9.99999974E-6 : f32
    %319 = arith.addf %318, %cst_117 : f32
    %320 = math.rsqrt %319 : f32
    %321 = vector.broadcast %320 : f32 to vector<8x256xf32>
    %322 = arith.mulf %312, %321 : vector<8x256xf32>
    %c0_118 = arith.constant 0 : index
    %c4_119 = arith.constant 4 : index
    %323 = vector.load %arg2[%c0_118, %c4_119] : memref<8x39xf32, #tpu.memory_space<vmem>>, vector<8x1xf32>
    %324 = vector.broadcast %323 : vector<8x1xf32> to vector<8x256xf32>
    %325 = arith.mulf %322, %324 : vector<8x256xf32>
    %c0_120 = arith.constant 0 : index
    %c5 = arith.constant 5 : index
    %326 = vector.load %arg2[%c0_120, %c5] : memref<8x39xf32, #tpu.memory_space<vmem>>, vector<8x1xf32>
    %327 = vector.broadcast %326 : vector<8x1xf32> to vector<8x256xf32>
    %328 = arith.addf %325, %327 : vector<8x256xf32>
    %329 = arith.truncf %328 : vector<8x256xf32> to vector<8x256xbf16>
    %cst_121 = arith.constant 0.000000e+00 : f32
    %330 = vector.broadcast %cst_121 : f32 to vector<8x256xf32>
    %c0_i32 = arith.constant 0 : i32
    %c16_i32_122 = arith.constant 16 : i32
    %331 = arith.muli %c0_i32, %c16_i32_122 : i32
    %332 = tpu.assume_multiple %331, 16 : i32
    %333 = arith.index_cast %332 : i32 to index
    %c0_123 = arith.constant 0 : index
    %334 = vector.load %arg9[%333, %c0_123] : memref<32x8xbf16, #tpu.memory_space<vmem>>, vector<16x8xbf16>
    %335 = arith.index_cast %332 : i32 to index
    %c0_124 = arith.constant 0 : index
    %336 = vector.load %arg10[%335, %c0_124] : memref<32x1xf32, #tpu.memory_space<vmem>>, vector<16x1xf32>
    %cst_125 = arith.constant dense<0.000000e+00> : vector<16x256xf32>
    %337 = tpu.matmul %334, %329, %cst_125 {dimension_numbers = #tpu.dot_dimension_numbers<[1], [0], [0], [1], [0, 0, 1, 1], [], []>} : vector<16x8xbf16>, vector<8x256xbf16>, vector<16x256xf32> -> vector<16x256xf32>
    %338 = vector.broadcast %336 : vector<16x1xf32> to vector<16x256xf32>
    %339 = arith.addf %337, %338 : vector<16x256xf32>
    %cst_126 = arith.constant 5.000000e-01 : f32
    %340 = vector.broadcast %cst_126 : f32 to vector<16x256xf32>
    %341 = arith.mulf %340, %339 : vector<16x256xf32>
    %cst_127 = arith.constant 4.471500e-02 : f32
    %342 = vector.broadcast %cst_127 : f32 to vector<16x256xf32>
    %343 = arith.mulf %342, %339 : vector<16x256xf32>
    %344 = arith.mulf %343, %339 : vector<16x256xf32>
    %345 = arith.mulf %344, %339 : vector<16x256xf32>
    %346 = arith.addf %339, %345 : vector<16x256xf32>
    %cst_128 = arith.constant 0.797884583 : f32
    %347 = vector.broadcast %cst_128 : f32 to vector<16x256xf32>
    %348 = arith.mulf %347, %346 : vector<16x256xf32>
    %349 = math.tanh %348 : vector<16x256xf32>
    %cst_129 = arith.constant 1.000000e+00 : f32
    %350 = vector.broadcast %cst_129 : f32 to vector<16x256xf32>
    %351 = arith.addf %350, %349 : vector<16x256xf32>
    %352 = arith.mulf %341, %351 : vector<16x256xf32>
    %353 = arith.truncf %352 : vector<16x256xf32> to vector<16x256xbf16>
    %354 = arith.index_cast %332 : i32 to index
    %c0_130 = arith.constant 0 : index
    %355 = vector.load %arg11[%354, %c0_130] : memref<32x8xbf16, #tpu.memory_space<vmem>>, vector<16x8xbf16>
    %cst_131 = arith.constant dense<0.000000e+00> : vector<8x256xf32>
    %356 = tpu.matmul %355, %353, %cst_131 {dimension_numbers = #tpu.dot_dimension_numbers<[0], [0], [1], [1], [0, 1, 1, 1], [], []>} : vector<16x8xbf16>, vector<16x256xbf16>, vector<8x256xf32> -> vector<8x256xf32>
    %357 = arith.addf %330, %356 : vector<8x256xf32>
    %c1_i32_132 = arith.constant 1 : i32
    %c16_i32_133 = arith.constant 16 : i32
    %358 = arith.muli %c1_i32_132, %c16_i32_133 : i32
    %359 = tpu.assume_multiple %358, 16 : i32
    %360 = arith.index_cast %359 : i32 to index
    %c0_134 = arith.constant 0 : index
    %361 = vector.load %arg9[%360, %c0_134] : memref<32x8xbf16, #tpu.memory_space<vmem>>, vector<16x8xbf16>
    %362 = arith.index_cast %359 : i32 to index
    %c0_135 = arith.constant 0 : index
    %363 = vector.load %arg10[%362, %c0_135] : memref<32x1xf32, #tpu.memory_space<vmem>>, vector<16x1xf32>
    %cst_136 = arith.constant dense<0.000000e+00> : vector<16x256xf32>
    %364 = tpu.matmul %361, %329, %cst_136 {dimension_numbers = #tpu.dot_dimension_numbers<[1], [0], [0], [1], [0, 0, 1, 1], [], []>} : vector<16x8xbf16>, vector<8x256xbf16>, vector<16x256xf32> -> vector<16x256xf32>
    %365 = vector.broadcast %363 : vector<16x1xf32> to vector<16x256xf32>
    %366 = arith.addf %364, %365 : vector<16x256xf32>
    %cst_137 = arith.constant 5.000000e-01 : f32
    %367 = vector.broadcast %cst_137 : f32 to vector<16x256xf32>
    %368 = arith.mulf %367, %366 : vector<16x256xf32>
    %cst_138 = arith.constant 4.471500e-02 : f32
    %369 = vector.broadcast %cst_138 : f32 to vector<16x256xf32>
    %370 = arith.mulf %369, %366 : vector<16x256xf32>
    %371 = arith.mulf %370, %366 : vector<16x256xf32>
    %372 = arith.mulf %371, %366 : vector<16x256xf32>
    %373 = arith.addf %366, %372 : vector<16x256xf32>
    %cst_139 = arith.constant 0.797884583 : f32
    %374 = vector.broadcast %cst_139 : f32 to vector<16x256xf32>
    %375 = arith.mulf %374, %373 : vector<16x256xf32>
    %376 = math.tanh %375 : vector<16x256xf32>
    %cst_140 = arith.constant 1.000000e+00 : f32
    %377 = vector.broadcast %cst_140 : f32 to vector<16x256xf32>
    %378 = arith.addf %377, %376 : vector<16x256xf32>
    %379 = arith.mulf %368, %378 : vector<16x256xf32>
    %380 = arith.truncf %379 : vector<16x256xf32> to vector<16x256xbf16>
    %381 = arith.index_cast %359 : i32 to index
    %c0_141 = arith.constant 0 : index
    %382 = vector.load %arg11[%381, %c0_141] : memref<32x8xbf16, #tpu.memory_space<vmem>>, vector<16x8xbf16>
    %cst_142 = arith.constant dense<0.000000e+00> : vector<8x256xf32>
    %383 = tpu.matmul %382, %380, %cst_142 {dimension_numbers = #tpu.dot_dimension_numbers<[0], [0], [1], [1], [0, 1, 1, 1], [], []>} : vector<16x8xbf16>, vector<16x256xbf16>, vector<8x256xf32> -> vector<8x256xf32>
    %384 = arith.addf %357, %383 : vector<8x256xf32>
    %c2_i32 = arith.constant 2 : i32
    %c0_143 = arith.constant 0 : index
    %c7 = arith.constant 7 : index
    %385 = vector.load %arg2[%c0_143, %c7] : memref<8x39xf32, #tpu.memory_space<vmem>>, vector<8x1xf32>
    %c0_144 = arith.constant 0 : index
    %c11 = arith.constant 11 : index
    %386 = vector.load %arg2[%c0_144, %c11] : memref<8x39xf32, #tpu.memory_space<vmem>>, vector<8x1xf32>
    %387 = vector.broadcast %386 : vector<8x1xf32> to vector<8x256xf32>
    %388 = arith.addf %384, %387 : vector<8x256xf32>
    %389 = vector.broadcast %385 : vector<8x1xf32> to vector<8x256xf32>
    %390 = arith.mulf %389, %388 : vector<8x256xf32>
    %391 = arith.addf %305, %390 : vector<8x256xf32>
    %c0_145 = arith.constant 0 : index
    %c0_146 = arith.constant 0 : index
    %c0_147 = arith.constant 0 : index
    %392 = vector.load %arg12[%c0_145, %c0_146, %c0_147] : memref<1x8x256xf32, #tpu.memory_space<vmem>>, vector<1x8x256xf32>
    %393 = vector.shape_cast %392 : vector<1x8x256xf32> to vector<8x256xf32>
    %394 = vector.shape_cast %391 : vector<8x256xf32> to vector<1x8x256xf32>
    tpu.vector_store %arg12[%c0_145, %c0_146, %c0_147], %394 {strides = array<i32>} : memref<1x8x256xf32, #tpu.memory_space<vmem>>, vector<1x8x256xf32>,
    return
  }
  func.func @transform_0(%arg0: i32) -> (i32, i32, i32) {
    %c0_i32 = arith.constant 0 : i32
    %c0_i32_0 = arith.constant 0 : i32
    %c0_i32_1 = arith.constant 0 : i32
    return %arg0, %c0_i32, %c0_i32_0 : i32, i32, i32
  }
  func.func @transform_1(%arg0: i32) -> (i32, i32) {
    %c0_i32 = arith.constant 0 : i32
    %c0_i32_0 = arith.constant 0 : i32
    %c0_i32_1 = arith.constant 0 : i32
    return %c0_i32, %c0_i32_0 : i32, i32
  }
  func.func @transform_2(%arg0: i32) -> (i32, i32) {
    %c0_i32 = arith.constant 0 : i32
    %c0_i32_0 = arith.constant 0 : i32
    %c0_i32_1 = arith.constant 0 : i32
    return %c0_i32, %c0_i32_0 : i32, i32
  }
  func.func @transform_3(%arg0: i32) -> (i32, i32) {
    %c0_i32 = arith.constant 0 : i32
    %c0_i32_0 = arith.constant 0 : i32
    %c0_i32_1 = arith.constant 0 : i32
    return %c0_i32, %c0_i32_0 : i32, i32
  }
  func.func @transform_4(%arg0: i32) -> (i32, i32) {
    %c0_i32 = arith.constant 0 : i32
    %c0_i32_0 = arith.constant 0 : i32
    %c0_i32_1 = arith.constant 0 : i32
    return %c0_i32, %c0_i32_0 : i32, i32
  }
  func.func @transform_5(%arg0: i32) -> (i32, i32) {
    %c0_i32 = arith.constant 0 : i32
    %c0_i32_0 = arith.constant 0 : i32
    %c0_i32_1 = arith.constant 0 : i32
    return %c0_i32, %c0_i32_0 : i32, i32
  }
  func.func @transform_6(%arg0: i32) -> (i32, i32) {
    %c0_i32 = arith.constant 0 : i32
    %c0_i32_0 = arith.constant 0 : i32
    %c0_i32_1 = arith.constant 0 : i32
    return %c0_i32, %c0_i32_0 : i32, i32
  }
  func.func @transform_7(%arg0: i32) -> (i32, i32) {
    %c0_i32 = arith.constant 0 : i32
    %c0_i32_0 = arith.constant 0 : i32
    %c0_i32_1 = arith.constant 0 : i32
    return %c0_i32, %c0_i32_0 : i32, i32
  }
  func.func @transform_8(%arg0: i32) -> (i32, i32) {
    %c0_i32 = arith.constant 0 : i32
    %c0_i32_0 = arith.constant 0 : i32
    %c0_i32_1 = arith.constant 0 : i32
    return %c0_i32, %c0_i32_0 : i32, i32
  }
  func.func @transform_9(%arg0: i32) -> (i32, i32) {
    %c0_i32 = arith.constant 0 : i32
    %c0_i32_0 = arith.constant 0 : i32
    %c0_i32_1 = arith.constant 0 : i32
    return %c0_i32, %c0_i32_0 : i32, i32
  }
  func.func @transform_10(%arg0: i32) -> (i32, i32) {
    %c0_i32 = arith.constant 0 : i32
    %c0_i32_0 = arith.constant 0 : i32
    %c0_i32_1 = arith.constant 0 : i32
    return %c0_i32, %c0_i32_0 : i32, i32
  }
  func.func @transform_11(%arg0: i32) -> (i32, i32, i32) {
    %c0_i32 = arith.constant 0 : i32
    %c0_i32_0 = arith.constant 0 : i32
    %c0_i32_1 = arith.constant 0 : i32
    return %arg0, %c0_i32, %c0_i32_0 : i32, i32, i32
  }
}

</mosaic_0001>

<bundles_post_ra>
// kernel: tpu_custom_call.1
= control target key start
LH: loop header
LB: loop body
LE: loop exit
PB: predicated region body
PF: predicated region fallthrough
CT: control target
= control target key end

     0   :  { %s3716_s0 = inlined_call_operand.vmem [shape: f32[2,8,256], index: 0, kind: input, shape index: {}]   ;;  %s3717_s1 = inlined_call_operand.vmem [shape: f32[8,39], index: 1, kind: input, shape index: {}]   ;;  %s3718_s2 = inlined_call_operand.vmem [shape: f32[8,256], index: 2, kind: input, shape index: {}]   ;;  %s3719_s3 = inlined_call_operand.vmem [shape: bf16[1,8], index: 3, kind: input, shape index: {}]   ;;  %s3720_s4 = inlined_call_operand.vmem [shape: bf16[256,64], index: 4, kind: input, shape index: {}]   ;;  %s3721_s5 = inlined_call_operand.vmem [shape: bf16[256,64], index: 5, kind: input, shape index: {}]   ;;  %s3722_s6 = inlined_call_operand.vmem [shape: bf16[16,256], index: 6, kind: input, shape index: {}]   ;;  %s3723_s7 = inlined_call_operand.vmem [shape: bf16[16,256], index: 7, kind: input, shape index: {}]   ;;  %s3724_s8 = inlined_call_operand.vmem [shape: bf16[32,8], index: 8, kind: input, shape index: {}]   ;;  %s3725_s9 = inlined_call_operand.vmem [shape: f32[32,1], index: 9, kind: input, shape index: {}]   ;;  %s3726_s10 = inlined_call_operand.vmem [shape: bf16[32,8], index: 10, kind: input, shape index: {}]   ;;  %s3727_s11 = inlined_call_operand.hbm [shape: f32[2,8,256], index: 11, kind: output, shape index: {}]  }
   0x1   :  { %3736 = sst [smem:[#allocation12_spill]] %s3716_s0 }
   0x2   :  { %16 = vsyncpa [#allocation3], 0 }
   0x3   :  { %18 = vsyncpa [#allocation3 + $0x1], 0  ;;  %s2827_s17 = smov 0   ;;  %s2829_s18 = smov 0  }
   0x4   :  { %s2831_s19 = smov 0   ;;  %s2833_s20 = smov 0  }
   0x5 LB: > { %3737 = sst [smem:[#allocation5_spill]] %s2715_s19  ;;  %s2848_s21 = sadd.s32 4294967295, %s2719_s20   ;;  %s2719_s20 = sphi %s2833_s20, %s3757_s20   ;;  %s2715_s19 = sphi %s2831_s19, %s3754_s19   ;;  %s2711_s18 = sphi %s2829_s18, %s3756_s18   ;;  %s2707_s17 = sphi %s2827_s17, %s3755_s17  }
   0x6   : > { %s2325_s22 = sadd.s32 4294967294, %s2719_s20   ;;  %s2852_s23 = sadd.s32 1, %s2719_s20  }
   0x7   : > { %s267_s24 = sadd.s32 1, %s2715_s19  ;;  %s264_s25 = ssub.s32 %s2719_s20, %s2852_s23 }
   0x8   : > { %p277_p0 = scmp.ne.s32.totalorder %s2715_s19, %s2711_s18  ;;  %p265_p1 = scmp.eq.s32.totalorder %s264_s25, 0 }
   0x9   : > { %p278_p2 = scmp.eq.s32.totalorder %s2848_s21, 1  ;;  %p283_p3 = scmp.ne.s32.totalorder %s2711_s18, %s2707_s17 }
   0xa   : > { %p284_p4 = scmp.eq.s32.totalorder %s2325_s22, 1  ;;  %p2328_p7 = scmp.ge.s32.totalorder %s2719_s20, 1 }
   0xb   : > { %s2863_s26 = scalar_select %p265_p1, %s2715_s19, %s267_s24  }
   0xc   : > { %p2865_p5 = por %p278_p2, %p277_p0  ;;  %p2869_p6 = por %p284_p4, %p283_p3 }
   0xd   : > { %3738 = sst [smem:[#allocation6_spill]] %s2863_s26  ;;  %p340_p8 = scmp.lt.s32.totalorder %s2719_s20, 3 }
   0xf   : > { %p341_p9 = pnand %p2328_p7, %p340_p8 }
  0x11   : > { %344 = sbr.rel (%p341_p9) target bundleno = 3067 (0xbfb), region = 64 }
  0x16   : > { %p380_p10 = scmp.lt.s32.totalorder %s2848_s21, 1  ;;  %s3741_s0 = sld [smem:[#allocation12_spill]]  ;;  %v2895_v16 = vld [vmem:[%s3717_s1] sm:$0xff]  ;;  %v3729_v17 = vmov 0   ;;  %v2722_v18 = vmov 1   ;;  %v2592_v19 = vld [vmem:[%s3720_s4 + $0x78] sm:$0xff]  }
  0x17   : > { %2551 = vset.pattern.permute.xlu1 %v3729_v17  ;;  %v2593_v20 = vld [vmem:[%s3721_s5 + $0x78] sm:$0xff]   ;;  %v2596_v23 = vld [vmem:[%s3720_s4 + $0x70] sm:$0xff]   ;;  %2405 = vmatprep.subr.bf16.mxu0 %v2592_v19  ;;  %v2600_v27 = vld [vmem:[%s3720_s4 + $0x68] sm:$0xff]   ;;  %vm902_vm0 = vcmask 130048   ;;  %vm1440_vm1 = vcmask 1043456   ;;  %vm1436_vm2 = vcmask 64512  }
  0x18   : > { %s381_s29 = scalar_select %p380_p10, %s2848_s21, 1  ;;  %434 = vperm.xlu1 %2551, %v2895_v16   ;;  %v2594_v21 = vld [vmem:[%s3720_s4 + $0x38] sm:$0xff]   ;;  %v2597_v24 = vld [vmem:[%s3721_s5 + $0x70] sm:$0xff]   ;;  %2427 = vmatprep.subr.bf16.mxu1 %v2593_v20  ;;  %v2601_v28 = vld [vmem:[%s3721_s5 + $0x68] sm:$0xff]  }
  0x19   : > { %v2595_v22 = vld [vmem:[%s3721_s5 + $0x38] sm:$0xff]   ;;  %2406 = vmatpush3.bf16.msra.mxu0 %v2594_v21  ;;  %v2598_v25 = vld [vmem:[%s3720_s4 + $0x30] sm:$0xff]   ;;  %v2602_v29 = vld [vmem:[%s3720_s4 + $0x28] sm:$0xff]   ;;  %s2737_s24 = smov 16  }
  0x1a   : > { %s2403_s30 = sshll.u32 %s381_s29, 4  ;;  %2428 = vmatpush3.bf16.msra.mxu1 %v2595_v22  ;;  %v2599_v26 = vld [vmem:[%s3721_s5 + $0x30] sm:$0xff]   ;;  %2407 = vmatprep.subr.bf16.mxu0 %v2596_v23  ;;  %v2603_v30 = vld [vmem:[%s3721_s5 + $0x28] sm:$0xff]   ;;  %v2604_v31 = vld [vmem:[%s3720_s4 + $0x60] sm:$0xff]  }
  0x1b   : > { %2429 = vmatprep.subr.bf16.mxu1 %v2597_v24  ;;  %v2605_v32 = vld [vmem:[%s3721_s5 + $0x60] sm:$0xff]   ;;  %v2608_v35 = vld [vmem:[%s3720_s4 + $0x58] sm:$0xff]   ;;  %v2612_v39 = vld [vmem:[%s3720_s4 + $0x50] sm:$0xff]  }
  0x1c   : > { %s2880_s14 = scalar_lea.vmem %s3741_s0, %s2403_s30  ;;  %2552 = vset.pattern.permute.xlu1 %v2722_v18  ;;  %v2606_v33 = vld [vmem:[%s3720_s4 + $0x20] sm:$0xff]   ;;  %v2609_v36 = vld [vmem:[%s3721_s5 + $0x58] sm:$0xff]   ;;  %v2613_v40 = vld [vmem:[%s3721_s5 + $0x50] sm:$0xff]  }
  0x1d   : > { %v386_v0 = vld [vmem:[%s2880_s14] sm:$0xff]  ;;  %v387_v1 = vld [vmem:[%s2880_s14 + $0x8] sm:$0xff]  ;;  %440 = vperm.xlu1 %2552, %v2895_v16   ;;  %2408 = vmatpush3.bf16.msra.mxu0 %v2598_v25  ;;  %v2610_v37 = vld [vmem:[%s3720_s4 + $0x18] sm:$0xff]   ;;  %v2728_v25 = vmov 13  }
  0x1e   : > { %v397_v2 = vadd.f32 %v387_v1, %v386_v0  ;;  %2430 = vmatpush3.bf16.msra.mxu1 %v2599_v26  ;;  %2409 = vmatprep.subr.bf16.mxu0 %v2600_v27  ;;  %v2607_v34 = vld [vmem:[%s3721_s5 + $0x20] sm:$0xff]   ;;  %v2611_v38 = vld [vmem:[%s3721_s5 + $0x18] sm:$0xff]   ;;  %v2614_v41 = vld [vmem:[%s3720_s4 + $0x10] sm:$0xff]   ;;  %v2729_v26 = vmov 12   ;;  %v2730_v27 = vmov 14  }
  0x1f   : > { %2431 = vmatprep.subr.bf16.mxu1 %v2601_v28  ;;  %v2615_v42 = vld [vmem:[%s3721_s5 + $0x10] sm:$0xff]   ;;  %v2616_v46 = vld [vmem:[%s3720_s4 + $0x48] sm:$0xff]   ;;  %v2620_v52 = vld [vmem:[%s3720_s4 + $0x40] sm:$0xff]   ;;  %2554 = vset.pattern.permute.xlu0 %v2728_v25 }
  0x20   : > { %398 = vadd.xlane.f32.xlu0 %v397_v2  ;;  %v2617_v47 = vld [vmem:[%s3721_s5 + $0x48] sm:$0xff]   ;;  %v2621_v53 = vld [vmem:[%s3721_s5 + $0x40] sm:$0xff]  }
  0x21   : > { %2410 = vmatpush3.bf16.msra.mxu0 %v2602_v29  ;;  %v2618_v49 = vld [vmem:[%s3720_s4 + $0x8] sm:$0xff]   ;;  %v2622_v55 = vld [vmem:[%s3720_s4] sm:$0xff]   ;;  %2553 = vset.pattern.permute.xlu1 %v2729_v26 }
  0x22   : > { %2432 = vmatpush3.bf16.msra.mxu1 %v2603_v30  ;;  %2411 = vmatprep.subr.bf16.mxu0 %v2604_v31  ;;  %v2619_v50 = vld [vmem:[%s3721_s5 + $0x8] sm:$0xff]   ;;  %v2623_v56 = vld [vmem:[%s3721_s5] sm:$0xff]  }
  0x23   : > { %2433 = vmatprep.subr.bf16.mxu1 %v2605_v32 }
  0x25   : > { %2412 = vmatpush3.bf16.msra.mxu0 %v2606_v33 }
  0x26   : > { %2434 = vmatpush3.bf16.msra.mxu1 %v2607_v34  ;;  %2413 = vmatprep.subr.bf16.mxu0 %v2608_v35  ;;  %v1435_v35 = vld [vmem:[%s3719_s3] sm:$0x1] }
  0x27   : > { %2435 = vmatprep.subr.bf16.mxu1 %v2609_v36  ;;  %v2731_v36 = vmov 21  }
  0x29   : > { %2414 = vmatpush3.bf16.msra.mxu0 %v2610_v37  ;;  %v2732_v37 = vmov 23  }
  0x2a   : > { %2436 = vmatpush3.bf16.msra.mxu1 %v2611_v38  ;;  %2415 = vmatprep.subr.bf16.mxu0 %v2612_v39  ;;  %v2733_v38 = vmov 22   ;;  %v2734_v39 = vmov 15  }
  0x2b   : > { %2437 = vmatprep.subr.bf16.mxu1 %v2613_v40 }
  0x2d   : > { %2416 = vmatpush3.bf16.msra.mxu0 %v2614_v41 }
  0x2e   : > { %2438 = vmatpush3.bf16.msra.mxu1 %v2615_v42  ;;  %2417 = vmatprep.subr.bf16.mxu0 %v2616_v46 }
  0x2f   : > { %2439 = vmatprep.subr.bf16.mxu1 %v2617_v47 }
  0x31   : > { %2418 = vmatpush3.bf16.msra.mxu0 %v2618_v49 }
  0x32   : > { %2440 = vmatpush3.bf16.msra.mxu1 %v2619_v50  ;;  %2419 = vmatprep.subr.bf16.mxu0 %v2620_v52  ;;  %v2735_v50 = vmov 16  }
  0x33   : > { %2441 = vmatprep.subr.bf16.mxu1 %v2621_v53 }
  0x35   : > { %2420 = vmatpush3.bf16.msra.mxu0 %v2622_v55 }
  0x36   : > { %2442 = vmatpush3.bf16.msra.mxu1 %v2623_v56 }
  0x93   : > { %v435_v60 = vpop.permute.xlu1 %434 }
  0xa9   : > { %v399_v3 = vpop.xlane.xlu0 %398 }
  0xaa   : > { %v400_v4 = vrot.slane %v399_v3, 4 }
  0xac   : > { %v401_v5 = vadd.f32 %v400_v4, %v399_v3 }
  0xae   : > { %v402_v6 = vrot.slane %v401_v5, 2 }
  0xb0   : > { %v403_v7 = vadd.f32 %v402_v6, %v401_v5 }
  0xb2   : > { %v404_v8 = vrot.slane %v403_v7, 1 }
  0xb4   : > { %v405_v9 = vadd.f32 %v404_v8, %v403_v7  ;;  %v3019_v7 = vld [vmem:[%s3722_s6 + $0x4] ss:$8 sps:$4 sm:$0xff]  }
  0xb5   : > { %v3024_v8 = vld [vmem:[%s3723_s7 + $0x4] ss:$8 sps:$4 sm:$0xff]   ;;  %920 = vmatprep.subr.bf16.mxu0 %v3019_v7 }
  0xb6   : > { %2449 = vpush %v405_v9  ;;  %v3029_v9 = vld [vmem:[%s3722_s6] ss:$8 sps:$4 sm:$0xff]   ;;  %976 = vmatprep.subr.bf16.mxu1 %v3024_v8 }
  0xe7   : > { %s2450_s15 = spop %2449 }
  0xe8   : > { %s407_s16 = smul.f32 0.00048828125, %s2450_s15  ;;  %s2727_s15 = smov 80  }
  0xea   : > { %v408_v10 = vstv %s407_s16 }
  0xeb   : > { %v2884_v11 = vsub.f32 %v386_v0, %v408_v10  ;;  %v2886_v12 = vsub.f32 %v387_v1, %v408_v10  ;;  %v441_v0 = vpop.permute.xlu1 %440  ;;  %v3034_v10 = vld [vmem:[%s3723_s7] ss:$8 sps:$4 sm:$0xff]  }
  0xed   : > { %v411_v13 = vmul.f32 %v2884_v11, %v2884_v11  ;;  %v412_v14 = vmul.f32 %v2886_v12, %v2886_v12 }
  0xef   : > { %v413_v15 = vadd.f32 %v412_v14, %v411_v13 }
  0xf1   : > { %414 = vadd.xlane.f32.xlu0 %v413_v15 }
 0x17a   : > { %v415_v43 = vpop.xlane.xlu0 %414 }
 0x17b   : > { %v416_v44 = vrot.slane %v415_v43, 4 }
 0x17d   : > { %v417_v45 = vadd.f32 %v416_v44, %v415_v43 }
 0x17f   : > { %v418_v48 = vrot.slane %v417_v45, 2 }
 0x181   : > { %v419_v51 = vadd.f32 %v418_v48, %v417_v45 }
 0x183   : > { %v420_v54 = vrot.slane %v419_v51, 1 }
 0x185   : > { %v421_v57 = vadd.f32 %v420_v54, %v419_v51  ;;  %v2736_v51 = vmov 24  }
 0x187   : > { %2451 = vpush %v421_v57 }
 0x1b8   : > { %s2452_s0 = spop %2451 }
 0x1b9   : > { %s423_s13 = smul.f32 0.00048828125, %s2452_s0  ;;  %s2723_s0 = smov 112  }
 0x1bb   : > { %s424_s19 = sadd.f32 1e-05, %s423_s13  ;;  %s2724_s13 = smov 96  }
 0x1bd   : > { %v425_v58 = vstv %s424_s19  ;;  %s2725_s19 = smov 1  }
 0x1be   : > { %2634 = vrsqrt.f32 %v425_v58 }
 0x1cb   : > { %v2635_v59 = vpop.eup %2634 }
 0x1cc   : > { %2453 = vpush %v2635_v59 }
 0x1fd   : > { %s2454_s26 = spop %2453 }
 0x1fe   : > { %v428_v61 = vstv %s2454_s26  ;;  %s2726_s26 = smov 127  }
 0x1ff   : > { %v429_v62 = vmul.f32 %v428_v61, %v2884_v11  ;;  %v430_v63 = vmul.f32 %v428_v61, %v2886_v12 }
 0x201   : > { %v437_v1 = vmul.f32 %v435_v60, %v429_v62  ;;  %v438_v2 = vmul.f32 %v435_v60, %v430_v63 }
 0x203   : > { %v2998_v3 = vadd.f32 %v441_v0, %v437_v1  ;;  %v3000_v4 = vadd.f32 %v441_v0, %v438_v2 }
 0x205   : > { %3742 = vst [vmem:[#allocation7_spill] sm:$0xff] %v3000_v4  ;;  %v3004_v5 = vpack.c.bf16 %v3000_v4, %v3000_v4  ;;  %v3008_v6 = vpack.c.bf16 %v2998_v3, %v2998_v3 }
 0x207   : > { %712 = vmatprep.mubr.bf16.mxu0 %v3004_v5  ;;  %880 = vmatprep.mubr.bf16.mxu1 %v3004_v5  ;;  %v1442_v34 = vsel %vm1440_vm1, %v3008_v6, 0 }
 0x208   : > { %713 = vmatmul.mubr.bf16.vlgmr.msra.gmra.mxu0 %v3008_v6  ;;  %881 = vmatmul.mubr.bf16.vlgmr.msra.gmra.mxu1 %v3008_v6 }
 0x209   : > { %938 = vmatprep.mubr.bf16.mxu0 %v3729_v17  ;;  %994 = vmatprep.mubr.bf16.mxu1 %v3729_v17 }
 0x20a   : > { %921 = vmatpush1.bf16.msra.mxu0 %v3029_v9  ;;  %977 = vmatpush1.bf16.msra.mxu1 %v3034_v10 }
 0x20b   : > { %1025 = vmatprep.subr.bf16.mxu0 %v3019_v7  ;;  %1072 = vmatprep.subr.bf16.mxu1 %v3024_v8 }
 0x2c8   : > { %v2421_v11 = vpop.f32.mrf.mxu0  ;;  %v2443_v12 = vpop.f32.mrf.mxu1 }
 0x2ca   : > { %v2422_v13 = vpop.f32.mrf.mxu0  ;;  %v2444_v14 = vpop.f32.mrf.mxu1 }
 0x2cb   : > { %v2423_v15 = vadd.f32 %v2422_v13, %v2421_v11  ;;  %v2445_v18 = vadd.f32 %v2444_v14, %v2443_v12  ;;  %v451_v12 = vlaneseq }
 0x2cc   : > { %v2424_v19 = vpop.f32.mrf.mxu0  ;;  %v2446_v20 = vpop.f32.mrf.mxu1 }
 0x2cd   : > { %v888_v21 = vpack.c.bf16 %v2423_v15, %v2423_v15  ;;  %v889_v22 = vpack.c.bf16 %v2445_v18, %v2445_v18  ;;  %v458_v25 = vshrl.u32 %v451_v12, 7 }
 0x2ce   : > { %v2425_v23 = vpop.f32.mrf.mxu0  ;;  %v2447_v24 = vpop.f32.mrf.mxu1 }
 0x2cf   : > { %1053 = vrot.lane.b32.xlu1 %v889_v22, %s2723_s0  ;;  %2373 = vmatmul.mubr.msk.bf16.vlgmr.msra.gmra.mxu1 %vm902_vm0, %v889_v22 }
 0x2d0   : > { %1006 = vrot.lane.b32.xlu0 %v888_v21, %s2723_s0  ;;  %2370 = vmatmul.mubr.msk.bf16.vlgmr.msra.gmra.mxu0 %vm902_vm0, %v888_v21 }
 0x2d1   : > { %1026 = vmatpush1.bf16.msra.mxu0 %v3029_v9  ;;  %1073 = vmatpush1.bf16.msra.mxu1 %v3034_v10 }
 0x2d2   : > { %1090 = vmatprep.mubr.bf16.mxu1 %v3729_v17  ;;  %1043 = vmatprep.mubr.bf16.mxu0 %v3729_v17 }
 0x2d3   : > { %1103 = vrot.lane.b32.xlu1 %v888_v21, %s2724_s13  ;;  %1122 = vmatprep.subr.bf16.mxu0 %v3019_v7 }
 0x2d4   : > { %449 = vrot.lane.b32.xlu0 %v3000_v4, %s2725_s19  ;;  %1168 = vmatprep.subr.bf16.mxu1 %v3024_v8 }
 0x2d7   : > { %1149 = vrot.lane.b32.xlu1 %v889_v22, %s2724_s13 }
 0x2d8   : > { %473 = vrot.lane.b32.xlu0 %v3000_v4, %s2726_s26 }
 0x2db   : > { %1199 = vrot.lane.b32.xlu1 %v888_v21, %s2727_s15 }
 0x2dc   : > { %1334 = vperm.xlu0 %2554, %v2895_v16  }
 0x2df   : > { %1245 = vrot.lane.b32.xlu1 %v889_v22, %s2727_s15 }
 0x2e0   : > { %2557 = vset.pattern.permute.xlu0 %v2730_v27 }
 0x2e1   : > { %1350 = vperm.xlu0 %2557, %v2895_v16  }
 0x2e3   : > { %447 = vrot.lane.b32.xlu1 %v2998_v3, %s2725_s19 }
 0x2e5   : > { %2558 = vset.pattern.permute.xlu0 %v2732_v37 }
 0x2e6   : > { %1553 = vperm.xlu0 %2558, %v2895_v16  }
 0x2e7   : > { %471 = vrot.lane.b32.xlu1 %v2998_v3, %s2726_s26 }
 0x2ea   : > { %2559 = vset.pattern.permute.xlu0 %v2734_v39  ;;  %v2738_v39 = vmov 25  }
 0x2eb   : > { %1320 = vperm.xlu1 %2553, %v2895_v16   ;;  %1358 = vperm.xlu0 %2559, %v2895_v16  }
 0x2ef   : > { %2555 = vset.pattern.permute.xlu1 %v2731_v36  ;;  %2560 = vset.pattern.permute.xlu0 %v2736_v51  ;;  %v3149_v51 = vsub.s32 1, %v458_v25 }
 0x2f0   : > { %1523 = vperm.xlu1 %2555, %v2895_v16  }
 0x2f4   : > { %2556 = vset.pattern.permute.xlu1 %v2733_v38 }
 0x2f5   : > { %1537 = vperm.xlu1 %2556, %v2895_v16  }
 0x2f9   : > { %2561 = vset.pattern.permute.xlu1 %v2735_v50 }
 0x341   : > { %v1054_v28 = vpop.permute.xlu1 %1053 }
 0x342   : > { %v1007_v29 = vpop.permute.xlu0 %1006  ;;  %2375 = vmatmul.mubr.msk.bf16.vlgmr.msra.gmra.mxu1 %vm902_vm0, %v1054_v28 }
 0x343   : > { %2374 = vmatmul.mubr.msk.bf16.vlgmr.msra.gmra.mxu0 %vm902_vm0, %v1007_v29  ;;  %1169 = vmatpush1.bf16.msra.mxu1 %v3034_v10 }
 0x344   : > { %1123 = vmatpush1.bf16.msra.mxu0 %v3029_v9  ;;  %1186 = vmatprep.mubr.bf16.mxu1 %v3729_v17 }
 0x345   : > { %v1104_v30 = vpop.permute.xlu1 %1103  ;;  %1140 = vmatprep.mubr.bf16.mxu0 %v3729_v17  ;;  %1218 = vmatprep.subr.bf16.mxu0 %v3019_v7 }
 0x346   : > { %1264 = vmatprep.subr.bf16.mxu1 %v3024_v8 }
 0x349   : > { %v1150_v31 = vpop.permute.xlu1 %1149 }
 0x34a   : > { %2377 = vmatmul.mubr.msk.bf16.vlgmr.msra.gmra.mxu1 %vm902_vm0, %v1150_v31  ;;  %v3102_v31 = vsub.s32 0, %v458_v25 }
 0x34b   : > { %2376 = vmatmul.mubr.msk.bf16.vlgmr.msra.gmra.mxu0 %vm902_vm0, %v1104_v30  ;;  %1265 = vmatpush1.bf16.msra.mxu1 %v3034_v10 }
 0x34c   : > { %1219 = vmatpush1.bf16.msra.mxu0 %v3029_v9  ;;  %1282 = vmatprep.mubr.bf16.mxu1 %v3729_v17 }
 0x34d   : > { %2380 = vmatprep.subr.msk.bf16.mxu0 %vm1440_vm1, %v3004_v5  ;;  %v1200_v32 = vpop.permute.xlu1 %1199  ;;  %1236 = vmatprep.mubr.bf16.mxu0 %v3729_v17 }
 0x351   : > { %v1246_v33 = vpop.permute.xlu1 %1245 }
 0x352   : > { %2379 = vmatmul.mubr.msk.bf16.vlgmr.msra.gmra.mxu1 %vm902_vm0, %v1246_v33 }
 0x353   : > { %2378 = vmatmul.mubr.msk.bf16.vlgmr.msra.gmra.mxu0 %vm902_vm0, %v1200_v32  ;;  %1944 = vmatprep.mubr.bf16.mxu1 %v3729_v17 }
 0x354   : > { %1462 = vmatpush1.bf16.msra.mxu0 %v1442_v34  ;;  %1479 = vmatprep.mubr.bf16.mxu0 %v3729_v17 }
 0x35b   : > { %2381 = vmatmul.mubr.msk.bf16.vlgmr.msra.gmra.mxu0 %vm1436_vm2, %v1435_v35 }
 0x35c   : > { %2051 = vmatprep.mubr.bf16.mxu0 %v3729_v17 }
 0x38f   : > { %v996_v40 = vpop.f32.mrf.mxu1 }
 0x390   : > { %v940_v41 = vpop.f32.mrf.mxu0 }
 0x391   : > { %v1003_v42 = vmul.f32 %v996_v40, %v940_v41  ;;  %v998_v43 = vpop.f32.mrf.mxu1  ;;  %v2739_v40 = vmov 17   ;;  %v2740_v41 = vmov 26  }
 0x392   : > { %v942_v44 = vpop.f32.mrf.mxu0 }
 0x393   : > { %v1004_v45 = vmul.f32 %v998_v43, %v942_v44  ;;  %v1000_v46 = vpop.f32.mrf.mxu1  ;;  %v448_v43 = vpop.permute.xlu1 %447  ;;  %v2741_v44 = vmov 27  }
 0x394   : > { %v944_v47 = vpop.f32.mrf.mxu0  ;;  %v450_v46 = vpop.permute.xlu0 %449 }
 0x395   : > { %v1001_v48 = vpop.f32.mrf.mxu1  ;;  %v2332_v47 = vld [vmem:[%s3718_s2 + $0x1] ss:$8 sm:$0x3] }
 0x396   : > { %v945_v49 = vpop.f32.mrf.mxu0  ;;  %v2333_v48 = vld [vmem:[%s3718_s2 + $0x2] ss:$8 sm:$0x3]  ;;  %v3147_v50 = vrot.slane %v2332_v47, %v3102_v31 }
 0x397   : > { %v2743_v49 = vmov 19  }
 0x398   : > { %3743 = vst [vmem:[#allocation8_spill] sm:$0xff] %v3147_v50 }
 0x402   : > { %v1092_v52 = vpop.f32.mrf.mxu1 }
 0x403   : > { %v1045_v53 = vpop.f32.mrf.mxu0 }
 0x404   : > { %v1094_v54 = vpop.f32.mrf.mxu1  ;;  %v1099_v0 = vmul.f32 %v1092_v52, %v1045_v53  ;;  %v472_v52 = vpop.permute.xlu1 %471 }
 0x405   : > { %v1047_v55 = vpop.f32.mrf.mxu0 }
 0x406   : > { %v1096_v56 = vpop.f32.mrf.mxu1  ;;  %v1101_v8 = vadd.f32 %v1099_v0, %v1003_v42  ;;  %v1100_v9 = vmul.f32 %v1094_v54, %v1047_v55  ;;  %v3135_v42 = vand.u32 127, %v451_v12  ;;  %v474_v54 = vpop.permute.xlu0 %473  ;;  %v3158_v55 = vrot.slane %v2333_v48, %v3102_v31 }
 0x407   : > { %v1049_v57 = vpop.f32.mrf.mxu0 }
 0x408   : > { %v1097_v58 = vpop.f32.mrf.mxu1  ;;  %v1102_v20 = vadd.f32 %v1100_v9, %v1004_v45  ;;  %v2742_v45 = vmov 18   ;;  %vm453_vm3 = vcmp.lt.s32.totalorder %v3135_v42, 1  ;;  %vm475_vm4 = vcmp.lt.s32.totalorder %v3135_v42, 127  ;;  %3744 = vst [vmem:[#allocation9_spill] sm:$0xff] %v3158_v55 }
 0x409   : > { %v1050_v59 = vpop.f32.mrf.mxu0  ;;  %v455_v53 = vsel %vm453_vm3, %v450_v46, %v448_v43  ;;  %v476_v56 = vsel %vm475_vm4, %v472_v52, %v474_v54  ;;  %v3163_v57 = vrot.slane %v2332_v47, %v3149_v51  ;;  %v477_v0 = vsel %vm475_vm4, %v474_v54, %v472_v52 }
 0x40a   : > { %v1188_v60 = vpop.f32.mrf.mxu1  ;;  %v467_v58 = vmul.f32 %v3147_v50, %v455_v53  ;;  %v2744_v59 = vmov 28   ;;  %v3199_v12 = vpop.permute.xlu0 %1334  ;;  %vm497_vm5 = vcmp.lt.s32.totalorder %v3135_v42, 16  ;;  %vm519_vm6 = vcmp.lt.s32.totalorder %v3135_v42, 112 }
 0x40b   : > { %v1142_v61 = vpop.f32.mrf.mxu0  ;;  %3745 = vst [vmem:[#allocation10_spill] sm:$0xff] %v3163_v57 }
 0x40c   : > { %v1190_v62 = vpop.f32.mrf.mxu1  ;;  %v1195_v5 = vmul.f32 %v1188_v60, %v1142_v61  ;;  %v454_v60 = vsel %vm453_vm3, %v448_v43, %v450_v46  ;;  %v2745_v61 = vmov 9  }
 0x40d   : > { %v1144_v63 = vpop.f32.mrf.mxu0 }
 0x40e   : > { %v1192_v1 = vpop.f32.mrf.mxu1  ;;  %v1197_v13 = vadd.f32 %v1195_v5, %v1101_v8  ;;  %v1196_v14 = vmul.f32 %v1190_v62, %v1144_v63  ;;  %v3172_v62 = vrot.slane %v2333_v48, %v3149_v51  ;;  %v489_v63 = vmul.f32 %v3158_v55, %v476_v56 }
 0x40f   : > { %v1146_v2 = vpop.f32.mrf.mxu0  ;;  %v468_v1 = vmul.f32 %v3163_v57, %v454_v60  ;;  %v2746_v5 = vmov 20  }
 0x410   : > { %v1193_v6 = vpop.f32.mrf.mxu1  ;;  %v1198_v26 = vadd.f32 %v1196_v14, %v1102_v20  ;;  %3746 = vst [vmem:[#allocation11_spill] sm:$0xff] %v3172_v62  ;;  %v469_v2 = vadd.f32 %v467_v58, %v2998_v3  ;;  %v3203_v14 = vpop.permute.xlu1 %1320 }
 0x411   : > { %v1147_v7 = vpop.f32.mrf.mxu0  ;;  %v490_v6 = vmul.f32 %v3172_v62, %v477_v0  ;;  %v470_v8 = vadd.f32 %v468_v1, %v3000_v4 }
 0x412   : > { %v1284_v10 = vpop.f32.mrf.mxu1  ;;  %v3182_v7 = vadd.f32 %v489_v63, %v469_v2 }
 0x413   : > { %v1238_v11 = vpop.f32.mrf.mxu0  ;;  %v3188_v9 = vadd.f32 %v490_v6, %v470_v8 }
 0x414   : > { %v1291_v15 = vmul.f32 %v1284_v10, %v1238_v11  ;;  %v1286_v18 = vpop.f32.mrf.mxu1  ;;  %v2747_v10 = vmov 29   ;;  %v2748_v11 = vmov 8  }
 0x415   : > { %v1240_v19 = vpop.f32.mrf.mxu0 }
 0x416   : > { %v3094_v21 = vadd.f32 %v1291_v15, %v1197_v13  ;;  %v1292_v22 = vmul.f32 %v1286_v18, %v1240_v19  ;;  %v1288_v23 = vpop.f32.mrf.mxu1  ;;  %v3201_v13 = vpop.permute.xlu0 %1350 }
 0x417   : > { %v1242_v24 = vpop.f32.mrf.mxu0  ;;  %v3207_v18 = vpop.permute.xlu1 %1523 }
 0x418   : > { %1325 = vrot.lane.b32.xlu0 %v3094_v21, %s2737_s24  ;;  %1295 = vrot.lane.b32.xlu1 %v3094_v21, %s2725_s19  ;;  %v1289_v27 = vpop.f32.mrf.mxu1  ;;  %v3100_v29 = vadd.f32 %v1292_v22, %v1198_v26 }
 0x419   : > { %v1243_v28 = vpop.f32.mrf.mxu0 }
 0x41a   : > { %v3205_v15 = vpop.permute.xlu0 %1553 }
 0x41b   : > { %v1481_v30 = vpop.f32.mrf.mxu0  ;;  %v3209_v19 = vpop.permute.xlu1 %1537 }
 0x41c   : > { %1303 = vrot.lane.b32.xlu1 %v3094_v21, %s2726_s26  ;;  %1297 = vrot.lane.b32.xlu0 %v3100_v29, %s2725_s19  ;;  %v1491_v33 = vrot.slane %v1481_v30, %v3102_v31 }
 0x41d   : > { %v1483_v32 = vpop.f32.mrf.mxu0 }
 0x41e   : > { %v3114_v36 = vmul.f32 %v1491_v33, %v2998_v3  ;;  %v1495_v37 = vrot.slane %v1483_v32, %v3102_v31  ;;  %v1359_v20 = vpop.permute.xlu0 %1358 }
 0x41f   : > { %v1485_v34 = vpop.f32.mrf.mxu0 }
 0x420   : > { %1327 = vrot.lane.b32.xlu1 %v3100_v29, %s2737_s24  ;;  %1305 = vrot.lane.b32.xlu0 %v3100_v29, %s2726_s26  ;;  %v3122_v38 = vmul.f32 %v1495_v37, %v3000_v4 }
 0x421   : > { %v1486_v35 = vpop.f32.mrf.mxu0 }
 0x424   : > { %1528 = vrot.lane.b32.xlu0 %v3114_v36, %s2737_s24  ;;  %1498 = vrot.lane.b32.xlu1 %v3114_v36, %s2725_s19 }
 0x428   : > { %1506 = vrot.lane.b32.xlu1 %v3114_v36, %s2726_s26  ;;  %1500 = vrot.lane.b32.xlu0 %v3122_v38, %s2725_s19 }
 0x42c   : > { %1366 = vperm.xlu1 %2561, %v2895_v16   ;;  %1508 = vrot.lane.b32.xlu0 %v3122_v38, %s2726_s26 }
 0x430   : > { %2562 = vset.pattern.permute.xlu1 %v2738_v39  ;;  %1561 = vperm.xlu0 %2560, %v2895_v16  }
 0x431   : > { %1569 = vperm.xlu1 %2562, %v2895_v16  }
 0x434   : > { %2563 = vset.pattern.permute.xlu0 %v2739_v40 }
 0x435   : > { %2564 = vset.pattern.permute.xlu1 %v2740_v41  ;;  %1374 = vperm.xlu0 %2563, %v2895_v16  }
 0x436   : > { %1577 = vperm.xlu1 %2564, %v2895_v16  }
 0x439   : > { %2566 = vset.pattern.permute.xlu0 %v2741_v44 }
 0x43a   : > { %2565 = vset.pattern.permute.xlu1 %v2742_v45  ;;  %1593 = vperm.xlu0 %2566, %v2895_v16  }
 0x43b   : > { %1390 = vperm.xlu1 %2565, %v2895_v16  }
 0x43e   : > { %2567 = vset.pattern.permute.xlu0 %v2743_v49 }
 0x43f   : > { %1397 = vrot.lane.b32.xlu1 %v3094_v21, %s2723_s0  ;;  %1406 = vperm.xlu0 %2567, %v2895_v16  }
 0x440   : > { %2572 = vset.pattern.permute.xlu1 %v2745_v61 }
 0x443   : > { %1399 = vrot.lane.b32.xlu1 %v3100_v29, %s2723_s0  ;;  %2568 = vset.pattern.permute.xlu0 %v2744_v59 }
 0x444   : > { %1609 = vperm.xlu0 %2568, %v2895_v16  }
 0x447   : > { %1600 = vrot.lane.b32.xlu1 %v3114_v36, %s2723_s0 }
 0x448   : > { %2569 = vset.pattern.permute.xlu0 %v2746_v5 }
 0x449   : > { %1422 = vperm.xlu0 %2569, %v2895_v16  }
 0x44b   : > { %493 = vrot.lane.b32.xlu1 %v3182_v7, %s2737_s24 }
 0x44d   : > { %2570 = vset.pattern.permute.xlu0 %v2747_v10 }
 0x44e   : > { %1625 = vperm.xlu0 %2570, %v2895_v16  }
 0x44f   : > { %495 = vrot.lane.b32.xlu1 %v3188_v9, %s2737_s24 }
 0x452   : > { %2571 = vset.pattern.permute.xlu0 %v2748_v11 }
 0x453   : > { %1530 = vrot.lane.b32.xlu1 %v3122_v38, %s2737_s24 }
 0x457   : > { %1602 = vrot.lane.b32.xlu1 %v3122_v38, %s2723_s0 }
 0x45b   : > { %517 = vrot.lane.b32.xlu1 %v3188_v9, %s2723_s0 }
 0x48a   : > { %v3211_v22 = vpop.permute.xlu0 %1325  ;;  %v1296_v23 = vpop.permute.xlu1 %1295 }
 0x48e   : > { %v1304_v24 = vpop.permute.xlu1 %1303  ;;  %v1298_v25 = vpop.permute.xlu0 %1297 }
 0x48f   : > { %v1299_v26 = vsel %vm453_vm3, %v1296_v23, %v1298_v25  ;;  %v1300_v27 = vsel %vm453_vm3, %v1298_v25, %v1296_v23 }
 0x490   : > { %v1301_v28 = vmul.f32 %v1300_v27, %v3147_v50  ;;  %v1302_v30 = vmul.f32 %v1299_v26, %v3163_v57 }
 0x492   : > { %v3219_v32 = vmul.f32 %v1359_v20, %v1301_v28  ;;  %v3221_v33 = vmul.f32 %v1359_v20, %v1302_v30  ;;  %v3223_v34 = vpop.permute.xlu1 %1327  ;;  %v1306_v35 = vpop.permute.xlu0 %1305  ;;  %1313 = vrot.lane.b32.xlu1 %v1302_v30, %s2737_s24  ;;  %1311 = vrot.lane.b32.xlu0 %v1301_v28, %s2737_s24 }
 0x493   : > { %v1307_v37 = vsel %vm475_vm4, %v1304_v24, %v1306_v35  ;;  %v1308_v40 = vsel %vm475_vm4, %v1306_v35, %v1304_v24 }
 0x494   : > { %v3230_v39 = vmul.f32 %v1307_v37, %v3158_v55  ;;  %v3241_v43 = vmul.f32 %v1308_v40, %v3172_v62  ;;  %v2334_v37 = vld [vmem:[%s3718_s2 + $0x3] ss:$8 sm:$0x3] }
 0x496   : > { %v3234_v41 = vpop.permute.xlu0 %1528  ;;  %1341 = vrot.lane.b32.xlu1 %v3230_v39, %s2737_s24  ;;  %515 = vrot.lane.b32.xlu0 %v3182_v7, %s2723_s0  ;;  %v1499_v44 = vpop.permute.xlu1 %1498 }
 0x49a   : > { %1343 = vrot.lane.b32.xlu1 %v3241_v43, %s2737_s24  ;;  %1413 = vrot.lane.b32.xlu0 %v3230_v39, %s2723_s0  ;;  %v1501_v45 = vpop.permute.xlu0 %1500  ;;  %v1507_v46 = vpop.permute.xlu1 %1506 }
 0x49b   : > { %v1503_v52 = vsel %vm453_vm3, %v1501_v45, %v1499_v44  ;;  %v1502_v56 = vsel %vm453_vm3, %v1499_v44, %v1501_v45 }
 0x49c   : > { %v3264_v54 = vmul.f32 %v1503_v52, %v3147_v50  ;;  %v3271_v58 = vmul.f32 %v1502_v56, %v3163_v57  ;;  %v1329_v52 = vsel %vm497_vm5, %v3211_v22, %v3223_v34  ;;  %v1330_v56 = vsel %vm497_vm5, %v3223_v34, %v3211_v22 }
 0x49e   : > { %1381 = vrot.lane.b32.xlu1 %v1301_v28, %s2723_s0  ;;  %v1509_v47 = vpop.permute.xlu0 %1508 }
 0x49f   : > { %v1510_v48 = vsel %vm475_vm4, %v1507_v46, %v1509_v47  ;;  %v1511_v60 = vsel %vm475_vm4, %v1509_v47, %v1507_v46  ;;  %v3336_v47 = vrot.slane %v2334_v37, %v3149_v51 }
 0x4a0   : > { %v3251_v49 = vmul.f32 %v1510_v48, %v3158_v55  ;;  %v3284_v63 = vmul.f32 %v1511_v60, %v3172_v62  ;;  %v3339_v48 = vrot.slane %v2334_v37, %v3102_v31 }
 0x4a1   : > { %v1332_v37 = vmul.f32 %v1329_v52, %v3336_v47 }
 0x4a2   : > { %1383 = vrot.lane.b32.xlu1 %v1302_v30, %s2723_s0  ;;  %1616 = vrot.lane.b32.xlu0 %v3251_v49, %s2723_s0 }
 0x4a6   : > { %1415 = vrot.lane.b32.xlu1 %v3241_v43, %s2723_s0  ;;  %1430 = vperm.xlu0 %2571, %v2895_v16  }
 0x4a7   : > { %v3261_v53 = vpop.permute.xlu1 %1366 }
 0x4aa   : > { %1514 = vrot.lane.b32.xlu1 %v3264_v54, %s2737_s24 }
 0x4ab   : > { %v3312_v20 = vpop.permute.xlu0 %1561 }
 0x4ac   : > { %v3273_v59 = vpop.permute.xlu1 %1569 }
 0x4ae   : > { %1516 = vrot.lane.b32.xlu1 %v3271_v58, %s2737_s24 }
 0x4b0   : > { %v1375_v23 = vpop.permute.xlu0 %1374 }
 0x4b1   : > { %v3279_v61 = vpop.permute.xlu1 %1577 }
 0x4b2   : > { %1544 = vrot.lane.b32.xlu1 %v3251_v49, %s2737_s24 }
 0x4b5   : > { %v3314_v24 = vpop.permute.xlu0 %1593 }
 0x4b6   : > { %v3286_v0 = vpop.permute.xlu1 %1390  ;;  %1546 = vrot.lane.b32.xlu1 %v3284_v63, %s2737_s24 }
 0x4ba   : > { %v3290_v1 = vpop.permute.xlu1 %1397  ;;  %1584 = vrot.lane.b32.xlu1 %v3264_v54, %s2723_s0  ;;  %v3316_v25 = vpop.permute.xlu0 %1406 }
 0x4be   : > { %v3294_v2 = vpop.permute.xlu1 %1399  ;;  %1586 = vrot.lane.b32.xlu1 %v3271_v58, %s2723_s0 }
 0x4c2   : > { %v3298_v5 = vpop.permute.xlu1 %1600  ;;  %1618 = vrot.lane.b32.xlu1 %v3284_v63, %s2723_s0 }
 0x4c6   : > { %v494_v6 = vpop.permute.xlu1 %493  ;;  %1633 = vperm.xlu1 %2572, %v2895_v16   ;;  %v3318_v16 = vpop.permute.xlu0 %1609 }
 0x4ca   : > { %v496_v8 = vpop.permute.xlu1 %495  ;;  %v3320_v27 = vpop.permute.xlu0 %1422 }
 0x4cb   : > { %v3306_v10 = vsel %vm497_vm5, %v494_v6, %v496_v8  ;;  %v3310_v11 = vsel %vm497_vm5, %v496_v8, %v494_v6 }
 0x4ce   : > { %v1531_v26 = vpop.permute.xlu1 %1530  ;;  %v3324_v30 = vpop.permute.xlu0 %1625 }
 0x4d2   : > { %v3322_v28 = vpop.permute.xlu1 %1602 }
 0x4d6   : > { %v3326_v35 = vpop.permute.xlu1 %517 }
 0x504   : > { %v1314_v40 = vpop.permute.xlu1 %1313  ;;  %v1312_v44 = vpop.permute.xlu0 %1311 }
 0x505   : > { %v1315_v45 = vsel %vm497_vm5, %v1312_v44, %v1314_v40  ;;  %v1316_v46 = vsel %vm497_vm5, %v1314_v40, %v1312_v44  ;;  %v1331_v40 = vmul.f32 %v1330_v56, %v3339_v48 }
 0x506   : > { %v1317_v60 = vmul.f32 %v1316_v46, %v3339_v48  ;;  %v1318_v6 = vmul.f32 %v1315_v45, %v3336_v47  ;;  %v1338_v45 = vmul.f32 %v3199_v12, %v1332_v37  ;;  %v1378_v37 = vmul.f32 %v1375_v23, %v3241_v43 }
 0x507   : > { %v1337_v34 = vmul.f32 %v3199_v12, %v1331_v40 }
 0x508   : > { %v1342_v8 = vpop.permute.xlu1 %1341  ;;  %v1323_v44 = vmul.f32 %v3203_v14, %v1317_v60  ;;  %v1324_v17 = vmul.f32 %v3203_v14, %v1318_v6 }
 0x50a   : > { %v1339_v52 = vadd.f32 %v1337_v34, %v1323_v44  ;;  %v1340_v57 = vadd.f32 %v1338_v45, %v1324_v17  ;;  %v1377_v17 = vmul.f32 %v1375_v23, %v3230_v39 }
 0x50c   : > { %v1344_v62 = vpop.permute.xlu1 %1343 }
 0x50d   : > { %v1345_v55 = vsel %vm497_vm5, %v1342_v8, %v1344_v62  ;;  %v1346_v22 = vsel %vm497_vm5, %v1344_v62, %v1342_v8  ;;  %v1369_v62 = vmul.f32 %v3261_v53, %v3094_v21  ;;  %v1370_v8 = vmul.f32 %v3261_v53, %v3100_v29  ;;  %v2335_v53 = vld [vmem:[%s3718_s2 + $0x4] ss:$8 sm:$0x3] }
 0x50e   : > { %v1347_v46 = vmul.f32 %v1346_v22, %v3339_v48  ;;  %v1348_v56 = vmul.f32 %v1345_v55, %v3336_v47 }
 0x510   : > { %v1353_v60 = vmul.f32 %v3201_v13, %v1347_v46  ;;  %v1354_v14 = vmul.f32 %v3201_v13, %v1348_v56  ;;  %v1382_v6 = vpop.permute.xlu1 %1381  ;;  %v3398_v56 = vrot.slane %v2335_v53, %v3149_v51 }
 0x512   : > { %v1355_v50 = vadd.f32 %v1353_v60, %v1339_v52  ;;  %v1356_v4 = vadd.f32 %v1354_v14, %v1340_v57  ;;  %v1564_v14 = vmul.f32 %v3312_v20, %v3264_v54  ;;  %v1401_v54 = vsel %vm519_vm6, %v3290_v1, %v3294_v2 }
 0x514   : > { %v1363_v12 = vadd.f32 %v3219_v32, %v1355_v50  ;;  %v1364_v40 = vadd.f32 %v3221_v33, %v1356_v4  ;;  %v1384_v55 = vpop.permute.xlu1 %1383  ;;  %v1532_v50 = vsel %vm497_vm5, %v3234_v41, %v1531_v26  ;;  %v1533_v32 = vsel %vm497_vm5, %v1531_v26, %v3234_v41 }
 0x515   : > { %v1534_v23 = vmul.f32 %v1533_v32, %v3339_v48  ;;  %v1535_v46 = vmul.f32 %v1532_v50, %v3336_v47  ;;  %v3401_v41 = vrot.slane %v2335_v53, %v3102_v31  ;;  %v1572_v50 = vmul.f32 %v3273_v59, %v3114_v36 }
 0x516   : > { %v1371_v44 = vadd.f32 %v1369_v62, %v1363_v12  ;;  %v1372_v13 = vadd.f32 %v1370_v8, %v1364_v40  ;;  %v1565_v62 = vmul.f32 %v3312_v20, %v3271_v58  ;;  %v1402_v58 = vsel %vm519_vm6, %v3294_v2, %v3290_v1 }
 0x517   : > { %v1540_v40 = vmul.f32 %v3209_v19, %v1534_v23  ;;  %v1385_v20 = vsel %vm519_vm6, %v1382_v6, %v1384_v55  ;;  %v1573_v32 = vmul.f32 %v3273_v59, %v3122_v38  ;;  %v1580_v1 = vmul.f32 %v3279_v61, %v3251_v49 }
 0x518   : > { %v3373_v22 = vadd.f32 %v1377_v17, %v1371_v44  ;;  %v3375_v57 = vadd.f32 %v1378_v37, %v1372_v13  ;;  %v3377_v34 = vpop.permute.xlu1 %1415  ;;  %v1541_v17 = vmul.f32 %v3209_v19, %v1535_v46  ;;  %v516_v37 = vpop.permute.xlu0 %515  ;;  %v1386_v19 = vsel %vm519_vm6, %v1384_v55, %v1382_v6 }
 0x519   : > { %v1581_v2 = vmul.f32 %v3279_v61, %v3284_v63  ;;  %v1403_v6 = vmul.f32 %v1401_v54, %v3401_v41  ;;  %v1404_v55 = vmul.f32 %v1402_v58, %v3398_v56  ;;  %v512_v36 = vmul.f32 %v3336_v47, %v3306_v10 }
 0x51a   : > { %v1387_v38 = vmul.f32 %v1385_v20, %v3401_v41  ;;  %v1388_v59 = vmul.f32 %v1386_v19, %v3398_v56  ;;  %v1604_v49 = vsel %vm519_vm6, %v3298_v5, %v3322_v28  ;;  %v1605_v61 = vsel %vm519_vm6, %v3322_v28, %v3298_v5 }
 0x51b   : > { %v520_v10 = vsel %vm519_vm6, %v516_v37, %v3326_v35  ;;  %v521_v23 = vsel %vm519_vm6, %v3326_v35, %v516_v37  ;;  %v1607_v19 = vmul.f32 %v1605_v61, %v3398_v56 }
 0x51c   : > { %v1515_v21 = vpop.permute.xlu1 %1514  ;;  %v1414_v63 = vpop.permute.xlu0 %1413 }
 0x51d   : > { %v1417_v35 = vsel %vm519_vm6, %v1414_v63, %v3377_v34 }
 0x520   : > { %v1517_v45 = vpop.permute.xlu1 %1516 }
 0x521   : > { %v1518_v29 = vsel %vm497_vm5, %v1515_v21, %v1517_v45  ;;  %v1519_v4 = vsel %vm497_vm5, %v1517_v45, %v1515_v21 }
 0x522   : > { %v1520_v33 = vmul.f32 %v1519_v4, %v3339_v48  ;;  %v1521_v39 = vmul.f32 %v1518_v29, %v3336_v47 }
 0x524   : > { %v1545_v43 = vpop.permute.xlu1 %1544  ;;  %v1526_v26 = vmul.f32 %v3207_v18, %v1520_v33  ;;  %v1527_v52 = vmul.f32 %v3207_v18, %v1521_v39 }
 0x526   : > { %v1542_v13 = vadd.f32 %v1540_v40, %v1526_v26  ;;  %v1543_v21 = vadd.f32 %v1541_v17, %v1527_v52 }
 0x528   : > { %v1547_v60 = vpop.permute.xlu1 %1546 }
 0x529   : > { %v1548_v8 = vsel %vm497_vm5, %v1545_v43, %v1547_v60  ;;  %v1549_v12 = vsel %vm497_vm5, %v1547_v60, %v1545_v43 }
 0x52a   : > { %v1550_v18 = vmul.f32 %v1549_v12, %v3339_v48  ;;  %v1551_v44 = vmul.f32 %v1548_v8, %v3336_v47  ;;  %v1418_v8 = vsel %vm519_vm6, %v3377_v34, %v1414_v63  ;;  %v1617_v12 = vpop.permute.xlu0 %1616  ;;  %v1606_v34 = vmul.f32 %v1604_v49, %v3401_v41 }
 0x52c   : > { %v1556_v45 = vmul.f32 %v3205_v15, %v1550_v18  ;;  %v1557_v29 = vmul.f32 %v3205_v15, %v1551_v44  ;;  %v1585_v4 = vpop.permute.xlu1 %1584  ;;  %v511_v15 = vmul.f32 %v3339_v48, %v3310_v11 }
 0x52e   : > { %v1558_v33 = vadd.f32 %v1556_v45, %v1542_v13  ;;  %v1559_v39 = vadd.f32 %v1557_v29, %v1543_v21  ;;  %v513_v54 = vadd.f32 %v511_v15, %v3182_v7  ;;  %v388_v13 = vld [vmem:[%s3718_s2] ss:$8 sm:$0x3]  ;;  %v534_v7 = vmul.f32 %v3398_v56, %v521_v23 }
 0x52f   : > { %v1419_v45 = vmul.f32 %v1417_v35, %v3401_v41  ;;  %v1420_v29 = vmul.f32 %v1418_v8, %v3398_v56  ;;  %v1613_v15 = vmul.f32 %v3318_v16, %v1607_v19 }
 0x530   : > { %v1566_v43 = vadd.f32 %v1564_v14, %v1558_v33  ;;  %v1567_v11 = vadd.f32 %v1565_v62, %v1559_v39  ;;  %v1587_v53 = vpop.permute.xlu1 %1586  ;;  %v1393_v14 = vmul.f32 %v3286_v0, %v1387_v38  ;;  %v1394_v62 = vmul.f32 %v3286_v0, %v1388_v59 }
 0x531   : > { %v1588_v46 = vsel %vm519_vm6, %v1585_v4, %v1587_v53  ;;  %v1589_v26 = vsel %vm519_vm6, %v1587_v53, %v1585_v4  ;;  %v514_v0 = vadd.f32 %v512_v36, %v3188_v9  ;;  %v1410_v33 = vmul.f32 %v3316_v25, %v1404_v55 }
 0x532   : > { %v1574_v52 = vadd.f32 %v1572_v50, %v1566_v43  ;;  %v1575_v5 = vadd.f32 %v1573_v32, %v1567_v11  ;;  %v1590_v28 = vmul.f32 %v1588_v46, %v3401_v41  ;;  %v1591_v60 = vmul.f32 %v1589_v26, %v3398_v56  ;;  %v1431_v11 = vpop.permute.xlu0 %1430 }
 0x533   : > { %v1395_v9 = vadd.f32 %v1393_v14, %v3373_v22  ;;  %v1396_v21 = vadd.f32 %v1394_v62, %v3375_v57  ;;  %v541_v39 = vrot.slane %v388_v13, %v3102_v31  ;;  %v545_v22 = vrot.slane %v388_v13, %v3149_v51  ;;  %v3747_v62 = vld [vmem:[#allocation7_spill] sm:$0xff] }
 0x534   : > { %v1582_v40 = vadd.f32 %v1580_v1, %v1574_v52  ;;  %v1583_v17 = vadd.f32 %v1581_v2, %v1575_v5  ;;  %v1596_v37 = vmul.f32 %v3314_v24, %v1590_v28  ;;  %v1597_v18 = vmul.f32 %v3314_v24, %v1591_v60  ;;  %v1619_v44 = vpop.permute.xlu1 %1618 }
 0x535   : > { %v1620_v58 = vsel %vm519_vm6, %v1617_v12, %v1619_v44  ;;  %v1621_v20 = vsel %vm519_vm6, %v1619_v44, %v1617_v12  ;;  %v533_v24 = vmul.f32 %v3401_v41, %v520_v10  ;;  %v1409_v2 = vmul.f32 %v3316_v25, %v1403_v6 }
 0x536   : > { %v1598_v4 = vadd.f32 %v1596_v37, %v1582_v40  ;;  %v1599_v50 = vadd.f32 %v1597_v18, %v1583_v17  ;;  %v1622_v32 = vmul.f32 %v1620_v58, %v3401_v41  ;;  %v1623_v1 = vmul.f32 %v1621_v20, %v3398_v56 }
 0x537   : > { %v1612_v57 = vmul.f32 %v3318_v16, %v1606_v34  ;;  %v535_v36 = vadd.f32 %v533_v24, %v513_v54  ;;  %v536_v38 = vadd.f32 %v534_v7, %v514_v0  ;;  %v1425_v59 = vmul.f32 %v3320_v27, %v1419_v45 }
 0x538   : > { %v1426_v49 = vmul.f32 %v3320_v27, %v1420_v29  ;;  %v1411_v61 = vadd.f32 %v1409_v2, %v1395_v9  ;;  %v1412_v63 = vadd.f32 %v1410_v33, %v1396_v21  ;;  %v1628_v6 = vmul.f32 %v3324_v30, %v1622_v32  ;;  %v3511_v9 = vld [vmem:[%s3717_s1] sm:$0xff] }
 0x539   : > { %v1629_v25 = vmul.f32 %v3324_v30, %v1623_v1  ;;  %v1614_v55 = vadd.f32 %v1612_v57, %v1598_v4  ;;  %v1615_v31 = vadd.f32 %v1613_v15, %v1599_v50  ;;  %v548_v43 = vmul.f32 %v541_v39, %v535_v36 }
 0x53a   : > { %v549_v51 = vmul.f32 %v545_v22, %v536_v38  ;;  %v1427_v53 = vadd.f32 %v1425_v59, %v1411_v61  ;;  %v1428_v10 = vadd.f32 %v1426_v49, %v1412_v63  ;;  %v2749_v24 = vmov 2  }
 0x53b   : > { %v1630_v16 = vadd.f32 %v1628_v6, %v1614_v55  ;;  %v1631_v23 = vadd.f32 %v1629_v25, %v1615_v31  ;;  %v550_v14 = vsub.f32 %v2998_v3, %v548_v43  ;;  %2573 = vset.pattern.permute.xlu0 %v2749_v24  ;;  %v2750_v7 = vmov 3  }
 0x53c   : > { %v1433_v26 = vadd.f32 %v1431_v11, %v1427_v53  ;;  %v1434_v52 = vadd.f32 %v1431_v11, %v1428_v10  ;;  %v551_v30 = vsub.f32 %v3747_v62, %v549_v51  ;;  %2574 = vset.pattern.permute.xlu1 %v2750_v7  ;;  %v2751_v21 = vmov 32   ;;  %v3750_v62 = vld [vmem:[#allocation9_spill] sm:$0xff] }
 0x53d   : > { %v2752_v45 = vmov 33   ;;  %v2753_v29 = vmov 36   ;;  %v2754_v22 = vmov 30   ;;  %v2755_v63 = vmov 37  }
 0x53e   : > { %v2756_v43 = vmov 31   ;;  %v2757_v51 = vmov 34   ;;  %v2758_v11 = vmov 35   ;;  %v2759_v53 = vmov 6  }
 0x541   : > { %v1634_v46 = vpop.permute.xlu1 %1633 }
 0x542   : > { %v1636_v5 = vadd.f32 %v1634_v46, %v1630_v16  ;;  %v1637_v27 = vadd.f32 %v1634_v46, %v1631_v23 }
 0x544   : > { %v1638_v28 = vadd.f32 %v1636_v5, %v1433_v26  ;;  %v1639_v60 = vadd.f32 %v1637_v27, %v1434_v52  ;;  %v3748_v26 = vld [vmem:[#allocation8_spill] sm:$0xff]  ;;  %v3749_v5 = vld [vmem:[#allocation10_spill] sm:$0xff] }
 0x546   : > { %v1640_v35 = vadd.f32 %v1638_v28, %v550_v14  ;;  %v1641_v8 = vadd.f32 %v1639_v60, %v551_v30 }
 0x548   : > { %v1642_v12 = vadd.f32 %v1641_v8, %v1640_v35 }
 0x54a   : > { %1643 = vadd.xlane.f32.xlu1 %v1642_v12  ;;  %v3751_v12 = vld [vmem:[#allocation11_spill] sm:$0xff] }
 0x55b   : > { %1683 = vperm.xlu1 %2574, %v3511_v9  }
 0x55f   : > { %2575 = vset.pattern.permute.xlu1 %v2754_v22 }
 0x5d3   : > { %v1644_v40 = vpop.xlane.xlu1 %1643 }
 0x5d4   : > { %v1645_v17 = vrot.slane %v1644_v40, 4 }
 0x5d6   : > { %v1646_v37 = vadd.f32 %v1645_v17, %v1644_v40  ;;  %v2761_v17 = vmov 10  }
 0x5d7   : > { %v1684_v61 = vpop.permute.xlu1 %1683 }
 0x5d8   : > { %v1647_v18 = vrot.slane %v1646_v37, 2 }
 0x5da   : > { %v1648_v44 = vadd.f32 %v1647_v18, %v1646_v37 }
 0x5dc   : > { %v1649_v54 = vrot.slane %v1648_v44, 1 }
 0x5de   : > { %v1650_v0 = vadd.f32 %v1649_v54, %v1648_v44 }
 0x5e0   : > { %2455 = vpush %v1650_v0 }
 0x611   : > { %s2456_s30 = spop %2455 }
 0x612   : > { %s1652_s12 = smul.f32 0.00048828125, %s2456_s30 }
 0x614   : > { %v1653_v58 = vstv %s1652_s12 }
 0x615   : > { %v1654_v20 = vsub.f32 %v1640_v35, %v1653_v58  ;;  %v1655_v34 = vsub.f32 %v1641_v8, %v1653_v58  ;;  %v2760_v8 = vmov 38  }
 0x617   : > { %v1656_v3 = vmul.f32 %v1654_v20, %v1654_v20  ;;  %v1657_v19 = vmul.f32 %v1655_v34, %v1655_v34 }
 0x619   : > { %v1658_v13 = vadd.f32 %v1657_v19, %v1656_v3 }
 0x61b   : > { %1659 = vadd.xlane.f32.xlu0 %v1658_v13 }
 0x631   : > { %1677 = vperm.xlu0 %2573, %v3511_v9  }
 0x635   : > { %2577 = vset.pattern.permute.xlu0 %v2751_v21 }
 0x636   : > { %1743 = vperm.xlu0 %2577, %v3511_v9  }
 0x63a   : > { %2578 = vset.pattern.permute.xlu0 %v2752_v45 }
 0x63b   : > { %1751 = vperm.xlu0 %2578, %v3511_v9  }
 0x63f   : > { %2581 = vset.pattern.permute.xlu0 %v2753_v29 }
 0x640   : > { %1783 = vperm.xlu0 %2581, %v3511_v9  }
 0x644   : > { %2582 = vset.pattern.permute.xlu0 %v2755_v63 }
 0x6a4   : > { %v1660_v4 = vpop.xlane.xlu0 %1659 }
 0x6a5   : > { %v1661_v50 = vrot.slane %v1660_v4, 4 }
 0x6a7   : > { %v1662_v32 = vadd.f32 %v1661_v50, %v1660_v4 }
 0x6a9   : > { %v1663_v1 = vrot.slane %v1662_v32, 2 }
 0x6ab   : > { %v1664_v2 = vadd.f32 %v1663_v1, %v1662_v32 }
 0x6ac   : > { %v1678_v38 = vpop.permute.xlu0 %1677 }
 0x6ad   : > { %v1665_v33 = vrot.slane %v1664_v2, 1 }
 0x6af   : > { %v1666_v39 = vadd.f32 %v1665_v33, %v1664_v2 }
 0x6b1   : > { %2457 = vpush %v1666_v39  ;;  %v1744_v54 = vpop.permute.xlu0 %1743 }
 0x6b6   : > { %v1752_v58 = vpop.permute.xlu0 %1751 }
 0x6e2   : > { %s2458_s16 = spop %2457 }
 0x6e3   : > { %s1668_s22 = smul.f32 0.00048828125, %s2458_s16  ;;  %s377_s16 = sand.u32 1, %s2711_s18  }
 0x6e5   : > { %s1669_s25 = sadd.f32 1e-05, %s1668_s22  ;;  %s2329_s22 = sshll.u32 %s377_s16, 4 }
 0x6e7   : > { %v1670_v57 = vstv %s1669_s25  ;;  %s2404_s25 = sshll.u32 %s2848_s21, 8  ;;  %s2766_s21 = smov [#allocation2]  }
 0x6e8   : > { %2636 = vrsqrt.f32 %v1670_v57  ;;  %s2663_s12 = sshll.u32 %s2766_s21, 4  ;;  %s2664_s12 = int_to_ptr.vmem [resolvable:$false] %s2663_s12 }
 0x6e9   : > { %s2665_s13 = scalar_lea.vmem %s2664_s12, 512 }
 0x6f5   : > { %v2637_v15 = vpop.eup %2636 }
 0x6f6   : > { %2459 = vpush %v2637_v15 }
 0x727   : > { %s2460_s29 = spop %2459 }
 0x728   : > { %v1673_v36 = vstv %s2460_s29  ;;  %s379_s29 = scalar_lea.vmem [#allocation2], %s2329_s22 }
 0x729   : > { %v1674_v59 = vmul.f32 %v1673_v36, %v1654_v20  ;;  %v1675_v49 = vmul.f32 %v1673_v36, %v1655_v34  ;;  %v1784_v34 = vpop.permute.xlu0 %1783 }
 0x72b   : > { %v1680_v6 = vmul.f32 %v1678_v38, %v1674_v59  ;;  %v1681_v25 = vmul.f32 %v1678_v38, %v1675_v49 }
 0x72d   : > { %v3518_v55 = vadd.f32 %v1684_v61, %v1680_v6  ;;  %v3524_v31 = vadd.f32 %v1684_v61, %v1681_v25 }
 0x72f   : > { %1718 = vrot.lane.b32.xlu0 %v3518_v55, %s2737_s24  ;;  %1688 = vrot.lane.b32.xlu1 %v3518_v55, %s2725_s19 }
 0x733   : > { %1690 = vrot.lane.b32.xlu1 %v3524_v31, %s2725_s19 }
 0x737   : > { %1696 = vrot.lane.b32.xlu1 %v3518_v55, %s2726_s26 }
 0x73b   : > { %1698 = vrot.lane.b32.xlu1 %v3524_v31, %s2726_s26 }
 0x73f   : > { %1713 = vperm.xlu1 %2575, %v3511_v9  }
 0x743   : > { %2576 = vset.pattern.permute.xlu1 %v2756_v43 }
 0x744   : > { %1727 = vperm.xlu1 %2576, %v3511_v9  }
 0x748   : > { %2579 = vset.pattern.permute.xlu1 %v2757_v51 }
 0x749   : > { %1759 = vperm.xlu1 %2579, %v3511_v9  }
 0x74d   : > { %2580 = vset.pattern.permute.xlu1 %v2758_v11 }
 0x74e   : > { %1767 = vperm.xlu1 %2580, %v3511_v9  }
 0x752   : > { %1720 = vrot.lane.b32.xlu1 %v3524_v31, %s2737_s24 }
 0x753   : > { %2585 = vset.pattern.permute.xlu1 %v2759_v53 }
 0x756   : > { %1790 = vrot.lane.b32.xlu1 %v3518_v55, %s2723_s0 }
 0x75a   : > { %1792 = vrot.lane.b32.xlu1 %v3524_v31, %s2723_s0 }
 0x7a1   : > { %v1689_v10 = vpop.permute.xlu1 %1688  ;;  %v1719_v19 = vpop.permute.xlu0 %1718 }
 0x7a5   : > { %v1691_v16 = vpop.permute.xlu1 %1690 }
 0x7a6   : > { %v1692_v23 = vsel %vm453_vm3, %v1689_v10, %v1691_v16  ;;  %v1693_v46 = vsel %vm453_vm3, %v1691_v16, %v1689_v10 }
 0x7a7   : > { %v1694_v52 = vmul.f32 %v1693_v46, %v3748_v26  ;;  %v1695_v27 = vmul.f32 %v1692_v23, %v3749_v5 }
 0x7a9   : > { %1704 = vrot.lane.b32.xlu0 %v1694_v52, %s2737_s24  ;;  %1706 = vrot.lane.b32.xlu1 %v1695_v27, %s2737_s24  ;;  %v1697_v28 = vpop.permute.xlu1 %1696  ;;  %v1754_v11 = vmul.f32 %v1752_v58, %v1694_v52  ;;  %v1755_v53 = vmul.f32 %v1752_v58, %v1695_v27 }
 0x7ad   : > { %1799 = vperm.xlu0 %2582, %v3511_v9   ;;  %v1699_v60 = vpop.permute.xlu1 %1698 }
 0x7ae   : > { %v1700_v14 = vsel %vm475_vm4, %v1697_v28, %v1699_v60  ;;  %v1701_v35 = vsel %vm475_vm4, %v1699_v60, %v1697_v28 }
 0x7af   : > { %v1702_v30 = vmul.f32 %v1700_v14, %v3750_v62  ;;  %v1703_v40 = vmul.f32 %v1701_v35, %v3751_v12 }
 0x7b1   : > { %1734 = vrot.lane.b32.xlu1 %v1702_v30, %s2737_s24  ;;  %2583 = vset.pattern.permute.xlu0 %v2760_v8 }
 0x7b2   : > { %1815 = vperm.xlu0 %2583, %v3511_v9  }
 0x7b5   : > { %1736 = vrot.lane.b32.xlu1 %v1703_v40, %s2737_s24 }
 0x7b6   : > { %2584 = vset.pattern.permute.xlu0 %v2761_v17 }
 0x7b7   : > { %1823 = vperm.xlu0 %2584, %v3511_v9  }
 0x7b9   : > { %1774 = vrot.lane.b32.xlu1 %v1694_v52, %s2723_s0 }
 0x7ba   : > { %v1714_v37 = vpop.permute.xlu1 %1713 }
 0x7bd   : > { %1776 = vrot.lane.b32.xlu1 %v1695_v27, %s2723_s0 }
 0x7bf   : > { %v1728_v18 = vpop.permute.xlu1 %1727 }
 0x7c1   : > { %1806 = vrot.lane.b32.xlu1 %v1702_v30, %s2723_s0 }
 0x7c4   : > { %v1760_v44 = vpop.permute.xlu1 %1759 }
 0x7c5   : > { %1808 = vrot.lane.b32.xlu1 %v1703_v40, %s2723_s0  ;;  %v1762_v23 = vmul.f32 %v1760_v44, %v3518_v55  ;;  %v1763_v46 = vmul.f32 %v1760_v44, %v3524_v31 }
 0x7c9   : > { %1829 = vperm.xlu1 %2585, %v3511_v9   ;;  %v1768_v0 = vpop.permute.xlu1 %1767 }
 0x7ca   : > { %v1770_v60 = vmul.f32 %v1768_v0, %v1702_v30 }
 0x7cd   : > { %v1721_v20 = vpop.permute.xlu1 %1720 }
 0x7ce   : > { %v1722_v29 = vsel %vm497_vm5, %v1719_v19, %v1721_v20  ;;  %v1723_v4 = vsel %vm497_vm5, %v1721_v20, %v1719_v19 }
 0x7cf   : > { %v1724_v2 = vmul.f32 %v1723_v4, %v3339_v48  ;;  %v1725_v33 = vmul.f32 %v1722_v29, %v3336_v47 }
 0x7d1   : > { %v1791_v3 = vpop.permute.xlu1 %1790  ;;  %v1730_v38 = vmul.f32 %v1728_v18, %v1724_v2  ;;  %v1731_v59 = vmul.f32 %v1728_v18, %v1725_v33 }
 0x7d5   : > { %v1793_v13 = vpop.permute.xlu1 %1792 }
 0x7d6   : > { %v1794_v30 = vsel %vm519_vm6, %v1791_v3, %v1793_v13 }
 0x7d7   : > { %v1796_v44 = vmul.f32 %v1794_v30, %v3401_v41 }
 0x81b   : > { %v1705_v24 = vpop.permute.xlu0 %1704  ;;  %v1707_v7 = vpop.permute.xlu1 %1706 }
 0x81c   : > { %v1708_v21 = vsel %vm497_vm5, %v1705_v24, %v1707_v7  ;;  %v1709_v45 = vsel %vm497_vm5, %v1707_v7, %v1705_v24 }
 0x81d   : > { %v1710_v50 = vmul.f32 %v1709_v45, %v3339_v48  ;;  %v1711_v32 = vmul.f32 %v1708_v21, %v3336_v47 }
 0x81f   : > { %v1716_v39 = vmul.f32 %v1714_v37, %v1710_v50  ;;  %v1717_v22 = vmul.f32 %v1714_v37, %v1711_v32 }
 0x821   : > { %v1732_v63 = vadd.f32 %v1730_v38, %v1716_v39  ;;  %v1733_v6 = vadd.f32 %v1731_v59, %v1717_v22 }
 0x823   : > { %v1735_v1 = vpop.permute.xlu1 %1734 }
 0x827   : > { %v1737_v57 = vpop.permute.xlu1 %1736 }
 0x828   : > { %v1738_v15 = vsel %vm497_vm5, %v1735_v1, %v1737_v57  ;;  %v1739_v36 = vsel %vm497_vm5, %v1737_v57, %v1735_v1  ;;  %v1800_v12 = vpop.permute.xlu0 %1799  ;;  %v2657_v57 = vld [vmem:[%s2880_s14] sm:$0xff] }
 0x829   : > { %v1740_v49 = vmul.f32 %v1739_v36, %v3339_v48  ;;  %v1741_v61 = vmul.f32 %v1738_v15, %v3336_v47  ;;  %v1771_v48 = vmul.f32 %v1768_v0, %v1703_v40  ;;  %v1795_v40 = vsel %vm519_vm6, %v1793_v13, %v1791_v3  ;;  %v2658_v15 = vld [vmem:[%s2880_s14 + $0x8] sm:$0xff] }
 0x82b   : > { %v1746_v25 = vmul.f32 %v1744_v54, %v1740_v49  ;;  %v1747_v43 = vmul.f32 %v1744_v54, %v1741_v61  ;;  %v1775_v51 = vpop.permute.xlu1 %1774  ;;  %v1797_v54 = vmul.f32 %v1795_v40, %v3398_v56 }
 0x82d   : > { %v1748_v10 = vadd.f32 %v1746_v25, %v1732_v63  ;;  %v1749_v16 = vadd.f32 %v1747_v43, %v1733_v6  ;;  %v1816_v20 = vpop.permute.xlu0 %1815  ;;  %v1803_v13 = vmul.f32 %v1800_v12, %v1797_v54 }
 0x82f   : > { %v1756_v26 = vadd.f32 %v1754_v11, %v1748_v10  ;;  %v1757_v5 = vadd.f32 %v1755_v53, %v1749_v16  ;;  %v1777_v28 = vpop.permute.xlu1 %1776 }
 0x830   : > { %v1778_v47 = vsel %vm519_vm6, %v1775_v51, %v1777_v28  ;;  %v1779_v14 = vsel %vm519_vm6, %v1777_v28, %v1775_v51 }
 0x831   : > { %v1764_v62 = vadd.f32 %v1762_v23, %v1756_v26  ;;  %v1765_v52 = vadd.f32 %v1763_v46, %v1757_v5  ;;  %v1780_v27 = vmul.f32 %v1778_v47, %v3401_v41  ;;  %v1781_v35 = vmul.f32 %v1779_v14, %v3398_v56 }
 0x832   : > { %v1824_v1 = vpop.permute.xlu0 %1823  ;;  %v2762_v23 = vmov 4   ;;  %v2763_v46 = vmov 5   ;;  %v3752_v26 = vmov 0  }
 0x833   : > { %v1772_v55 = vadd.f32 %v1770_v60, %v1764_v62  ;;  %v1773_v8 = vadd.f32 %v1771_v48, %v1765_v52  ;;  %v1807_v31 = vpop.permute.xlu1 %1806  ;;  %v1786_v17 = vmul.f32 %v1784_v34, %v1780_v27  ;;  %v1787_v37 = vmul.f32 %v1784_v34, %v1781_v35  ;;  %2586 = vset.pattern.permute.xlu0 %v2762_v23  ;;  %v1886_v52 = vld [vmem:[%s3725_s9] sm:$0xff]  ;;  %v1887_v35 = vld [vmem:[%s3725_s9 + $0x8] sm:$0xff] }
 0x834   : > { %v1802_v34 = vmul.f32 %v1800_v12, %v1796_v44  ;;  %2587 = vset.pattern.permute.xlu1 %v2763_v46  ;;  %v2633_v27 = vld [vmem:[%s3726_s10] sm:$0xff]  }
 0x835   : > { %v1788_v19 = vadd.f32 %v1786_v17, %v1772_v55  ;;  %v1789_v24 = vadd.f32 %v1787_v37, %v1773_v8  ;;  %v2387_v55 = vld [vmem:[%s3725_s9 + $0x10] sm:$0xff]  ;;  %v2388_v8 = vld [vmem:[%s3725_s9 + $0x18] sm:$0xff] }
 0x837   : > { %v1809_v18 = vpop.permute.xlu1 %1808  ;;  %v1804_v29 = vadd.f32 %v1802_v34, %v1788_v19  ;;  %v1805_v4 = vadd.f32 %v1803_v13, %v1789_v24  ;;  %v2631_v34 = vld [vmem:[%s3724_s8 + $0x8] sm:$0xff]   ;;  %v2764_v13 = vmov 11  }
 0x838   : > { %v1810_v0 = vsel %vm519_vm6, %v1807_v31, %v1809_v18  ;;  %v1811_v58 = vsel %vm519_vm6, %v1809_v18, %v1807_v31  ;;  %v2632_v31 = vld [vmem:[%s3726_s10 + $0x8] sm:$0xff]  }
 0x839   : > { %v1812_v7 = vmul.f32 %v1810_v0, %v3401_v41  ;;  %v1813_v3 = vmul.f32 %v1811_v58, %v3398_v56 }
 0x83b   : > { %v1818_v21 = vmul.f32 %v1816_v20, %v1812_v7  ;;  %v1819_v45 = vmul.f32 %v1816_v20, %v1813_v3  ;;  %v2630_v3 = vld [vmem:[%s3724_s8] sm:$0xff]  }
 0x83d   : > { %v1820_v50 = vadd.f32 %v1818_v21, %v1804_v29  ;;  %v1821_v32 = vadd.f32 %v1819_v45, %v1805_v4  ;;  %v2765_v21 = vmov 7  }
 0x83f   : > { %v1826_v42 = vadd.f32 %v1824_v1, %v1820_v50  ;;  %v1827_v2 = vadd.f32 %v1824_v1, %v1821_v32 }
 0x844   : > { %v1830_v33 = vpop.permute.xlu1 %1829 }
 0x845   : > { %v1832_v39 = vmul.f32 %v1830_v33, %v1826_v42  ;;  %v1833_v22 = vmul.f32 %v1830_v33, %v1827_v2 }
 0x847   : > { %v3605_v41 = vadd.f32 %v2657_v57, %v1832_v39  ;;  %v3608_v56 = vadd.f32 %v2658_v15, %v1833_v22 }
 0x849   : > { %v1836_v36 = vadd.f32 %v3608_v56, %v3605_v41 }
 0x84b   : > { %1837 = vadd.xlane.f32.xlu1 %v1836_v36 }
 0x85c   : > { %1877 = vperm.xlu1 %2587, %v3511_v9  }
 0x860   : > { %2588 = vset.pattern.permute.xlu1 %v3752_v26 }
 0x861   : > { %1890 = vperm.xlu1 %2588, %v1886_v52  }
 0x865   : > { %1895 = vperm.xlu1 %2588, %v1887_v35  }
 0x869   : > { %2003 = vperm.xlu1 %2588, %v2387_v55  }
 0x86d   : > { %2008 = vperm.xlu1 %2588, %v2388_v8  }
 0x890   : > { %2109 = vxpose.xlu1.c.b16.start.end [1/1] (short) (narrow) %v2632_v31, 16 }
 0x894   : > { %2589 = vset.pattern.permute.xlu1 %v2764_v13 }
 0x895   : > { %2236 = vperm.xlu1 %2589, %v3511_v9  }
 0x899   : > { %2590 = vset.pattern.permute.xlu1 %v2765_v21 }
 0x89a   : > { %2242 = vperm.xlu1 %2590, %v3511_v9  }
 0x8d4   : > { %v1838_v38 = vpop.xlane.xlu1 %1837 }
 0x8d5   : > { %v1839_v59 = vrot.slane %v1838_v38, 4 }
 0x8d7   : > { %v1840_v49 = vadd.f32 %v1839_v59, %v1838_v38 }
 0x8d8   : > { %v1878_v44 = vpop.permute.xlu1 %1877 }
 0x8d9   : > { %v1841_v61 = vrot.slane %v1840_v49, 2 }
 0x8db   : > { %v1842_v63 = vadd.f32 %v1841_v61, %v1840_v49 }
 0x8dc   : > { %v1891_v45 = vpop.permute.xlu1 %1890 }
 0x8dd   : > { %v1843_v6 = vrot.slane %v1842_v63, 1 }
 0x8df   : > { %v1844_v25 = vadd.f32 %v1843_v6, %v1842_v63 }
 0x8e0   : > { %v1896_v29 = vpop.permute.xlu1 %1895 }
 0x8e1   : > { %2461 = vpush %v1844_v25 }
 0x8e4   : > { %v2004_v4 = vpop.permute.xlu1 %2003 }
 0x8e8   : > { %v2009_v38 = vpop.permute.xlu1 %2008 }
 0x912   : > { %s2462_s0 = spop %2461 }
 0x913   : > { %s1846_s19 = smul.f32 0.00048828125, %s2462_s0  ;;  %s2266_s0 = sshll.u32 %s379_s29, 4  ;;  %s2267_s0 = int_to_ptr.vmem [resolvable:$true] %s2266_s0 }
 0x914   : > { %s2659_s30 = scalar_lea.vmem %s2267_s0, 256  ;;  %p2666_p0 = scmp.lt.s32.totalorder %s2267_s0, %s2664_s12 }
 0x915   : > { %v1847_v43 = vstv %s1846_s19  ;;  %p2660_p11 = scmp.ne.s32.totalorder %s2267_s0, %s2659_s30  ;;  %p2667_p1 = scmp.lt.s32.totalorder %s2665_s13, %s2659_s30 }
 0x916   : > { %v1848_v51 = vsub.f32 %v3605_v41, %v1847_v43  ;;  %v1849_v11 = vsub.f32 %v3608_v56, %v1847_v43 }
 0x917   : > { %p2661_p12 = pnand %p2660_p11, %p2865_p5  ;;  %p2668_p2 = por %p2667_p1, %p2666_p0 }
 0x918   : > { %v1850_v53 = vmul.f32 %v1848_v51, %v1848_v51  ;;  %v1851_v10 = vmul.f32 %v1849_v11, %v1849_v11 }
 0x919   : > { %p2662_p13 = pneg %p2661_p12 }
 0x91a   : > { %v1852_v16 = vadd.f32 %v1851_v10, %v1850_v53 }
 0x91b   : > { %p2669_p3 = pnand %p2668_p2, %p2662_p13 }
 0x91c   : > { %1853 = vadd.xlane.f32.xlu0 %v1852_v16 }
 0x932   : > { %1871 = vperm.xlu0 %2586, %v3511_v9  }
 0x950   : > { %2175 = vxpose.xlu0.c.b16.start.end [1/1] (short) (narrow) %v2633_v27, 16 }
 0x959   : > { %2591 = vset.pattern.permute.xlu0 %v2765_v21 }
 0x9a5   : > { %v1854_v5 = vpop.xlane.xlu0 %1853 }
 0x9a6   : > { %v1855_v28 = vrot.slane %v1854_v5, 4 }
 0x9a8   : > { %v1856_v60 = vadd.f32 %v1855_v28, %v1854_v5 }
 0x9aa   : > { %v1857_v48 = vrot.slane %v1856_v60, 2 }
 0x9ac   : > { %v1858_v47 = vadd.f32 %v1857_v48, %v1856_v60 }
 0x9ad   : > { %v1872_v17 = vpop.permute.xlu0 %1871 }
 0x9ae   : > { %v1859_v14 = vrot.slane %v1858_v47, 1 }
 0x9b0   : > { %v1860_v62 = vadd.f32 %v1859_v14, %v1858_v47 }
 0x9b2   : > { %2463 = vpush %v1860_v62 }
 0x9e3   : > { %s2464_s19 = spop %2463 }
 0x9e4   : > { %s1862_s14 = smul.f32 0.00048828125, %s2464_s19 }
 0x9e6   : > { %s1863_s26 = sadd.f32 1e-05, %s1862_s14 }
 0x9e8   : > { %v1864_v12 = vstv %s1863_s26  ;;  %s2264_s26 = scalar_lea.hbm %s3727_s11, %s2404_s25 }
 0x9e9   : > { %2638 = vrsqrt.f32 %v1864_v12 }
 0x9f6   : > { %v2639_v30 = vpop.eup %2638 }
 0x9f7   : > { %2465 = vpush %v2639_v30 }
 0xa28   : > { %s2466_s24 = spop %2465 }
 0xa29   : > { %v1867_v40 = vstv %s2466_s24  ;;  %s2252_s24 = scalar_lea.sflag [#allocation3], %s377_s16 }
 0xa2a   : > { %v1868_v37 = vmul.f32 %v1867_v40, %v1848_v51  ;;  %v1869_v18 = vmul.f32 %v1867_v40, %v1849_v11 }
 0xa2c   : > { %v1874_v54 = vmul.f32 %v1872_v17, %v1868_v37  ;;  %v1875_v0 = vmul.f32 %v1872_v17, %v1869_v18 }
 0xa2e   : > { %v1880_v58 = vadd.f32 %v1878_v44, %v1874_v54  ;;  %v1881_v20 = vadd.f32 %v1878_v44, %v1875_v0 }
 0xa30   : > { %v1882_v19 = vpack.c.bf16 %v1880_v58, %v1880_v58  ;;  %v1883_v24 = vpack.c.bf16 %v1881_v20, %v1881_v20 }
 0xa32   : > { %2383 = vmatprep.subr.msk.bf16.mxu1 %vm1440_vm1, %v1883_v24  ;;  %2390 = vmatprep.subr.msk.bf16.mxu0 %vm1440_vm1, %v1883_v24  ;;  %v1907_v7 = vsel %vm1440_vm1, %v1882_v19, 0 }
 0xa33   : > { %1927 = vmatpush1.bf16.msra.mxu1 %v1907_v7  ;;  %2034 = vmatpush1.bf16.msra.mxu0 %v1907_v7 }
 0xa36   : > { %2384 = vmatmul.mubr.msk.bf16.vlgmr.msra.gmra.mxu1 %vm1436_vm2, %v2630_v3  ;;  %2391 = vmatmul.mubr.msk.bf16.vlgmr.msra.gmra.mxu0 %vm1436_vm2, %v2631_v34 }
 0xa37   : > { %2160 = vmatprep.mubr.bf16.mxu1 %v3752_v26  ;;  %2226 = vmatprep.mubr.bf16.mxu0 %v3752_v26 }
 0xaf6   : > { %v1946_v50 = vpop.f32.mrf.mxu1  ;;  %v2053_v32 = vpop.f32.mrf.mxu0 }
 0xaf7   : > { %v3650_v1 = vadd.f32 %v1946_v50, %v1891_v45  ;;  %v3652_v42 = vadd.f32 %v2053_v32, %v2004_v4 }
 0xaf8   : > { %v1948_v2 = vpop.f32.mrf.mxu1  ;;  %v2055_v33 = vpop.f32.mrf.mxu0 }
 0xaf9   : > { %v1959_v39 = vmul.f32 0.044715, %v3650_v1  ;;  %v2066_v22 = vmul.f32 0.044715, %v3652_v42  ;;  %v1949_v57 = vadd.f32 %v1948_v2, %v1891_v45  ;;  %v3656_v15 = vadd.f32 %v2055_v33, %v2004_v4 }
 0xafa   : > { %v1950_v36 = vpop.f32.mrf.mxu1  ;;  %v2057_v9 = vpop.f32.mrf.mxu0  ;;  %v1955_v33 = vmul.f32 0.5, %v3650_v1 }
 0xafb   : > { %v1963_v59 = vmul.f32 %v1959_v39, %v3650_v1  ;;  %v2070_v49 = vmul.f32 %v2066_v22, %v3652_v42  ;;  %v1960_v61 = vmul.f32 0.044715, %v1949_v57  ;;  %v2067_v63 = vmul.f32 0.044715, %v3656_v15 }
 0xafc   : > { %v1951_v6 = vadd.f32 %v1950_v36, %v1896_v29  ;;  %v3661_v25 = vadd.f32 %v2057_v9, %v2009_v38  ;;  %v1952_v43 = vpop.f32.mrf.mxu1  ;;  %v2059_v51 = vpop.f32.mrf.mxu0  ;;  %v1956_v32 = vmul.f32 0.5, %v1949_v57 }
 0xafd   : > { %v1967_v11 = vmul.f32 %v1963_v59, %v3650_v1  ;;  %v2074_v53 = vmul.f32 %v2070_v49, %v3652_v42  ;;  %v1964_v10 = vmul.f32 %v1960_v61, %v1949_v57  ;;  %v2071_v16 = vmul.f32 %v2067_v63, %v3656_v15 }
 0xafe   : > { %v1961_v23 = vmul.f32 0.044715, %v1951_v6  ;;  %v2068_v46 = vmul.f32 0.044715, %v3661_v25  ;;  %v1953_v26 = vadd.f32 %v1952_v43, %v1896_v29  ;;  %v2060_v5 = vadd.f32 %v2059_v51, %v2009_v38 }
 0xaff   : > { %v1971_v28 = vadd.f32 %v1967_v11, %v3650_v1  ;;  %v2078_v60 = vadd.f32 %v2074_v53, %v3652_v42  ;;  %v1968_v48 = vmul.f32 %v1964_v10, %v1949_v57  ;;  %v2075_v47 = vmul.f32 %v2071_v16, %v3656_v15 }
 0xb00   : > { %v1965_v14 = vmul.f32 %v1961_v23, %v1951_v6  ;;  %v2072_v62 = vmul.f32 %v2068_v46, %v3661_v25  ;;  %v1962_v52 = vmul.f32 0.044715, %v1953_v26  ;;  %v2069_v27 = vmul.f32 0.044715, %v2060_v5 }
 0xb01   : > { %v1975_v35 = vmul.f32 0.7978846, %v1971_v28  ;;  %v2082_v55 = vmul.f32 0.7978846, %v2078_v60  ;;  %v2079_v8 = vadd.f32 %v2075_v47, %v3656_v15  ;;  %v1972_v37 = vadd.f32 %v1968_v48, %v1949_v57 }
 0xb02   : > { %v1969_v31 = vmul.f32 %v1965_v14, %v1951_v6  ;;  %v2076_v12 = vmul.f32 %v2072_v62, %v3661_v25  ;;  %v1966_v30 = vmul.f32 %v1962_v52, %v1953_v26  ;;  %v2073_v40 = vmul.f32 %v2069_v27, %v2060_v5 }
 0xb03   : > { %v2083_v17 = vmul.f32 0.7978846, %v2079_v8  ;;  %2640 = vtanh.f32 %v1975_v35  ;;  %v1976_v58 = vmul.f32 0.7978846, %v1972_v37  ;;  %v1957_v38 = vmul.f32 0.5, %v1951_v6 }
 0xb04   : > { %v1973_v18 = vadd.f32 %v1969_v31, %v1951_v6  ;;  %v2080_v44 = vadd.f32 %v2076_v12, %v3661_v25  ;;  %v1970_v54 = vmul.f32 %v1966_v30, %v1953_v26  ;;  %2642 = vtanh.f32 %v2082_v55 }
 0xb05   : > { %v2077_v0 = vmul.f32 %v2073_v40, %v2060_v5  ;;  %2644 = vtanh.f32 %v2083_v17  ;;  %v1958_v61 = vmul.f32 0.5, %v1953_v26  ;;  %v2064_v43 = vmul.f32 0.5, %v3661_v25 }
 0xb06   : > { %v1977_v20 = vmul.f32 0.7978846, %v1973_v18  ;;  %v2084_v19 = vmul.f32 0.7978846, %v2080_v44  ;;  %v1974_v24 = vadd.f32 %v1970_v54, %v1953_v26  ;;  %2646 = vtanh.f32 %v1976_v58 }
 0xb07   : > { %v2081_v7 = vadd.f32 %v2077_v0, %v2060_v5  ;;  %v2063_v11 = vmul.f32 0.5, %v3656_v15  ;;  %v2065_v53 = vmul.f32 0.5, %v2060_v5  ;;  %v2062_v1 = vmul.f32 0.5, %v3652_v42  ;;  %v2183_v15 = vpop.trf.xlu0  ;;  %v2117_v5 = vpop.trf.xlu1 }
 0xb08   : > { %2648 = vtanh.f32 %v1977_v20  ;;  %v1978_v3 = vmul.f32 0.7978846, %v1974_v24 }
 0xb09   : > { %2650 = vtanh.f32 %v2084_v19  ;;  %v2085_v34 = vmul.f32 0.7978846, %v2081_v7 }
 0xb0a   : > { %2652 = vtanh.f32 %v1978_v3 }
 0xb0b   : > { %2654 = vtanh.f32 %v2085_v34  ;;  %v2237_v42 = vpop.permute.xlu1 %2236 }
 0xb0f   : > { %v2243_v8 = vpop.permute.xlu1 %2242 }
 0xb10   : > { %v2641_v13 = vpop.eup %2640 }
 0xb11   : > { %v2643_v21 = vpop.eup %2642  ;;  %v1983_v59 = vadd.f32 1.0, %v2641_v13 }
 0xb12   : > { %v2645_v45 = vpop.eup %2644  ;;  %v2090_v51 = vadd.f32 1.0, %v2643_v21 }
 0xb13   : > { %v2647_v29 = vpop.eup %2646  ;;  %v2091_v36 = vadd.f32 1.0, %v2645_v45  ;;  %v1987_v6 = vmul.f32 %v1983_v59, %v1955_v33 }
 0xb14   : > { %v1984_v2 = vadd.f32 1.0, %v2647_v29  ;;  %v2094_v26 = vmul.f32 %v2090_v51, %v2062_v1 }
 0xb15   : > { %v2649_v4 = vpop.eup %2648  ;;  %v2095_v28 = vmul.f32 %v2091_v36, %v2063_v11 }
 0xb16   : > { %v2651_v50 = vpop.eup %2650  ;;  %v1985_v39 = vadd.f32 1.0, %v2649_v4  ;;  %v1988_v16 = vmul.f32 %v1984_v2, %v1956_v32 }
 0xb17   : > { %v2653_v22 = vpop.eup %2652  ;;  %v2092_v9 = vadd.f32 1.0, %v2651_v50 }
 0xb18   : > { %v2655_v49 = vpop.eup %2654  ;;  %v1986_v63 = vadd.f32 1.0, %v2653_v22  ;;  %v1989_v57 = vmul.f32 %v1985_v39, %v1957_v38 }
 0xb19   : > { %v2093_v10 = vadd.f32 1.0, %v2655_v49  ;;  %v2096_v46 = vmul.f32 %v2092_v9, %v2064_v43 }
 0xb1a   : > { %v1990_v23 = vmul.f32 %v1986_v63, %v1958_v61  ;;  %v1991_v14 = vpack.c.bf16 %v1989_v57, %v1987_v6 }
 0xb1b   : > { %v2097_v60 = vmul.f32 %v2093_v10, %v2065_v53  ;;  %v2098_v25 = vpack.c.bf16 %v2096_v46, %v2094_v26 }
 0xb1c   : > { %v1992_v48 = vpack.c.bf16 %v1990_v23, %v1988_v16 }
 0xb1d   : > { %v2099_v47 = vpack.c.bf16 %v2097_v60, %v2095_v28 }
 0xb1e   : > { %2208 = vmatprep.subr.bf16.mxu0 %v1992_v48 }
 0xb1f   : > { %2142 = vmatprep.subr.bf16.mxu1 %v2099_v47  ;;  %2209 = vmatpush1.bf16.msra.mxu0 %v1991_v14 }
 0xb20   : > { %2143 = vmatpush1.bf16.msra.mxu1 %v2098_v25 }
 0xb22   : > { %2397 = vmatmul.mubr.msk.bf16.vlgmr.msra.gmra.mxu0 %vm902_vm0, %v2183_v15 }
 0xb23   : > { %2395 = vmatmul.mubr.msk.bf16.vlgmr.msra.gmra.mxu1 %vm902_vm0, %v2117_v5 }
 0xbe2   : > { %v2228_v62 = vpop.f32.mrf.mxu0 }
 0xbe3   : > { %v2162_v52 = vpop.f32.mrf.mxu1 }
 0xbe4   : > { %v2229_v27 = vadd.f32 %v2228_v62, %v2162_v52  ;;  %v2230_v35 = vpop.f32.mrf.mxu0 }
 0xbe5   : > { %v2164_v55 = vpop.f32.mrf.mxu1 }
 0xbe6   : > { %v2231_v31 = vadd.f32 %v2230_v35, %v2164_v55  ;;  %v2239_v12 = vadd.f32 %v2237_v42, %v2229_v27  ;;  %v2232_v30 = vpop.f32.mrf.mxu0 }
 0xbe7   : > { %v2166_v40 = vpop.f32.mrf.mxu1 }
 0xbe8   : > { %v2240_v17 = vadd.f32 %v2237_v42, %v2231_v31  ;;  %v2245_v37 = vmul.f32 %v2243_v8, %v2239_v12  ;;  %v2233_v18 = vpop.f32.mrf.mxu0 }
 0xbe9   : > { %v2167_v44 = vpop.f32.mrf.mxu1 }
 0xbea   : > { %v2246_v54 = vmul.f32 %v2243_v8, %v2240_v17  ;;  %v2247_v0 = vadd.f32 %v2245_v37, %v3605_v41 }
 0xbec   : > { %v2248_v58 = vadd.f32 %v2246_v54, %v3608_v56  ;;  %2249 = vst [vmem:[%s379_s29] sm:$0xff] %v2247_v0 }
 0xbee   : > { %2250 = vst [vmem:[%s379_s29 + $0x8] sm:$0xff] %v2248_v58 }
 0xbef   : > { %2672 = shalt.err (!%p2669_p3)
}
 0xbf0   : > { %s2673_s15 = scalar_lea.hbm %s2264_s26, 256  ;;  %s2677_s25 = scalar_lea.hbm %s3727_s11, 512 }
 0xbf1   : > { %p2674_p4 = scmp.ne.s32.totalorder %s2264_s26, %s2673_s15  ;;  %p2678_p9 = scmp.lt.s32.totalorder %s2264_s26, %s3727_s11 }
 0xbf2   : > { %p2679_p10 = scmp.lt.s32.totalorder %s2677_s25, %s2673_s15 }
 0xbf3   : > { %p2675_p7 = pnand %p2674_p4, %p2865_p5 }
 0xbf4   : > { %p2680_p11 = por %p2679_p10, %p2678_p9 }
 0xbf5   : > { %p2676_p8 = pneg %p2675_p7 }
 0xbf7   : > { %p2681_p12 = pnand %p2680_p11, %p2676_p8 }
 0xbf9   : > { %2684 = shalt.err (!%p2681_p12)
}
 0xbfa   : > { %2467 = dma.vmem_to_hbm [thread:$0]  (%p2865_p5), %s2267_s0, 256, %s2264_s26, %s2252_s24  }
 0xbfb PF: > { %p2473_p13 = scmp.ge.s32.totalorder %s2719_s20, 2  ;;  %s2278_s14 = sand.u32 1, %s2707_s17  }
 0xbfc   : > { %s2279_s30 = scalar_lea.sflag [#allocation3], %s2278_s14 }
 0xbfd   : > { %p2470_p0 = pnand %p2473_p13, %p2869_p6 }
 0xbff   : > { %p2471_p1 = pneg %p2470_p0 }
 0xc01   : > { %2702 = dma.done.wait (%p2471_p1), %s2279_s30, 256  }
 0xc02   : > { %2704 = vsyncadd (%p2471_p1), %s2279_s30, 4294967040  ;;  %s3753_s21 = sld [smem:[#allocation5_spill]]  ;;  %p21_p2 = scmp.ge.s32.totalorder %s2852_s23, 4  }
 0xc03   : > { %s3754_s19 = sld [smem:[#allocation6_spill]]  ;;  %s3755_s17 = smov %s2711_s18 }
 0xc04   : > { %s3757_s20 = smov %s2852_s23  ;;  %23 = sbr.rel (!%p21_p2) target bundleno = 5 (0x5), region = 106 }
 0xc08   : > { %s3756_s18 = smov %s3753_s21 }
 0xc09   :  { %2284 = vsyncpa [#allocation3], 1 }
 0xc0a   :  { %2286 = vsyncpa [#allocation3 + $0x1], 1 }

// kernel: tpu_custom_call.1
= control target key start
LH: loop header
LB: loop body
LE: loop exit
PB: predicated region body
PF: predicated region fallthrough
CT: control target
= control target key end

     0   :  { %s3716_s0 = inlined_call_operand.vmem [shape: f32[2,8,256], index: 0, kind: input, shape index: {}]   ;;  %s3717_s1 = inlined_call_operand.vmem [shape: f32[8,39], index: 1, kind: input, shape index: {}]   ;;  %s3718_s2 = inlined_call_operand.vmem [shape: f32[8,256], index: 2, kind: input, shape index: {}]   ;;  %s3719_s3 = inlined_call_operand.vmem [shape: bf16[1,8], index: 3, kind: input, shape index: {}]   ;;  %s3720_s4 = inlined_call_operand.vmem [shape: bf16[256,64], index: 4, kind: input, shape index: {}]   ;;  %s3721_s5 = inlined_call_operand.vmem [shape: bf16[256,64], index: 5, kind: input, shape index: {}]   ;;  %s3722_s6 = inlined_call_operand.vmem [shape: bf16[16,256], index: 6, kind: input, shape index: {}]   ;;  %s3723_s7 = inlined_call_operand.vmem [shape: bf16[16,256], index: 7, kind: input, shape index: {}]   ;;  %s3724_s8 = inlined_call_operand.vmem [shape: bf16[32,8], index: 8, kind: input, shape index: {}]   ;;  %s3725_s9 = inlined_call_operand.vmem [shape: f32[32,1], index: 9, kind: input, shape index: {}]   ;;  %s3726_s10 = inlined_call_operand.vmem [shape: bf16[32,8], index: 10, kind: input, shape index: {}]   ;;  %s3727_s11 = inlined_call_operand.hbm [shape: f32[2,8,256], index: 11, kind: output, shape index: {}]  }
   0x1   :  { %3736 = sst [smem:[#allocation12_spill]] %s3716_s0 }
   0x2   :  { %16 = vsyncpa [#allocation3], 0 }
   0x3   :  { %18 = vsyncpa [#allocation3 + $0x1], 0  ;;  %s2827_s17 = smov 0   ;;  %s2829_s18 = smov 0  }
   0x4   :  { %s2831_s19 = smov 0   ;;  %s2833_s20 = smov 0  }
   0x5 LB: > { %3737 = sst [smem:[#allocation5_spill]] %s2715_s19  ;;  %s2848_s21 = sadd.s32 4294967295, %s2719_s20   ;;  %s2719_s20 = sphi %s2833_s20, %s3757_s20   ;;  %s2715_s19 = sphi %s2831_s19, %s3754_s19   ;;  %s2711_s18 = sphi %s2829_s18, %s3756_s18   ;;  %s2707_s17 = sphi %s2827_s17, %s3755_s17  }
   0x6   : > { %s2325_s22 = sadd.s32 4294967294, %s2719_s20   ;;  %s2852_s23 = sadd.s32 1, %s2719_s20  }
   0x7   : > { %s267_s24 = sadd.s32 1, %s2715_s19  ;;  %s264_s25 = ssub.s32 %s2719_s20, %s2852_s23 }
   0x8   : > { %p277_p0 = scmp.ne.s32.totalorder %s2715_s19, %s2711_s18  ;;  %p265_p1 = scmp.eq.s32.totalorder %s264_s25, 0 }
   0x9   : > { %p278_p2 = scmp.eq.s32.totalorder %s2848_s21, 1  ;;  %p283_p3 = scmp.ne.s32.totalorder %s2711_s18, %s2707_s17 }
   0xa   : > { %p284_p4 = scmp.eq.s32.totalorder %s2325_s22, 1  ;;  %p2328_p7 = scmp.ge.s32.totalorder %s2719_s20, 1 }
   0xb   : > { %s2863_s26 = scalar_select %p265_p1, %s2715_s19, %s267_s24  }
   0xc   : > { %p2865_p5 = por %p278_p2, %p277_p0  ;;  %p2869_p6 = por %p284_p4, %p283_p3 }
   0xd   : > { %3738 = sst [smem:[#allocation6_spill]] %s2863_s26  ;;  %p340_p8 = scmp.lt.s32.totalorder %s2719_s20, 3 }
   0xf   : > { %p341_p9 = pnand %p2328_p7, %p340_p8 }
  0x11   : > { %344 = sbr.rel (%p341_p9) target bundleno = 3067 (0xbfb), region = 64 }
  0x16   : > { %p380_p10 = scmp.lt.s32.totalorder %s2848_s21, 1  ;;  %s3741_s0 = sld [smem:[#allocation12_spill]]  ;;  %v2895_v16 = vld [vmem:[%s3717_s1] sm:$0xff]  ;;  %v3729_v17 = vmov 0   ;;  %v2722_v18 = vmov 1   ;;  %v2592_v19 = vld [vmem:[%s3720_s4 + $0x78] sm:$0xff]  }
  0x17   : > { %2551 = vset.pattern.permute.xlu1 %v3729_v17  ;;  %v2593_v20 = vld [vmem:[%s3721_s5 + $0x78] sm:$0xff]   ;;  %v2596_v23 = vld [vmem:[%s3720_s4 + $0x70] sm:$0xff]   ;;  %2405 = vmatprep.subr.bf16.mxu0 %v2592_v19  ;;  %v2600_v27 = vld [vmem:[%s3720_s4 + $0x68] sm:$0xff]   ;;  %vm902_vm0 = vcmask 130048   ;;  %vm1440_vm1 = vcmask 1043456   ;;  %vm1436_vm2 = vcmask 64512  }
  0x18   : > { %s381_s29 = scalar_select %p380_p10, %s2848_s21, 1  ;;  %434 = vperm.xlu1 %2551, %v2895_v16   ;;  %v2594_v21 = vld [vmem:[%s3720_s4 + $0x38] sm:$0xff]   ;;  %v2597_v24 = vld [vmem:[%s3721_s5 + $0x70] sm:$0xff]   ;;  %2427 = vmatprep.subr.bf16.mxu1 %v2593_v20  ;;  %v2601_v28 = vld [vmem:[%s3721_s5 + $0x68] sm:$0xff]  }
  0x19   : > { %v2595_v22 = vld [vmem:[%s3721_s5 + $0x38] sm:$0xff]   ;;  %2406 = vmatpush3.bf16.msra.mxu0 %v2594_v21  ;;  %v2598_v25 = vld [vmem:[%s3720_s4 + $0x30] sm:$0xff]   ;;  %v2602_v29 = vld [vmem:[%s3720_s4 + $0x28] sm:$0xff]   ;;  %s2737_s24 = smov 16  }
  0x1a   : > { %s2403_s30 = sshll.u32 %s381_s29, 4  ;;  %2428 = vmatpush3.bf16.msra.mxu1 %v2595_v22  ;;  %v2599_v26 = vld [vmem:[%s3721_s5 + $0x30] sm:$0xff]   ;;  %2407 = vmatprep.subr.bf16.mxu0 %v2596_v23  ;;  %v2603_v30 = vld [vmem:[%s3721_s5 + $0x28] sm:$0xff]   ;;  %v2604_v31 = vld [vmem:[%s3720_s4 + $0x60] sm:$0xff]  }
  0x1b   : > { %2429 = vmatprep.subr.bf16.mxu1 %v2597_v24  ;;  %v2605_v32 = vld [vmem:[%s3721_s5 + $0x60] sm:$0xff]   ;;  %v2608_v35 = vld [vmem:[%s3720_s4 + $0x58] sm:$0xff]   ;;  %v2612_v39 = vld [vmem:[%s3720_s4 + $0x50] sm:$0xff]  }
  0x1c   : > { %s2880_s14 = scalar_lea.vmem %s3741_s0, %s2403_s30  ;;  %2552 = vset.pattern.permute.xlu1 %v2722_v18  ;;  %v2606_v33 = vld [vmem:[%s3720_s4 + $0x20] sm:$0xff]   ;;  %v2609_v36 = vld [vmem:[%s3721_s5 + $0x58] sm:$0xff]   ;;  %v2613_v40 = vld [vmem:[%s3721_s5 + $0x50] sm:$0xff]  }
  0x1d   : > { %v386_v0 = vld [vmem:[%s2880_s14] sm:$0xff]  ;;  %v387_v1 = vld [vmem:[%s2880_s14 + $0x8] sm:$0xff]  ;;  %440 = vperm.xlu1 %2552, %v2895_v16   ;;  %2408 = vmatpush3.bf16.msra.mxu0 %v2598_v25  ;;  %v2610_v37 = vld [vmem:[%s3720_s4 + $0x18] sm:$0xff]   ;;  %v2728_v25 = vmov 13  }
  0x1e   : > { %v397_v2 = vadd.f32 %v387_v1, %v386_v0  ;;  %2430 = vmatpush3.bf16.msra.mxu1 %v2599_v26  ;;  %2409 = vmatprep.subr.bf16.mxu0 %v2600_v27  ;;  %v2607_v34 = vld [vmem:[%s3721_s5 + $0x20] sm:$0xff]   ;;  %v2611_v38 = vld [vmem:[%s3721_s5 + $0x18] sm:$0xff]   ;;  %v2614_v41 = vld [vmem:[%s3720_s4 + $0x10] sm:$0xff]   ;;  %v2729_v26 = vmov 12   ;;  %v2730_v27 = vmov 14  }
  0x1f   : > { %2431 = vmatprep.subr.bf16.mxu1 %v2601_v28  ;;  %v2615_v42 = vld [vmem:[%s3721_s5 + $0x10] sm:$0xff]   ;;  %v2616_v46 = vld [vmem:[%s3720_s4 + $0x48] sm:$0xff]   ;;  %v2620_v52 = vld [vmem:[%s3720_s4 + $0x40] sm:$0xff]   ;;  %2554 = vset.pattern.permute.xlu0 %v2728_v25 }
  0x20   : > { %398 = vadd.xlane.f32.xlu0 %v397_v2  ;;  %v2617_v47 = vld [vmem:[%s3721_s5 + $0x48] sm:$0xff]   ;;  %v2621_v53 = vld [vmem:[%s3721_s5 + $0x40] sm:$0xff]  }
  0x21   : > { %2410 = vmatpush3.bf16.msra.mxu0 %v2602_v29  ;;  %v2618_v49 = vld [vmem:[%s3720_s4 + $0x8] sm:$0xff]   ;;  %v2622_v55 = vld [vmem:[%s3720_s4] sm:$0xff]   ;;  %2553 = vset.pattern.permute.xlu1 %v2729_v26 }
  0x22   : > { %2432 = vmatpush3.bf16.msra.mxu1 %v2603_v30  ;;  %2411 = vmatprep.subr.bf16.mxu0 %v2604_v31  ;;  %v2619_v50 = vld [vmem:[%s3721_s5 + $0x8] sm:$0xff]   ;;  %v2623_v56 = vld [vmem:[%s3721_s5] sm:$0xff]  }
  0x23   : > { %2433 = vmatprep.subr.bf16.mxu1 %v2605_v32 }
  0x25   : > { %2412 = vmatpush3.bf16.msra.mxu0 %v2606_v33 }
  0x26   : > { %2434 = vmatpush3.bf16.msra.mxu1 %v2607_v34  ;;  %2413 = vmatprep.subr.bf16.mxu0 %v2608_v35  ;;  %v1435_v35 = vld [vmem:[%s3719_s3] sm:$0x1] }
  0x27   : > { %2435 = vmatprep.subr.bf16.mxu1 %v2609_v36  ;;  %v2731_v36 = vmov 21  }
  0x29   : > { %2414 = vmatpush3.bf16.msra.mxu0 %v2610_v37  ;;  %v2732_v37 = vmov 23  }
  0x2a   : > { %2436 = vmatpush3.bf16.msra.mxu1 %v2611_v38  ;;  %2415 = vmatprep.subr.bf16.mxu0 %v2612_v39  ;;  %v2733_v38 = vmov 22   ;;  %v2734_v39 = vmov 15  }
  0x2b   : > { %2437 = vmatprep.subr.bf16.mxu1 %v2613_v40 }
  0x2d   : > { %2416 = vmatpush3.bf16.msra.mxu0 %v2614_v41 }
  0x2e   : > { %2438 = vmatpush3.bf16.msra.mxu1 %v2615_v42  ;;  %2417 = vmatprep.subr.bf16.mxu0 %v2616_v46 }
  0x2f   : > { %2439 = vmatprep.subr.bf16.mxu1 %v2617_v47 }
  0x31   : > { %2418 = vmatpush3.bf16.msra.mxu0 %v2618_v49 }
  0x32   : > { %2440 = vmatpush3.bf16.msra.mxu1 %v2619_v50  ;;  %2419 = vmatprep.subr.bf16.mxu0 %v2620_v52  ;;  %v2735_v50 = vmov 16  }
  0x33   : > { %2441 = vmatprep.subr.bf16.mxu1 %v2621_v53 }
  0x35   : > { %2420 = vmatpush3.bf16.msra.mxu0 %v2622_v55 }
  0x36   : > { %2442 = vmatpush3.bf16.msra.mxu1 %v2623_v56 }
  0x93   : > { %v435_v60 = vpop.permute.xlu1 %434 }
  0xa9   : > { %v399_v3 = vpop.xlane.xlu0 %398 }
  0xaa   : > { %v400_v4 = vrot.slane %v399_v3, 4 }
  0xac   : > { %v401_v5 = vadd.f32 %v400_v4, %v399_v3 }
  0xae   : > { %v402_v6 = vrot.slane %v401_v5, 2 }
  0xb0   : > { %v403_v7 = vadd.f32 %v402_v6, %v401_v5 }
  0xb2   : > { %v404_v8 = vrot.slane %v403_v7, 1 }
  0xb4   : > { %v405_v9 = vadd.f32 %v404_v8, %v403_v7  ;;  %v3019_v7 = vld [vmem:[%s3722_s6 + $0x4] ss:$8 sps:$4 sm:$0xff]  }
  0xb5   : > { %v3024_v8 = vld [vmem:[%s3723_s7 + $0x4] ss:$8 sps:$4 sm:$0xff]   ;;  %920 = vmatprep.subr.bf16.mxu0 %v3019_v7 }
  0xb6   : > { %2449 = vpush %v405_v9  ;;  %v3029_v9 = vld [vmem:[%s3722_s6] ss:$8 sps:$4 sm:$0xff]   ;;  %976 = vmatprep.subr.bf16.mxu1 %v3024_v8 }
  0xe7   : > { %s2450_s15 = spop %2449 }
  0xe8   : > { %s407_s16 = smul.f32 0.00048828125, %s2450_s15  ;;  %s2727_s15 = smov 80  }
  0xea   : > { %v408_v10 = vstv %s407_s16 }
  0xeb   : > { %v2884_v11 = vsub.f32 %v386_v0, %v408_v10  ;;  %v2886_v12 = vsub.f32 %v387_v1, %v408_v10  ;;  %v441_v0 = vpop.permute.xlu1 %440  ;;  %v3034_v10 = vld [vmem:[%s3723_s7] ss:$8 sps:$4 sm:$0xff]  }
  0xed   : > { %v411_v13 = vmul.f32 %v2884_v11, %v2884_v11  ;;  %v412_v14 = vmul.f32 %v2886_v12, %v2886_v12 }
  0xef   : > { %v413_v15 = vadd.f32 %v412_v14, %v411_v13 }
  0xf1   : > { %414 = vadd.xlane.f32.xlu0 %v413_v15 }
 0x17a   : > { %v415_v43 = vpop.xlane.xlu0 %414 }
 0x17b   : > { %v416_v44 = vrot.slane %v415_v43, 4 }
 0x17d   : > { %v417_v45 = vadd.f32 %v416_v44, %v415_v43 }
 0x17f   : > { %v418_v48 = vrot.slane %v417_v45, 2 }
 0x181   : > { %v419_v51 = vadd.f32 %v418_v48, %v417_v45 }
 0x183   : > { %v420_v54 = vrot.slane %v419_v51, 1 }
 0x185   : > { %v421_v57 = vadd.f32 %v420_v54, %v419_v51  ;;  %v2736_v51 = vmov 24  }
 0x187   : > { %2451 = vpush %v421_v57 }
 0x1b8   : > { %s2452_s0 = spop %2451 }
 0x1b9   : > { %s423_s13 = smul.f32 0.00048828125, %s2452_s0  ;;  %s2723_s0 = smov 112  }
 0x1bb   : > { %s424_s19 = sadd.f32 1e-05, %s423_s13  ;;  %s2724_s13 = smov 96  }
 0x1bd   : > { %v425_v58 = vstv %s424_s19  ;;  %s2725_s19 = smov 1  }
 0x1be   : > { %2634 = vrsqrt.f32 %v425_v58 }
 0x1cb   : > { %v2635_v59 = vpop.eup %2634 }
 0x1cc   : > { %2453 = vpush %v2635_v59 }
 0x1fd   : > { %s2454_s26 = spop %2453 }
 0x1fe   : > { %v428_v61 = vstv %s2454_s26  ;;  %s2726_s26 = smov 127  }
 0x1ff   : > { %v429_v62 = vmul.f32 %v428_v61, %v2884_v11  ;;  %v430_v63 = vmul.f32 %v428_v61, %v2886_v12 }
 0x201   : > { %v437_v1 = vmul.f32 %v435_v60, %v429_v62  ;;  %v438_v2 = vmul.f32 %v435_v60, %v430_v63 }
 0x203   : > { %v2998_v3 = vadd.f32 %v441_v0, %v437_v1  ;;  %v3000_v4 = vadd.f32 %v441_v0, %v438_v2 }
 0x205   : > { %3742 = vst [vmem:[#allocation7_spill] sm:$0xff] %v3000_v4  ;;  %v3004_v5 = vpack.c.bf16 %v3000_v4, %v3000_v4  ;;  %v3008_v6 = vpack.c.bf16 %v2998_v3, %v2998_v3 }
 0x207   : > { %712 = vmatprep.mubr.bf16.mxu0 %v3004_v5  ;;  %880 = vmatprep.mubr.bf16.mxu1 %v3004_v5  ;;  %v1442_v34 = vsel %vm1440_vm1, %v3008_v6, 0 }
 0x208   : > { %713 = vmatmul.mubr.bf16.vlgmr.msra.gmra.mxu0 %v3008_v6  ;;  %881 = vmatmul.mubr.bf16.vlgmr.msra.gmra.mxu1 %v3008_v6 }
 0x209   : > { %938 = vmatprep.mubr.bf16.mxu0 %v3729_v17  ;;  %994 = vmatprep.mubr.bf16.mxu1 %v3729_v17 }
 0x20a   : > { %921 = vmatpush1.bf16.msra.mxu0 %v3029_v9  ;;  %977 = vmatpush1.bf16.msra.mxu1 %v3034_v10 }
 0x20b   : > { %1025 = vmatprep.subr.bf16.mxu0 %v3019_v7  ;;  %1072 = vmatprep.subr.bf16.mxu1 %v3024_v8 }
 0x2c8   : > { %v2421_v11 = vpop.f32.mrf.mxu0  ;;  %v2443_v12 = vpop.f32.mrf.mxu1 }
 0x2ca   : > { %v2422_v13 = vpop.f32.mrf.mxu0  ;;  %v2444_v14 = vpop.f32.mrf.mxu1 }
 0x2cb   : > { %v2423_v15 = vadd.f32 %v2422_v13, %v2421_v11  ;;  %v2445_v18 = vadd.f32 %v2444_v14, %v2443_v12  ;;  %v451_v12 = vlaneseq }
 0x2cc   : > { %v2424_v19 = vpop.f32.mrf.mxu0  ;;  %v2446_v20 = vpop.f32.mrf.mxu1 }
 0x2cd   : > { %v888_v21 = vpack.c.bf16 %v2423_v15, %v2423_v15  ;;  %v889_v22 = vpack.c.bf16 %v2445_v18, %v2445_v18  ;;  %v458_v25 = vshrl.u32 %v451_v12, 7 }
 0x2ce   : > { %v2425_v23 = vpop.f32.mrf.mxu0  ;;  %v2447_v24 = vpop.f32.mrf.mxu1 }
 0x2cf   : > { %1053 = vrot.lane.b32.xlu1 %v889_v22, %s2723_s0  ;;  %2373 = vmatmul.mubr.msk.bf16.vlgmr.msra.gmra.mxu1 %vm902_vm0, %v889_v22 }
 0x2d0   : > { %1006 = vrot.lane.b32.xlu0 %v888_v21, %s2723_s0  ;;  %2370 = vmatmul.mubr.msk.bf16.vlgmr.msra.gmra.mxu0 %vm902_vm0, %v888_v21 }
 0x2d1   : > { %1026 = vmatpush1.bf16.msra.mxu0 %v3029_v9  ;;  %1073 = vmatpush1.bf16.msra.mxu1 %v3034_v10 }
 0x2d2   : > { %1090 = vmatprep.mubr.bf16.mxu1 %v3729_v17  ;;  %1043 = vmatprep.mubr.bf16.mxu0 %v3729_v17 }
 0x2d3   : > { %1103 = vrot.lane.b32.xlu1 %v888_v21, %s2724_s13  ;;  %1122 = vmatprep.subr.bf16.mxu0 %v3019_v7 }
 0x2d4   : > { %449 = vrot.lane.b32.xlu0 %v3000_v4, %s2725_s19  ;;  %1168 = vmatprep.subr.bf16.mxu1 %v3024_v8 }
 0x2d7   : > { %1149 = vrot.lane.b32.xlu1 %v889_v22, %s2724_s13 }
 0x2d8   : > { %473 = vrot.lane.b32.xlu0 %v3000_v4, %s2726_s26 }
 0x2db   : > { %1199 = vrot.lane.b32.xlu1 %v888_v21, %s2727_s15 }
 0x2dc   : > { %1334 = vperm.xlu0 %2554, %v2895_v16  }
 0x2df   : > { %1245 = vrot.lane.b32.xlu1 %v889_v22, %s2727_s15 }
 0x2e0   : > { %2557 = vset.pattern.permute.xlu0 %v2730_v27 }
 0x2e1   : > { %1350 = vperm.xlu0 %2557, %v2895_v16  }
 0x2e3   : > { %447 = vrot.lane.b32.xlu1 %v2998_v3, %s2725_s19 }
 0x2e5   : > { %2558 = vset.pattern.permute.xlu0 %v2732_v37 }
 0x2e6   : > { %1553 = vperm.xlu0 %2558, %v2895_v16  }
 0x2e7   : > { %471 = vrot.lane.b32.xlu1 %v2998_v3, %s2726_s26 }
 0x2ea   : > { %2559 = vset.pattern.permute.xlu0 %v2734_v39  ;;  %v2738_v39 = vmov 25  }
 0x2eb   : > { %1320 = vperm.xlu1 %2553, %v2895_v16   ;;  %1358 = vperm.xlu0 %2559, %v2895_v16  }
 0x2ef   : > { %2555 = vset.pattern.permute.xlu1 %v2731_v36  ;;  %2560 = vset.pattern.permute.xlu0 %v2736_v51  ;;  %v3149_v51 = vsub.s32 1, %v458_v25 }
 0x2f0   : > { %1523 = vperm.xlu1 %2555, %v2895_v16  }
 0x2f4   : > { %2556 = vset.pattern.permute.xlu1 %v2733_v38 }
 0x2f5   : > { %1537 = vperm.xlu1 %2556, %v2895_v16  }
 0x2f9   : > { %2561 = vset.pattern.permute.xlu1 %v2735_v50 }
 0x341   : > { %v1054_v28 = vpop.permute.xlu1 %1053 }
 0x342   : > { %v1007_v29 = vpop.permute.xlu0 %1006  ;;  %2375 = vmatmul.mubr.msk.bf16.vlgmr.msra.gmra.mxu1 %vm902_vm0, %v1054_v28 }
 0x343   : > { %2374 = vmatmul.mubr.msk.bf16.vlgmr.msra.gmra.mxu0 %vm902_vm0, %v1007_v29  ;;  %1169 = vmatpush1.bf16.msra.mxu1 %v3034_v10 }
 0x344   : > { %1123 = vmatpush1.bf16.msra.mxu0 %v3029_v9  ;;  %1186 = vmatprep.mubr.bf16.mxu1 %v3729_v17 }
 0x345   : > { %v1104_v30 = vpop.permute.xlu1 %1103  ;;  %1140 = vmatprep.mubr.bf16.mxu0 %v3729_v17  ;;  %1218 = vmatprep.subr.bf16.mxu0 %v3019_v7 }
 0x346   : > { %1264 = vmatprep.subr.bf16.mxu1 %v3024_v8 }
 0x349   : > { %v1150_v31 = vpop.permute.xlu1 %1149 }
 0x34a   : > { %2377 = vmatmul.mubr.msk.bf16.vlgmr.msra.gmra.mxu1 %vm902_vm0, %v1150_v31  ;;  %v3102_v31 = vsub.s32 0, %v458_v25 }
 0x34b   : > { %2376 = vmatmul.mubr.msk.bf16.vlgmr.msra.gmra.mxu0 %vm902_vm0, %v1104_v30  ;;  %1265 = vmatpush1.bf16.msra.mxu1 %v3034_v10 }
 0x34c   : > { %1219 = vmatpush1.bf16.msra.mxu0 %v3029_v9  ;;  %1282 = vmatprep.mubr.bf16.mxu1 %v3729_v17 }
 0x34d   : > { %2380 = vmatprep.subr.msk.bf16.mxu0 %vm1440_vm1, %v3004_v5  ;;  %v1200_v32 = vpop.permute.xlu1 %1199  ;;  %1236 = vmatprep.mubr.bf16.mxu0 %v3729_v17 }
 0x351   : > { %v1246_v33 = vpop.permute.xlu1 %1245 }
 0x352   : > { %2379 = vmatmul.mubr.msk.bf16.vlgmr.msra.gmra.mxu1 %vm902_vm0, %v1246_v33 }
 0x353   : > { %2378 = vmatmul.mubr.msk.bf16.vlgmr.msra.gmra.mxu0 %vm902_vm0, %v1200_v32  ;;  %1944 = vmatprep.mubr.bf16.mxu1 %v3729_v17 }
 0x354   : > { %1462 = vmatpush1.bf16.msra.mxu0 %v1442_v34  ;;  %1479 = vmatprep.mubr.bf16.mxu0 %v3729_v17 }
 0x35b   : > { %2381 = vmatmul.mubr.msk.bf16.vlgmr.msra.gmra.mxu0 %vm1436_vm2, %v1435_v35 }
 0x35c   : > { %2051 = vmatprep.mubr.bf16.mxu0 %v3729_v17 }
 0x38f   : > { %v996_v40 = vpop.f32.mrf.mxu1 }
 0x390   : > { %v940_v41 = vpop.f32.mrf.mxu0 }
 0x391   : > { %v1003_v42 = vmul.f32 %v996_v40, %v940_v41  ;;  %v998_v43 = vpop.f32.mrf.mxu1  ;;  %v2739_v40 = vmov 17   ;;  %v2740_v41 = vmov 26  }
 0x392   : > { %v942_v44 = vpop.f32.mrf.mxu0 }
 0x393   : > { %v1004_v45 = vmul.f32 %v998_v43, %v942_v44  ;;  %v1000_v46 = vpop.f32.mrf.mxu1  ;;  %v448_v43 = vpop.permute.xlu1 %447  ;;  %v2741_v44 = vmov 27  }
 0x394   : > { %v944_v47 = vpop.f32.mrf.mxu0  ;;  %v450_v46 = vpop.permute.xlu0 %449 }
 0x395   : > { %v1001_v48 = vpop.f32.mrf.mxu1  ;;  %v2332_v47 = vld [vmem:[%s3718_s2 + $0x1] ss:$8 sm:$0x3] }
 0x396   : > { %v945_v49 = vpop.f32.mrf.mxu0  ;;  %v2333_v48 = vld [vmem:[%s3718_s2 + $0x2] ss:$8 sm:$0x3]  ;;  %v3147_v50 = vrot.slane %v2332_v47, %v3102_v31 }
 0x397   : > { %v2743_v49 = vmov 19  }
 0x398   : > { %3743 = vst [vmem:[#allocation8_spill] sm:$0xff] %v3147_v50 }
 0x402   : > { %v1092_v52 = vpop.f32.mrf.mxu1 }
 0x403   : > { %v1045_v53 = vpop.f32.mrf.mxu0 }
 0x404   : > { %v1094_v54 = vpop.f32.mrf.mxu1  ;;  %v1099_v0 = vmul.f32 %v1092_v52, %v1045_v53  ;;  %v472_v52 = vpop.permute.xlu1 %471 }
 0x405   : > { %v1047_v55 = vpop.f32.mrf.mxu0 }
 0x406   : > { %v1096_v56 = vpop.f32.mrf.mxu1  ;;  %v1101_v8 = vadd.f32 %v1099_v0, %v1003_v42  ;;  %v1100_v9 = vmul.f32 %v1094_v54, %v1047_v55  ;;  %v3135_v42 = vand.u32 127, %v451_v12  ;;  %v474_v54 = vpop.permute.xlu0 %473  ;;  %v3158_v55 = vrot.slane %v2333_v48, %v3102_v31 }
 0x407   : > { %v1049_v57 = vpop.f32.mrf.mxu0 }
 0x408   : > { %v1097_v58 = vpop.f32.mrf.mxu1  ;;  %v1102_v20 = vadd.f32 %v1100_v9, %v1004_v45  ;;  %v2742_v45 = vmov 18   ;;  %vm453_vm3 = vcmp.lt.s32.totalorder %v3135_v42, 1  ;;  %vm475_vm4 = vcmp.lt.s32.totalorder %v3135_v42, 127  ;;  %3744 = vst [vmem:[#allocation9_spill] sm:$0xff] %v3158_v55 }
 0x409   : > { %v1050_v59 = vpop.f32.mrf.mxu0  ;;  %v455_v53 = vsel %vm453_vm3, %v450_v46, %v448_v43  ;;  %v476_v56 = vsel %vm475_vm4, %v472_v52, %v474_v54  ;;  %v3163_v57 = vrot.slane %v2332_v47, %v3149_v51  ;;  %v477_v0 = vsel %vm475_vm4, %v474_v54, %v472_v52 }
 0x40a   : > { %v1188_v60 = vpop.f32.mrf.mxu1  ;;  %v467_v58 = vmul.f32 %v3147_v50, %v455_v53  ;;  %v2744_v59 = vmov 28   ;;  %v3199_v12 = vpop.permute.xlu0 %1334  ;;  %vm497_vm5 = vcmp.lt.s32.totalorder %v3135_v42, 16  ;;  %vm519_vm6 = vcmp.lt.s32.totalorder %v3135_v42, 112 }
 0x40b   : > { %v1142_v61 = vpop.f32.mrf.mxu0  ;;  %3745 = vst [vmem:[#allocation10_spill] sm:$0xff] %v3163_v57 }
 0x40c   : > { %v1190_v62 = vpop.f32.mrf.mxu1  ;;  %v1195_v5 = vmul.f32 %v1188_v60, %v1142_v61  ;;  %v454_v60 = vsel %vm453_vm3, %v448_v43, %v450_v46  ;;  %v2745_v61 = vmov 9  }
 0x40d   : > { %v1144_v63 = vpop.f32.mrf.mxu0 }
 0x40e   : > { %v1192_v1 = vpop.f32.mrf.mxu1  ;;  %v1197_v13 = vadd.f32 %v1195_v5, %v1101_v8  ;;  %v1196_v14 = vmul.f32 %v1190_v62, %v1144_v63  ;;  %v3172_v62 = vrot.slane %v2333_v48, %v3149_v51  ;;  %v489_v63 = vmul.f32 %v3158_v55, %v476_v56 }
 0x40f   : > { %v1146_v2 = vpop.f32.mrf.mxu0  ;;  %v468_v1 = vmul.f32 %v3163_v57, %v454_v60  ;;  %v2746_v5 = vmov 20  }
 0x410   : > { %v1193_v6 = vpop.f32.mrf.mxu1  ;;  %v1198_v26 = vadd.f32 %v1196_v14, %v1102_v20  ;;  %3746 = vst [vmem:[#allocation11_spill] sm:$0xff] %v3172_v62  ;;  %v469_v2 = vadd.f32 %v467_v58, %v2998_v3  ;;  %v3203_v14 = vpop.permute.xlu1 %1320 }
 0x411   : > { %v1147_v7 = vpop.f32.mrf.mxu0  ;;  %v490_v6 = vmul.f32 %v3172_v62, %v477_v0  ;;  %v470_v8 = vadd.f32 %v468_v1, %v3000_v4 }
 0x412   : > { %v1284_v10 = vpop.f32.mrf.mxu1  ;;  %v3182_v7 = vadd.f32 %v489_v63, %v469_v2 }
 0x413   : > { %v1238_v11 = vpop.f32.mrf.mxu0  ;;  %v3188_v9 = vadd.f32 %v490_v6, %v470_v8 }
 0x414   : > { %v1291_v15 = vmul.f32 %v1284_v10, %v1238_v11  ;;  %v1286_v18 = vpop.f32.mrf.mxu1  ;;  %v2747_v10 = vmov 29   ;;  %v2748_v11 = vmov 8  }
 0x415   : > { %v1240_v19 = vpop.f32.mrf.mxu0 }
 0x416   : > { %v3094_v21 = vadd.f32 %v1291_v15, %v1197_v13  ;;  %v1292_v22 = vmul.f32 %v1286_v18, %v1240_v19  ;;  %v1288_v23 = vpop.f32.mrf.mxu1  ;;  %v3201_v13 = vpop.permute.xlu0 %1350 }
 0x417   : > { %v1242_v24 = vpop.f32.mrf.mxu0  ;;  %v3207_v18 = vpop.permute.xlu1 %1523 }
 0x418   : > { %1325 = vrot.lane.b32.xlu0 %v3094_v21, %s2737_s24  ;;  %1295 = vrot.lane.b32.xlu1 %v3094_v21, %s2725_s19  ;;  %v1289_v27 = vpop.f32.mrf.mxu1  ;;  %v3100_v29 = vadd.f32 %v1292_v22, %v1198_v26 }
 0x419   : > { %v1243_v28 = vpop.f32.mrf.mxu0 }
 0x41a   : > { %v3205_v15 = vpop.permute.xlu0 %1553 }
 0x41b   : > { %v1481_v30 = vpop.f32.mrf.mxu0  ;;  %v3209_v19 = vpop.permute.xlu1 %1537 }
 0x41c   : > { %1303 = vrot.lane.b32.xlu1 %v3094_v21, %s2726_s26  ;;  %1297 = vrot.lane.b32.xlu0 %v3100_v29, %s2725_s19  ;;  %v1491_v33 = vrot.slane %v1481_v30, %v3102_v31 }
 0x41d   : > { %v1483_v32 = vpop.f32.mrf.mxu0 }
 0x41e   : > { %v3114_v36 = vmul.f32 %v1491_v33, %v2998_v3  ;;  %v1495_v37 = vrot.slane %v1483_v32, %v3102_v31  ;;  %v1359_v20 = vpop.permute.xlu0 %1358 }
 0x41f   : > { %v1485_v34 = vpop.f32.mrf.mxu0 }
 0x420   : > { %1327 = vrot.lane.b32.xlu1 %v3100_v29, %s2737_s24  ;;  %1305 = vrot.lane.b32.xlu0 %v3100_v29, %s2726_s26  ;;  %v3122_v38 = vmul.f32 %v1495_v37, %v3000_v4 }
 0x421   : > { %v1486_v35 = vpop.f32.mrf.mxu0 }
 0x424   : > { %1528 = vrot.lane.b32.xlu0 %v3114_v36, %s2737_s24  ;;  %1498 = vrot.lane.b32.xlu1 %v3114_v36, %s2725_s19 }
 0x428   : > { %1506 = vrot.lane.b32.xlu1 %v3114_v36, %s2726_s26  ;;  %1500 = vrot.lane.b32.xlu0 %v3122_v38, %s2725_s19 }
 0x42c   : > { %1366 = vperm.xlu1 %2561, %v2895_v16   ;;  %1508 = vrot.lane.b32.xlu0 %v3122_v38, %s2726_s26 }
 0x430   : > { %2562 = vset.pattern.permute.xlu1 %v2738_v39  ;;  %1561 = vperm.xlu0 %2560, %v2895_v16  }
 0x431   : > { %1569 = vperm.xlu1 %2562, %v2895_v16  }
 0x434   : > { %2563 = vset.pattern.permute.xlu0 %v2739_v40 }
 0x435   : > { %2564 = vset.pattern.permute.xlu1 %v2740_v41  ;;  %1374 = vperm.xlu0 %2563, %v2895_v16  }
 0x436   : > { %1577 = vperm.xlu1 %2564, %v2895_v16  }
 0x439   : > { %2566 = vset.pattern.permute.xlu0 %v2741_v44 }
 0x43a   : > { %2565 = vset.pattern.permute.xlu1 %v2742_v45  ;;  %1593 = vperm.xlu0 %2566, %v2895_v16  }
 0x43b   : > { %1390 = vperm.xlu1 %2565, %v2895_v16  }
 0x43e   : > { %2567 = vset.pattern.permute.xlu0 %v2743_v49 }
 0x43f   : > { %1397 = vrot.lane.b32.xlu1 %v3094_v21, %s2723_s0  ;;  %1406 = vperm.xlu0 %2567, %v2895_v16  }
 0x440   : > { %2572 = vset.pattern.permute.xlu1 %v2745_v61 }
 0x443   : > { %1399 = vrot.lane.b32.xlu1 %v3100_v29, %s2723_s0  ;;  %2568 = vset.pattern.permute.xlu0 %v2744_v59 }
 0x444   : > { %1609 = vperm.xlu0 %2568, %v2895_v16  }
 0x447   : > { %1600 = vrot.lane.b32.xlu1 %v3114_v36, %s2723_s0 }
 0x448   : > { %2569 = vset.pattern.permute.xlu0 %v2746_v5 }
 0x449   : > { %1422 = vperm.xlu0 %2569, %v2895_v16  }
 0x44b   : > { %493 = vrot.lane.b32.xlu1 %v3182_v7, %s2737_s24 }
 0x44d   : > { %2570 = vset.pattern.permute.xlu0 %v2747_v10 }
 0x44e   : > { %1625 = vperm.xlu0 %2570, %v2895_v16  }
 0x44f   : > { %495 = vrot.lane.b32.xlu1 %v3188_v9, %s2737_s24 }
 0x452   : > { %2571 = vset.pattern.permute.xlu0 %v2748_v11 }
 0x453   : > { %1530 = vrot.lane.b32.xlu1 %v3122_v38, %s2737_s24 }
 0x457   : > { %1602 = vrot.lane.b32.xlu1 %v3122_v38, %s2723_s0 }
 0x45b   : > { %517 = vrot.lane.b32.xlu1 %v3188_v9, %s2723_s0 }
 0x48a   : > { %v3211_v22 = vpop.permute.xlu0 %1325  ;;  %v1296_v23 = vpop.permute.xlu1 %1295 }
 0x48e   : > { %v1304_v24 = vpop.permute.xlu1 %1303  ;;  %v1298_v25 = vpop.permute.xlu0 %1297 }
 0x48f   : > { %v1299_v26 = vsel %vm453_vm3, %v1296_v23, %v1298_v25  ;;  %v1300_v27 = vsel %vm453_vm3, %v1298_v25, %v1296_v23 }
 0x490   : > { %v1301_v28 = vmul.f32 %v1300_v27, %v3147_v50  ;;  %v1302_v30 = vmul.f32 %v1299_v26, %v3163_v57 }
 0x492   : > { %v3219_v32 = vmul.f32 %v1359_v20, %v1301_v28  ;;  %v3221_v33 = vmul.f32 %v1359_v20, %v1302_v30  ;;  %v3223_v34 = vpop.permute.xlu1 %1327  ;;  %v1306_v35 = vpop.permute.xlu0 %1305  ;;  %1313 = vrot.lane.b32.xlu1 %v1302_v30, %s2737_s24  ;;  %1311 = vrot.lane.b32.xlu0 %v1301_v28, %s2737_s24 }
 0x493   : > { %v1307_v37 = vsel %vm475_vm4, %v1304_v24, %v1306_v35  ;;  %v1308_v40 = vsel %vm475_vm4, %v1306_v35, %v1304_v24 }
 0x494   : > { %v3230_v39 = vmul.f32 %v1307_v37, %v3158_v55  ;;  %v3241_v43 = vmul.f32 %v1308_v40, %v3172_v62  ;;  %v2334_v37 = vld [vmem:[%s3718_s2 + $0x3] ss:$8 sm:$0x3] }
 0x496   : > { %v3234_v41 = vpop.permute.xlu0 %1528  ;;  %1341 = vrot.lane.b32.xlu1 %v3230_v39, %s2737_s24  ;;  %515 = vrot.lane.b32.xlu0 %v3182_v7, %s2723_s0  ;;  %v1499_v44 = vpop.permute.xlu1 %1498 }
 0x49a   : > { %1343 = vrot.lane.b32.xlu1 %v3241_v43, %s2737_s24  ;;  %1413 = vrot.lane.b32.xlu0 %v3230_v39, %s2723_s0  ;;  %v1501_v45 = vpop.permute.xlu0 %1500  ;;  %v1507_v46 = vpop.permute.xlu1 %1506 }
 0x49b   : > { %v1503_v52 = vsel %vm453_vm3, %v1501_v45, %v1499_v44  ;;  %v1502_v56 = vsel %vm453_vm3, %v1499_v44, %v1501_v45 }
 0x49c   : > { %v3264_v54 = vmul.f32 %v1503_v52, %v3147_v50  ;;  %v3271_v58 = vmul.f32 %v1502_v56, %v3163_v57  ;;  %v1329_v52 = vsel %vm497_vm5, %v3211_v22, %v3223_v34  ;;  %v1330_v56 = vsel %vm497_vm5, %v3223_v34, %v3211_v22 }
 0x49e   : > { %1381 = vrot.lane.b32.xlu1 %v1301_v28, %s2723_s0  ;;  %v1509_v47 = vpop.permute.xlu0 %1508 }
 0x49f   : > { %v1510_v48 = vsel %vm475_vm4, %v1507_v46, %v1509_v47  ;;  %v1511_v60 = vsel %vm475_vm4, %v1509_v47, %v1507_v46  ;;  %v3336_v47 = vrot.slane %v2334_v37, %v3149_v51 }
 0x4a0   : > { %v3251_v49 = vmul.f32 %v1510_v48, %v3158_v55  ;;  %v3284_v63 = vmul.f32 %v1511_v60, %v3172_v62  ;;  %v3339_v48 = vrot.slane %v2334_v37, %v3102_v31 }
 0x4a1   : > { %v1332_v37 = vmul.f32 %v1329_v52, %v3336_v47 }
 0x4a2   : > { %1383 = vrot.lane.b32.xlu1 %v1302_v30, %s2723_s0  ;;  %1616 = vrot.lane.b32.xlu0 %v3251_v49, %s2723_s0 }
 0x4a6   : > { %1415 = vrot.lane.b32.xlu1 %v3241_v43, %s2723_s0  ;;  %1430 = vperm.xlu0 %2571, %v2895_v16  }
 0x4a7   : > { %v3261_v53 = vpop.permute.xlu1 %1366 }
 0x4aa   : > { %1514 = vrot.lane.b32.xlu1 %v3264_v54, %s2737_s24 }
 0x4ab   : > { %v3312_v20 = vpop.permute.xlu0 %1561 }
 0x4ac   : > { %v3273_v59 = vpop.permute.xlu1 %1569 }
 0x4ae   : > { %1516 = vrot.lane.b32.xlu1 %v3271_v58, %s2737_s24 }
 0x4b0   : > { %v1375_v23 = vpop.permute.xlu0 %1374 }
 0x4b1   : > { %v3279_v61 = vpop.permute.xlu1 %1577 }
 0x4b2   : > { %1544 = vrot.lane.b32.xlu1 %v3251_v49, %s2737_s24 }
 0x4b5   : > { %v3314_v24 = vpop.permute.xlu0 %1593 }
 0x4b6   : > { %v3286_v0 = vpop.permute.xlu1 %1390  ;;  %1546 = vrot.lane.b32.xlu1 %v3284_v63, %s2737_s24 }
 0x4ba   : > { %v3290_v1 = vpop.permute.xlu1 %1397  ;;  %1584 = vrot.lane.b32.xlu1 %v3264_v54, %s2723_s0  ;;  %v3316_v25 = vpop.permute.xlu0 %1406 }
 0x4be   : > { %v3294_v2 = vpop.permute.xlu1 %1399  ;;  %1586 = vrot.lane.b32.xlu1 %v3271_v58, %s2723_s0 }
 0x4c2   : > { %v3298_v5 = vpop.permute.xlu1 %1600  ;;  %1618 = vrot.lane.b32.xlu1 %v3284_v63, %s2723_s0 }
 0x4c6   : > { %v494_v6 = vpop.permute.xlu1 %493  ;;  %1633 = vperm.xlu1 %2572, %v2895_v16   ;;  %v3318_v16 = vpop.permute.xlu0 %1609 }
 0x4ca   : > { %v496_v8 = vpop.permute.xlu1 %495  ;;  %v3320_v27 = vpop.permute.xlu0 %1422 }
 0x4cb   : > { %v3306_v10 = vsel %vm497_vm5, %v494_v6, %v496_v8  ;;  %v3310_v11 = vsel %vm497_vm5, %v496_v8, %v494_v6 }
 0x4ce   : > { %v1531_v26 = vpop.permute.xlu1 %1530  ;;  %v3324_v30 = vpop.permute.xlu0 %1625 }
 0x4d2   : > { %v3322_v28 = vpop.permute.xlu1 %1602 }
 0x4d6   : > { %v3326_v35 = vpop.permute.xlu1 %517 }
 0x504   : > { %v1314_v40 = vpop.permute.xlu1 %1313  ;;  %v1312_v44 = vpop.permute.xlu0 %1311 }
 0x505   : > { %v1315_v45 = vsel %vm497_vm5, %v1312_v44, %v1314_v40  ;;  %v1316_v46 = vsel %vm497_vm5, %v1314_v40, %v1312_v44  ;;  %v1331_v40 = vmul.f32 %v1330_v56, %v3339_v48 }
 0x506   : > { %v1317_v60 = vmul.f32 %v1316_v46, %v3339_v48  ;;  %v1318_v6 = vmul.f32 %v1315_v45, %v3336_v47  ;;  %v1338_v45 = vmul.f32 %v3199_v12, %v1332_v37  ;;  %v1378_v37 = vmul.f32 %v1375_v23, %v3241_v43 }
 0x507   : > { %v1337_v34 = vmul.f32 %v3199_v12, %v1331_v40 }
 0x508   : > { %v1342_v8 = vpop.permute.xlu1 %1341  ;;  %v1323_v44 = vmul.f32 %v3203_v14, %v1317_v60  ;;  %v1324_v17 = vmul.f32 %v3203_v14, %v1318_v6 }
 0x50a   : > { %v1339_v52 = vadd.f32 %v1337_v34, %v1323_v44  ;;  %v1340_v57 = vadd.f32 %v1338_v45, %v1324_v17  ;;  %v1377_v17 = vmul.f32 %v1375_v23, %v3230_v39 }
 0x50c   : > { %v1344_v62 = vpop.permute.xlu1 %1343 }
 0x50d   : > { %v1345_v55 = vsel %vm497_vm5, %v1342_v8, %v1344_v62  ;;  %v1346_v22 = vsel %vm497_vm5, %v1344_v62, %v1342_v8  ;;  %v1369_v62 = vmul.f32 %v3261_v53, %v3094_v21  ;;  %v1370_v8 = vmul.f32 %v3261_v53, %v3100_v29  ;;  %v2335_v53 = vld [vmem:[%s3718_s2 + $0x4] ss:$8 sm:$0x3] }
 0x50e   : > { %v1347_v46 = vmul.f32 %v1346_v22, %v3339_v48  ;;  %v1348_v56 = vmul.f32 %v1345_v55, %v3336_v47 }
 0x510   : > { %v1353_v60 = vmul.f32 %v3201_v13, %v1347_v46  ;;  %v1354_v14 = vmul.f32 %v3201_v13, %v1348_v56  ;;  %v1382_v6 = vpop.permute.xlu1 %1381  ;;  %v3398_v56 = vrot.slane %v2335_v53, %v3149_v51 }
 0x512   : > { %v1355_v50 = vadd.f32 %v1353_v60, %v1339_v52  ;;  %v1356_v4 = vadd.f32 %v1354_v14, %v1340_v57  ;;  %v1564_v14 = vmul.f32 %v3312_v20, %v3264_v54  ;;  %v1401_v54 = vsel %vm519_vm6, %v3290_v1, %v3294_v2 }
 0x514   : > { %v1363_v12 = vadd.f32 %v3219_v32, %v1355_v50  ;;  %v1364_v40 = vadd.f32 %v3221_v33, %v1356_v4  ;;  %v1384_v55 = vpop.permute.xlu1 %1383  ;;  %v1532_v50 = vsel %vm497_vm5, %v3234_v41, %v1531_v26  ;;  %v1533_v32 = vsel %vm497_vm5, %v1531_v26, %v3234_v41 }
 0x515   : > { %v1534_v23 = vmul.f32 %v1533_v32, %v3339_v48  ;;  %v1535_v46 = vmul.f32 %v1532_v50, %v3336_v47  ;;  %v3401_v41 = vrot.slane %v2335_v53, %v3102_v31  ;;  %v1572_v50 = vmul.f32 %v3273_v59, %v3114_v36 }
 0x516   : > { %v1371_v44 = vadd.f32 %v1369_v62, %v1363_v12  ;;  %v1372_v13 = vadd.f32 %v1370_v8, %v1364_v40  ;;  %v1565_v62 = vmul.f32 %v3312_v20, %v3271_v58  ;;  %v1402_v58 = vsel %vm519_vm6, %v3294_v2, %v3290_v1 }
 0x517   : > { %v1540_v40 = vmul.f32 %v3209_v19, %v1534_v23  ;;  %v1385_v20 = vsel %vm519_vm6, %v1382_v6, %v1384_v55  ;;  %v1573_v32 = vmul.f32 %v3273_v59, %v3122_v38  ;;  %v1580_v1 = vmul.f32 %v3279_v61, %v3251_v49 }
 0x518   : > { %v3373_v22 = vadd.f32 %v1377_v17, %v1371_v44  ;;  %v3375_v57 = vadd.f32 %v1378_v37, %v1372_v13  ;;  %v3377_v34 = vpop.permute.xlu1 %1415  ;;  %v1541_v17 = vmul.f32 %v3209_v19, %v1535_v46  ;;  %v516_v37 = vpop.permute.xlu0 %515  ;;  %v1386_v19 = vsel %vm519_vm6, %v1384_v55, %v1382_v6 }
 0x519   : > { %v1581_v2 = vmul.f32 %v3279_v61, %v3284_v63  ;;  %v1403_v6 = vmul.f32 %v1401_v54, %v3401_v41  ;;  %v1404_v55 = vmul.f32 %v1402_v58, %v3398_v56  ;;  %v512_v36 = vmul.f32 %v3336_v47, %v3306_v10 }
 0x51a   : > { %v1387_v38 = vmul.f32 %v1385_v20, %v3401_v41  ;;  %v1388_v59 = vmul.f32 %v1386_v19, %v3398_v56  ;;  %v1604_v49 = vsel %vm519_vm6, %v3298_v5, %v3322_v28  ;;  %v1605_v61 = vsel %vm519_vm6, %v3322_v28, %v3298_v5 }
 0x51b   : > { %v520_v10 = vsel %vm519_vm6, %v516_v37, %v3326_v35  ;;  %v521_v23 = vsel %vm519_vm6, %v3326_v35, %v516_v37  ;;  %v1607_v19 = vmul.f32 %v1605_v61, %v3398_v56 }
 0x51c   : > { %v1515_v21 = vpop.permute.xlu1 %1514  ;;  %v1414_v63 = vpop.permute.xlu0 %1413 }
 0x51d   : > { %v1417_v35 = vsel %vm519_vm6, %v1414_v63, %v3377_v34 }
 0x520   : > { %v1517_v45 = vpop.permute.xlu1 %1516 }
 0x521   : > { %v1518_v29 = vsel %vm497_vm5, %v1515_v21, %v1517_v45  ;;  %v1519_v4 = vsel %vm497_vm5, %v1517_v45, %v1515_v21 }
 0x522   : > { %v1520_v33 = vmul.f32 %v1519_v4, %v3339_v48  ;;  %v1521_v39 = vmul.f32 %v1518_v29, %v3336_v47 }
 0x524   : > { %v1545_v43 = vpop.permute.xlu1 %1544  ;;  %v1526_v26 = vmul.f32 %v3207_v18, %v1520_v33  ;;  %v1527_v52 = vmul.f32 %v3207_v18, %v1521_v39 }
 0x526   : > { %v1542_v13 = vadd.f32 %v1540_v40, %v1526_v26  ;;  %v1543_v21 = vadd.f32 %v1541_v17, %v1527_v52 }
 0x528   : > { %v1547_v60 = vpop.permute.xlu1 %1546 }
 0x529   : > { %v1548_v8 = vsel %vm497_vm5, %v1545_v43, %v1547_v60  ;;  %v1549_v12 = vsel %vm497_vm5, %v1547_v60, %v1545_v43 }
 0x52a   : > { %v1550_v18 = vmul.f32 %v1549_v12, %v3339_v48  ;;  %v1551_v44 = vmul.f32 %v1548_v8, %v3336_v47  ;;  %v1418_v8 = vsel %vm519_vm6, %v3377_v34, %v1414_v63  ;;  %v1617_v12 = vpop.permute.xlu0 %1616  ;;  %v1606_v34 = vmul.f32 %v1604_v49, %v3401_v41 }
 0x52c   : > { %v1556_v45 = vmul.f32 %v3205_v15, %v1550_v18  ;;  %v1557_v29 = vmul.f32 %v3205_v15, %v1551_v44  ;;  %v1585_v4 = vpop.permute.xlu1 %1584  ;;  %v511_v15 = vmul.f32 %v3339_v48, %v3310_v11 }
 0x52e   : > { %v1558_v33 = vadd.f32 %v1556_v45, %v1542_v13  ;;  %v1559_v39 = vadd.f32 %v1557_v29, %v1543_v21  ;;  %v513_v54 = vadd.f32 %v511_v15, %v3182_v7  ;;  %v388_v13 = vld [vmem:[%s3718_s2] ss:$8 sm:$0x3]  ;;  %v534_v7 = vmul.f32 %v3398_v56, %v521_v23 }
 0x52f   : > { %v1419_v45 = vmul.f32 %v1417_v35, %v3401_v41  ;;  %v1420_v29 = vmul.f32 %v1418_v8, %v3398_v56  ;;  %v1613_v15 = vmul.f32 %v3318_v16, %v1607_v19 }
 0x530   : > { %v1566_v43 = vadd.f32 %v1564_v14, %v1558_v33  ;;  %v1567_v11 = vadd.f32 %v1565_v62, %v1559_v39  ;;  %v1587_v53 = vpop.permute.xlu1 %1586  ;;  %v1393_v14 = vmul.f32 %v3286_v0, %v1387_v38  ;;  %v1394_v62 = vmul.f32 %v3286_v0, %v1388_v59 }
 0x531   : > { %v1588_v46 = vsel %vm519_vm6, %v1585_v4, %v1587_v53  ;;  %v1589_v26 = vsel %vm519_vm6, %v1587_v53, %v1585_v4  ;;  %v514_v0 = vadd.f32 %v512_v36, %v3188_v9  ;;  %v1410_v33 = vmul.f32 %v3316_v25, %v1404_v55 }
 0x532   : > { %v1574_v52 = vadd.f32 %v1572_v50, %v1566_v43  ;;  %v1575_v5 = vadd.f32 %v1573_v32, %v1567_v11  ;;  %v1590_v28 = vmul.f32 %v1588_v46, %v3401_v41  ;;  %v1591_v60 = vmul.f32 %v1589_v26, %v3398_v56  ;;  %v1431_v11 = vpop.permute.xlu0 %1430 }
 0x533   : > { %v1395_v9 = vadd.f32 %v1393_v14, %v3373_v22  ;;  %v1396_v21 = vadd.f32 %v1394_v62, %v3375_v57  ;;  %v541_v39 = vrot.slane %v388_v13, %v3102_v31  ;;  %v545_v22 = vrot.slane %v388_v13, %v3149_v51  ;;  %v3747_v62 = vld [vmem:[#allocation7_spill] sm:$0xff] }
 0x534   : > { %v1582_v40 = vadd.f32 %v1580_v1, %v1574_v52  ;;  %v1583_v17 = vadd.f32 %v1581_v2, %v1575_v5  ;;  %v1596_v37 = vmul.f32 %v3314_v24, %v1590_v28  ;;  %v1597_v18 = vmul.f32 %v3314_v24, %v1591_v60  ;;  %v1619_v44 = vpop.permute.xlu1 %1618 }
 0x535   : > { %v1620_v58 = vsel %vm519_vm6, %v1617_v12, %v1619_v44  ;;  %v1621_v20 = vsel %vm519_vm6, %v1619_v44, %v1617_v12  ;;  %v533_v24 = vmul.f32 %v3401_v41, %v520_v10  ;;  %v1409_v2 = vmul.f32 %v3316_v25, %v1403_v6 }
 0x536   : > { %v1598_v4 = vadd.f32 %v1596_v37, %v1582_v40  ;;  %v1599_v50 = vadd.f32 %v1597_v18, %v1583_v17  ;;  %v1622_v32 = vmul.f32 %v1620_v58, %v3401_v41  ;;  %v1623_v1 = vmul.f32 %v1621_v20, %v3398_v56 }
 0x537   : > { %v1612_v57 = vmul.f32 %v3318_v16, %v1606_v34  ;;  %v535_v36 = vadd.f32 %v533_v24, %v513_v54  ;;  %v536_v38 = vadd.f32 %v534_v7, %v514_v0  ;;  %v1425_v59 = vmul.f32 %v3320_v27, %v1419_v45 }
 0x538   : > { %v1426_v49 = vmul.f32 %v3320_v27, %v1420_v29  ;;  %v1411_v61 = vadd.f32 %v1409_v2, %v1395_v9  ;;  %v1412_v63 = vadd.f32 %v1410_v33, %v1396_v21  ;;  %v1628_v6 = vmul.f32 %v3324_v30, %v1622_v32  ;;  %v3511_v9 = vld [vmem:[%s3717_s1] sm:$0xff] }
 0x539   : > { %v1629_v25 = vmul.f32 %v3324_v30, %v1623_v1  ;;  %v1614_v55 = vadd.f32 %v1612_v57, %v1598_v4  ;;  %v1615_v31 = vadd.f32 %v1613_v15, %v1599_v50  ;;  %v548_v43 = vmul.f32 %v541_v39, %v535_v36 }
 0x53a   : > { %v549_v51 = vmul.f32 %v545_v22, %v536_v38  ;;  %v1427_v53 = vadd.f32 %v1425_v59, %v1411_v61  ;;  %v1428_v10 = vadd.f32 %v1426_v49, %v1412_v63  ;;  %v2749_v24 = vmov 2  }
 0x53b   : > { %v1630_v16 = vadd.f32 %v1628_v6, %v1614_v55  ;;  %v1631_v23 = vadd.f32 %v1629_v25, %v1615_v31  ;;  %v550_v14 = vsub.f32 %v2998_v3, %v548_v43  ;;  %2573 = vset.pattern.permute.xlu0 %v2749_v24  ;;  %v2750_v7 = vmov 3  }
 0x53c   : > { %v1433_v26 = vadd.f32 %v1431_v11, %v1427_v53  ;;  %v1434_v52 = vadd.f32 %v1431_v11, %v1428_v10  ;;  %v551_v30 = vsub.f32 %v3747_v62, %v549_v51  ;;  %2574 = vset.pattern.permute.xlu1 %v2750_v7  ;;  %v2751_v21 = vmov 32   ;;  %v3750_v62 = vld [vmem:[#allocation9_spill] sm:$0xff] }
 0x53d   : > { %v2752_v45 = vmov 33   ;;  %v2753_v29 = vmov 36   ;;  %v2754_v22 = vmov 30   ;;  %v2755_v63 = vmov 37  }
 0x53e   : > { %v2756_v43 = vmov 31   ;;  %v2757_v51 = vmov 34   ;;  %v2758_v11 = vmov 35   ;;  %v2759_v53 = vmov 6  }
 0x541   : > { %v1634_v46 = vpop.permute.xlu1 %1633 }
 0x542   : > { %v1636_v5 = vadd.f32 %v1634_v46, %v1630_v16  ;;  %v1637_v27 = vadd.f32 %v1634_v46, %v1631_v23 }
 0x544   : > { %v1638_v28 = vadd.f32 %v1636_v5, %v1433_v26  ;;  %v1639_v60 = vadd.f32 %v1637_v27, %v1434_v52  ;;  %v3748_v26 = vld [vmem:[#allocation8_spill] sm:$0xff]  ;;  %v3749_v5 = vld [vmem:[#allocation10_spill] sm:$0xff] }
 0x546   : > { %v1640_v35 = vadd.f32 %v1638_v28, %v550_v14  ;;  %v1641_v8 = vadd.f32 %v1639_v60, %v551_v30 }
 0x548   : > { %v1642_v12 = vadd.f32 %v1641_v8, %v1640_v35 }
 0x54a   : > { %1643 = vadd.xlane.f32.xlu1 %v1642_v12  ;;  %v3751_v12 = vld [vmem:[#allocation11_spill] sm:$0xff] }
 0x55b   : > { %1683 = vperm.xlu1 %2574, %v3511_v9  }
 0x55f   : > { %2575 = vset.pattern.permute.xlu1 %v2754_v22 }
 0x5d3   : > { %v1644_v40 = vpop.xlane.xlu1 %1643 }
 0x5d4   : > { %v1645_v17 = vrot.slane %v1644_v40, 4 }
 0x5d6   : > { %v1646_v37 = vadd.f32 %v1645_v17, %v1644_v40  ;;  %v2761_v17 = vmov 10  }
 0x5d7   : > { %v1684_v61 = vpop.permute.xlu1 %1683 }
 0x5d8   : > { %v1647_v18 = vrot.slane %v1646_v37, 2 }
 0x5da   : > { %v1648_v44 = vadd.f32 %v1647_v18, %v1646_v37 }
 0x5dc   : > { %v1649_v54 = vrot.slane %v1648_v44, 1 }
 0x5de   : > { %v1650_v0 = vadd.f32 %v1649_v54, %v1648_v44 }
 0x5e0   : > { %2455 = vpush %v1650_v0 }
 0x611   : > { %s2456_s30 = spop %2455 }
 0x612   : > { %s1652_s12 = smul.f32 0.00048828125, %s2456_s30 }
 0x614   : > { %v1653_v58 = vstv %s1652_s12 }
 0x615   : > { %v1654_v20 = vsub.f32 %v1640_v35, %v1653_v58  ;;  %v1655_v34 = vsub.f32 %v1641_v8, %v1653_v58  ;;  %v2760_v8 = vmov 38  }
 0x617   : > { %v1656_v3 = vmul.f32 %v1654_v20, %v1654_v20  ;;  %v1657_v19 = vmul.f32 %v1655_v34, %v1655_v34 }
 0x619   : > { %v1658_v13 = vadd.f32 %v1657_v19, %v1656_v3 }
 0x61b   : > { %1659 = vadd.xlane.f32.xlu0 %v1658_v13 }
 0x631   : > { %1677 = vperm.xlu0 %2573, %v3511_v9  }
 0x635   : > { %2577 = vset.pattern.permute.xlu0 %v2751_v21 }
 0x636   : > { %1743 = vperm.xlu0 %2577, %v3511_v9  }
 0x63a   : > { %2578 = vset.pattern.permute.xlu0 %v2752_v45 }
 0x63b   : > { %1751 = vperm.xlu0 %2578, %v3511_v9  }
 0x63f   : > { %2581 = vset.pattern.permute.xlu0 %v2753_v29 }
 0x640   : > { %1783 = vperm.xlu0 %2581, %v3511_v9  }
 0x644   : > { %2582 = vset.pattern.permute.xlu0 %v2755_v63 }
 0x6a4   : > { %v1660_v4 = vpop.xlane.xlu0 %1659 }
 0x6a5   : > { %v1661_v50 = vrot.slane %v1660_v4, 4 }
 0x6a7   : > { %v1662_v32 = vadd.f32 %v1661_v50, %v1660_v4 }
 0x6a9   : > { %v1663_v1 = vrot.slane %v1662_v32, 2 }
 0x6ab   : > { %v1664_v2 = vadd.f32 %v1663_v1, %v1662_v32 }
 0x6ac   : > { %v1678_v38 = vpop.permute.xlu0 %1677 }
 0x6ad   : > { %v1665_v33 = vrot.slane %v1664_v2, 1 }
 0x6af   : > { %v1666_v39 = vadd.f32 %v1665_v33, %v1664_v2 }
 0x6b1   : > { %2457 = vpush %v1666_v39  ;;  %v1744_v54 = vpop.permute.xlu0 %1743 }
 0x6b6   : > { %v1752_v58 = vpop.permute.xlu0 %1751 }
 0x6e2   : > { %s2458_s16 = spop %2457 }
 0x6e3   : > { %s1668_s22 = smul.f32 0.00048828125, %s2458_s16  ;;  %s377_s16 = sand.u32 1, %s2711_s18  }
 0x6e5   : > { %s1669_s25 = sadd.f32 1e-05, %s1668_s22  ;;  %s2329_s22 = sshll.u32 %s377_s16, 4 }
 0x6e7   : > { %v1670_v57 = vstv %s1669_s25  ;;  %s2404_s25 = sshll.u32 %s2848_s21, 8  ;;  %s2766_s21 = smov [#allocation2]  }
 0x6e8   : > { %2636 = vrsqrt.f32 %v1670_v57  ;;  %s2663_s12 = sshll.u32 %s2766_s21, 4  ;;  %s2664_s12 = int_to_ptr.vmem [resolvable:$false] %s2663_s12 }
 0x6e9   : > { %s2665_s13 = scalar_lea.vmem %s2664_s12, 512 }
 0x6f5   : > { %v2637_v15 = vpop.eup %2636 }
 0x6f6   : > { %2459 = vpush %v2637_v15 }
 0x727   : > { %s2460_s29 = spop %2459 }
 0x728   : > { %v1673_v36 = vstv %s2460_s29  ;;  %s379_s29 = scalar_lea.vmem [#allocation2], %s2329_s22 }
 0x729   : > { %v1674_v59 = vmul.f32 %v1673_v36, %v1654_v20  ;;  %v1675_v49 = vmul.f32 %v1673_v36, %v1655_v34  ;;  %v1784_v34 = vpop.permute.xlu0 %1783 }
 0x72b   : > { %v1680_v6 = vmul.f32 %v1678_v38, %v1674_v59  ;;  %v1681_v25 = vmul.f32 %v1678_v38, %v1675_v49 }
 0x72d   : > { %v3518_v55 = vadd.f32 %v1684_v61, %v1680_v6  ;;  %v3524_v31 = vadd.f32 %v1684_v61, %v1681_v25 }
 0x72f   : > { %1718 = vrot.lane.b32.xlu0 %v3518_v55, %s2737_s24  ;;  %1688 = vrot.lane.b32.xlu1 %v3518_v55, %s2725_s19 }
 0x733   : > { %1690 = vrot.lane.b32.xlu1 %v3524_v31, %s2725_s19 }
 0x737   : > { %1696 = vrot.lane.b32.xlu1 %v3518_v55, %s2726_s26 }
 0x73b   : > { %1698 = vrot.lane.b32.xlu1 %v3524_v31, %s2726_s26 }
 0x73f   : > { %1713 = vperm.xlu1 %2575, %v3511_v9  }
 0x743   : > { %2576 = vset.pattern.permute.xlu1 %v2756_v43 }
 0x744   : > { %1727 = vperm.xlu1 %2576, %v3511_v9  }
 0x748   : > { %2579 = vset.pattern.permute.xlu1 %v2757_v51 }
 0x749   : > { %1759 = vperm.xlu1 %2579, %v3511_v9  }
 0x74d   : > { %2580 = vset.pattern.permute.xlu1 %v2758_v11 }
 0x74e   : > { %1767 = vperm.xlu1 %2580, %v3511_v9  }
 0x752   : > { %1720 = vrot.lane.b32.xlu1 %v3524_v31, %s2737_s24 }
 0x753   : > { %2585 = vset.pattern.permute.xlu1 %v2759_v53 }
 0x756   : > { %1790 = vrot.lane.b32.xlu1 %v3518_v55, %s2723_s0 }
 0x75a   : > { %1792 = vrot.lane.b32.xlu1 %v3524_v31, %s2723_s0 }
 0x7a1   : > { %v1689_v10 = vpop.permute.xlu1 %1688  ;;  %v1719_v19 = vpop.permute.xlu0 %1718 }
 0x7a5   : > { %v1691_v16 = vpop.permute.xlu1 %1690 }
 0x7a6   : > { %v1692_v23 = vsel %vm453_vm3, %v1689_v10, %v1691_v16  ;;  %v1693_v46 = vsel %vm453_vm3, %v1691_v16, %v1689_v10 }
 0x7a7   : > { %v1694_v52 = vmul.f32 %v1693_v46, %v3748_v26  ;;  %v1695_v27 = vmul.f32 %v1692_v23, %v3749_v5 }
 0x7a9   : > { %1704 = vrot.lane.b32.xlu0 %v1694_v52, %s2737_s24  ;;  %1706 = vrot.lane.b32.xlu1 %v1695_v27, %s2737_s24  ;;  %v1697_v28 = vpop.permute.xlu1 %1696  ;;  %v1754_v11 = vmul.f32 %v1752_v58, %v1694_v52  ;;  %v1755_v53 = vmul.f32 %v1752_v58, %v1695_v27 }
 0x7ad   : > { %1799 = vperm.xlu0 %2582, %v3511_v9   ;;  %v1699_v60 = vpop.permute.xlu1 %1698 }
 0x7ae   : > { %v1700_v14 = vsel %vm475_vm4, %v1697_v28, %v1699_v60  ;;  %v1701_v35 = vsel %vm475_vm4, %v1699_v60, %v1697_v28 }
 0x7af   : > { %v1702_v30 = vmul.f32 %v1700_v14, %v3750_v62  ;;  %v1703_v40 = vmul.f32 %v1701_v35, %v3751_v12 }
 0x7b1   : > { %1734 = vrot.lane.b32.xlu1 %v1702_v30, %s2737_s24  ;;  %2583 = vset.pattern.permute.xlu0 %v2760_v8 }
 0x7b2   : > { %1815 = vperm.xlu0 %2583, %v3511_v9  }
 0x7b5   : > { %1736 = vrot.lane.b32.xlu1 %v1703_v40, %s2737_s24 }
 0x7b6   : > { %2584 = vset.pattern.permute.xlu0 %v2761_v17 }
 0x7b7   : > { %1823 = vperm.xlu0 %2584, %v3511_v9  }
 0x7b9   : > { %1774 = vrot.lane.b32.xlu1 %v1694_v52, %s2723_s0 }
 0x7ba   : > { %v1714_v37 = vpop.permute.xlu1 %1713 }
 0x7bd   : > { %1776 = vrot.lane.b32.xlu1 %v1695_v27, %s2723_s0 }
 0x7bf   : > { %v1728_v18 = vpop.permute.xlu1 %1727 }
 0x7c1   : > { %1806 = vrot.lane.b32.xlu1 %v1702_v30, %s2723_s0 }
 0x7c4   : > { %v1760_v44 = vpop.permute.xlu1 %1759 }
 0x7c5   : > { %1808 = vrot.lane.b32.xlu1 %v1703_v40, %s2723_s0  ;;  %v1762_v23 = vmul.f32 %v1760_v44, %v3518_v55  ;;  %v1763_v46 = vmul.f32 %v1760_v44, %v3524_v31 }
 0x7c9   : > { %1829 = vperm.xlu1 %2585, %v3511_v9   ;;  %v1768_v0 = vpop.permute.xlu1 %1767 }
 0x7ca   : > { %v1770_v60 = vmul.f32 %v1768_v0, %v1702_v30 }
 0x7cd   : > { %v1721_v20 = vpop.permute.xlu1 %1720 }
 0x7ce   : > { %v1722_v29 = vsel %vm497_vm5, %v1719_v19, %v1721_v20  ;;  %v1723_v4 = vsel %vm497_vm5, %v1721_v20, %v1719_v19 }
 0x7cf   : > { %v1724_v2 = vmul.f32 %v1723_v4, %v3339_v48  ;;  %v1725_v33 = vmul.f32 %v1722_v29, %v3336_v47 }
 0x7d1   : > { %v1791_v3 = vpop.permute.xlu1 %1790  ;;  %v1730_v38 = vmul.f32 %v1728_v18, %v1724_v2  ;;  %v1731_v59 = vmul.f32 %v1728_v18, %v1725_v33 }
 0x7d5   : > { %v1793_v13 = vpop.permute.xlu1 %1792 }
 0x7d6   : > { %v1794_v30 = vsel %vm519_vm6, %v1791_v3, %v1793_v13 }
 0x7d7   : > { %v1796_v44 = vmul.f32 %v1794_v30, %v3401_v41 }
 0x81b   : > { %v1705_v24 = vpop.permute.xlu0 %1704  ;;  %v1707_v7 = vpop.permute.xlu1 %1706 }
 0x81c   : > { %v1708_v21 = vsel %vm497_vm5, %v1705_v24, %v1707_v7  ;;  %v1709_v45 = vsel %vm497_vm5, %v1707_v7, %v1705_v24 }
 0x81d   : > { %v1710_v50 = vmul.f32 %v1709_v45, %v3339_v48  ;;  %v1711_v32 = vmul.f32 %v1708_v21, %v3336_v47 }
 0x81f   : > { %v1716_v39 = vmul.f32 %v1714_v37, %v1710_v50  ;;  %v1717_v22 = vmul.f32 %v1714_v37, %v1711_v32 }
 0x821   : > { %v1732_v63 = vadd.f32 %v1730_v38, %v1716_v39  ;;  %v1733_v6 = vadd.f32 %v1731_v59, %v1717_v22 }
 0x823   : > { %v1735_v1 = vpop.permute.xlu1 %1734 }
 0x827   : > { %v1737_v57 = vpop.permute.xlu1 %1736 }
 0x828   : > { %v1738_v15 = vsel %vm497_vm5, %v1735_v1, %v1737_v57  ;;  %v1739_v36 = vsel %vm497_vm5, %v1737_v57, %v1735_v1  ;;  %v1800_v12 = vpop.permute.xlu0 %1799  ;;  %v2657_v57 = vld [vmem:[%s2880_s14] sm:$0xff] }
 0x829   : > { %v1740_v49 = vmul.f32 %v1739_v36, %v3339_v48  ;;  %v1741_v61 = vmul.f32 %v1738_v15, %v3336_v47  ;;  %v1771_v48 = vmul.f32 %v1768_v0, %v1703_v40  ;;  %v1795_v40 = vsel %vm519_vm6, %v1793_v13, %v1791_v3  ;;  %v2658_v15 = vld [vmem:[%s2880_s14 + $0x8] sm:$0xff] }
 0x82b   : > { %v1746_v25 = vmul.f32 %v1744_v54, %v1740_v49  ;;  %v1747_v43 = vmul.f32 %v1744_v54, %v1741_v61  ;;  %v1775_v51 = vpop.permute.xlu1 %1774  ;;  %v1797_v54 = vmul.f32 %v1795_v40, %v3398_v56 }
 0x82d   : > { %v1748_v10 = vadd.f32 %v1746_v25, %v1732_v63  ;;  %v1749_v16 = vadd.f32 %v1747_v43, %v1733_v6  ;;  %v1816_v20 = vpop.permute.xlu0 %1815  ;;  %v1803_v13 = vmul.f32 %v1800_v12, %v1797_v54 }
 0x82f   : > { %v1756_v26 = vadd.f32 %v1754_v11, %v1748_v10  ;;  %v1757_v5 = vadd.f32 %v1755_v53, %v1749_v16  ;;  %v1777_v28 = vpop.permute.xlu1 %1776 }
 0x830   : > { %v1778_v47 = vsel %vm519_vm6, %v1775_v51, %v1777_v28  ;;  %v1779_v14 = vsel %vm519_vm6, %v1777_v28, %v1775_v51 }
 0x831   : > { %v1764_v62 = vadd.f32 %v1762_v23, %v1756_v26  ;;  %v1765_v52 = vadd.f32 %v1763_v46, %v1757_v5  ;;  %v1780_v27 = vmul.f32 %v1778_v47, %v3401_v41  ;;  %v1781_v35 = vmul.f32 %v1779_v14, %v3398_v56 }
 0x832   : > { %v1824_v1 = vpop.permute.xlu0 %1823  ;;  %v2762_v23 = vmov 4   ;;  %v2763_v46 = vmov 5   ;;  %v3752_v26 = vmov 0  }
 0x833   : > { %v1772_v55 = vadd.f32 %v1770_v60, %v1764_v62  ;;  %v1773_v8 = vadd.f32 %v1771_v48, %v1765_v52  ;;  %v1807_v31 = vpop.permute.xlu1 %1806  ;;  %v1786_v17 = vmul.f32 %v1784_v34, %v1780_v27  ;;  %v1787_v37 = vmul.f32 %v1784_v34, %v1781_v35  ;;  %2586 = vset.pattern.permute.xlu0 %v2762_v23  ;;  %v1886_v52 = vld [vmem:[%s3725_s9] sm:$0xff]  ;;  %v1887_v35 = vld [vmem:[%s3725_s9 + $0x8] sm:$0xff] }
 0x834   : > { %v1802_v34 = vmul.f32 %v1800_v12, %v1796_v44  ;;  %2587 = vset.pattern.permute.xlu1 %v2763_v46  ;;  %v2633_v27 = vld [vmem:[%s3726_s10] sm:$0xff]  }
 0x835   : > { %v1788_v19 = vadd.f32 %v1786_v17, %v1772_v55  ;;  %v1789_v24 = vadd.f32 %v1787_v37, %v1773_v8  ;;  %v2387_v55 = vld [vmem:[%s3725_s9 + $0x10] sm:$0xff]  ;;  %v2388_v8 = vld [vmem:[%s3725_s9 + $0x18] sm:$0xff] }
 0x837   : > { %v1809_v18 = vpop.permute.xlu1 %1808  ;;  %v1804_v29 = vadd.f32 %v1802_v34, %v1788_v19  ;;  %v1805_v4 = vadd.f32 %v1803_v13, %v1789_v24  ;;  %v2631_v34 = vld [vmem:[%s3724_s8 + $0x8] sm:$0xff]   ;;  %v2764_v13 = vmov 11  }
 0x838   : > { %v1810_v0 = vsel %vm519_vm6, %v1807_v31, %v1809_v18  ;;  %v1811_v58 = vsel %vm519_vm6, %v1809_v18, %v1807_v31  ;;  %v2632_v31 = vld [vmem:[%s3726_s10 + $0x8] sm:$0xff]  }
 0x839   : > { %v1812_v7 = vmul.f32 %v1810_v0, %v3401_v41  ;;  %v1813_v3 = vmul.f32 %v1811_v58, %v3398_v56 }
 0x83b   : > { %v1818_v21 = vmul.f32 %v1816_v20, %v1812_v7  ;;  %v1819_v45 = vmul.f32 %v1816_v20, %v1813_v3  ;;  %v2630_v3 = vld [vmem:[%s3724_s8] sm:$0xff]  }
 0x83d   : > { %v1820_v50 = vadd.f32 %v1818_v21, %v1804_v29  ;;  %v1821_v32 = vadd.f32 %v1819_v45, %v1805_v4  ;;  %v2765_v21 = vmov 7  }
 0x83f   : > { %v1826_v42 = vadd.f32 %v1824_v1, %v1820_v50  ;;  %v1827_v2 = vadd.f32 %v1824_v1, %v1821_v32 }
 0x844   : > { %v1830_v33 = vpop.permute.xlu1 %1829 }
 0x845   : > { %v1832_v39 = vmul.f32 %v1830_v33, %v1826_v42  ;;  %v1833_v22 = vmul.f32 %v1830_v33, %v1827_v2 }
 0x847   : > { %v3605_v41 = vadd.f32 %v2657_v57, %v1832_v39  ;;  %v3608_v56 = vadd.f32 %v2658_v15, %v1833_v22 }
 0x849   : > { %v1836_v36 = vadd.f32 %v3608_v56, %v3605_v41 }
 0x84b   : > { %1837 = vadd.xlane.f32.xlu1 %v1836_v36 }
 0x85c   : > { %1877 = vperm.xlu1 %2587, %v3511_v9  }
 0x860   : > { %2588 = vset.pattern.permute.xlu1 %v3752_v26 }
 0x861   : > { %1890 = vperm.xlu1 %2588, %v1886_v52  }
 0x865   : > { %1895 = vperm.xlu1 %2588, %v1887_v35  }
 0x869   : > { %2003 = vperm.xlu1 %2588, %v2387_v55  }
 0x86d   : > { %2008 = vperm.xlu1 %2588, %v2388_v8  }
 0x890   : > { %2109 = vxpose.xlu1.c.b16.start.end [1/1] (short) (narrow) %v2632_v31, 16 }
 0x894   : > { %2589 = vset.pattern.permute.xlu1 %v2764_v13 }
 0x895   : > { %2236 = vperm.xlu1 %2589, %v3511_v9  }
 0x899   : > { %2590 = vset.pattern.permute.xlu1 %v2765_v21 }
 0x89a   : > { %2242 = vperm.xlu1 %2590, %v3511_v9  }
 0x8d4   : > { %v1838_v38 = vpop.xlane.xlu1 %1837 }
 0x8d5   : > { %v1839_v59 = vrot.slane %v1838_v38, 4 }
 0x8d7   : > { %v1840_v49 = vadd.f32 %v1839_v59, %v1838_v38 }
 0x8d8   : > { %v1878_v44 = vpop.permute.xlu1 %1877 }
 0x8d9   : > { %v1841_v61 = vrot.slane %v1840_v49, 2 }
 0x8db   : > { %v1842_v63 = vadd.f32 %v1841_v61, %v1840_v49 }
 0x8dc   : > { %v1891_v45 = vpop.permute.xlu1 %1890 }
 0x8dd   : > { %v1843_v6 = vrot.slane %v1842_v63, 1 }
 0x8df   : > { %v1844_v25 = vadd.f32 %v1843_v6, %v1842_v63 }
 0x8e0   : > { %v1896_v29 = vpop.permute.xlu1 %1895 }
 0x8e1   : > { %2461 = vpush %v1844_v25 }
 0x8e4   : > { %v2004_v4 = vpop.permute.xlu1 %2003 }
 0x8e8   : > { %v2009_v38 = vpop.permute.xlu1 %2008 }
 0x912   : > { %s2462_s0 = spop %2461 }
 0x913   : > { %s1846_s19 = smul.f32 0.00048828125, %s2462_s0  ;;  %s2266_s0 = sshll.u32 %s379_s29, 4  ;;  %s2267_s0 = int_to_ptr.vmem [resolvable:$true] %s2266_s0 }
 0x914   : > { %s2659_s30 = scalar_lea.vmem %s2267_s0, 256  ;;  %p2666_p0 = scmp.lt.s32.totalorder %s2267_s0, %s2664_s12 }
 0x915   : > { %v1847_v43 = vstv %s1846_s19  ;;  %p2660_p11 = scmp.ne.s32.totalorder %s2267_s0, %s2659_s30  ;;  %p2667_p1 = scmp.lt.s32.totalorder %s2665_s13, %s2659_s30 }
 0x916   : > { %v1848_v51 = vsub.f32 %v3605_v41, %v1847_v43  ;;  %v1849_v11 = vsub.f32 %v3608_v56, %v1847_v43 }
 0x917   : > { %p2661_p12 = pnand %p2660_p11, %p2865_p5  ;;  %p2668_p2 = por %p2667_p1, %p2666_p0 }
 0x918   : > { %v1850_v53 = vmul.f32 %v1848_v51, %v1848_v51  ;;  %v1851_v10 = vmul.f32 %v1849_v11, %v1849_v11 }
 0x919   : > { %p2662_p13 = pneg %p2661_p12 }
 0x91a   : > { %v1852_v16 = vadd.f32 %v1851_v10, %v1850_v53 }
 0x91b   : > { %p2669_p3 = pnand %p2668_p2, %p2662_p13 }
 0x91c   : > { %1853 = vadd.xlane.f32.xlu0 %v1852_v16 }
 0x932   : > { %1871 = vperm.xlu0 %2586, %v3511_v9  }
 0x950   : > { %2175 = vxpose.xlu0.c.b16.start.end [1/1] (short) (narrow) %v2633_v27, 16 }
 0x959   : > { %2591 = vset.pattern.permute.xlu0 %v2765_v21 }
 0x9a5   : > { %v1854_v5 = vpop.xlane.xlu0 %1853 }
 0x9a6   : > { %v1855_v28 = vrot.slane %v1854_v5, 4 }
 0x9a8   : > { %v1856_v60 = vadd.f32 %v1855_v28, %v1854_v5 }
 0x9aa   : > { %v1857_v48 = vrot.slane %v1856_v60, 2 }
 0x9ac   : > { %v1858_v47 = vadd.f32 %v1857_v48, %v1856_v60 }
 0x9ad   : > { %v1872_v17 = vpop.permute.xlu0 %1871 }
 0x9ae   : > { %v1859_v14 = vrot.slane %v1858_v47, 1 }
 0x9b0   : > { %v1860_v62 = vadd.f32 %v1859_v14, %v1858_v47 }
 0x9b2   : > { %2463 = vpush %v1860_v62 }
 0x9e3   : > { %s2464_s19 = spop %2463 }
 0x9e4   : > { %s1862_s14 = smul.f32 0.00048828125, %s2464_s19 }
 0x9e6   : > { %s1863_s26 = sadd.f32 1e-05, %s1862_s14 }
 0x9e8   : > { %v1864_v12 = vstv %s1863_s26  ;;  %s2264_s26 = scalar_lea.hbm %s3727_s11, %s2404_s25 }
 0x9e9   : > { %2638 = vrsqrt.f32 %v1864_v12 }
 0x9f6   : > { %v2639_v30 = vpop.eup %2638 }
 0x9f7   : > { %2465 = vpush %v2639_v30 }
 0xa28   : > { %s2466_s24 = spop %2465 }
 0xa29   : > { %v1867_v40 = vstv %s2466_s24  ;;  %s2252_s24 = scalar_lea.sflag [#allocation3], %s377_s16 }
 0xa2a   : > { %v1868_v37 = vmul.f32 %v1867_v40, %v1848_v51  ;;  %v1869_v18 = vmul.f32 %v1867_v40, %v1849_v11 }
 0xa2c   : > { %v1874_v54 = vmul.f32 %v1872_v17, %v1868_v37  ;;  %v1875_v0 = vmul.f32 %v1872_v17, %v1869_v18 }
 0xa2e   : > { %v1880_v58 = vadd.f32 %v1878_v44, %v1874_v54  ;;  %v1881_v20 = vadd.f32 %v1878_v44, %v1875_v0 }
 0xa30   : > { %v1882_v19 = vpack.c.bf16 %v1880_v58, %v1880_v58  ;;  %v1883_v24 = vpack.c.bf16 %v1881_v20, %v1881_v20 }
 0xa32   : > { %2383 = vmatprep.subr.msk.bf16.mxu1 %vm1440_vm1, %v1883_v24  ;;  %2390 = vmatprep.subr.msk.bf16.mxu0 %vm1440_vm1, %v1883_v24  ;;  %v1907_v7 = vsel %vm1440_vm1, %v1882_v19, 0 }
 0xa33   : > { %1927 = vmatpush1.bf16.msra.mxu1 %v1907_v7  ;;  %2034 = vmatpush1.bf16.msra.mxu0 %v1907_v7 }
 0xa36   : > { %2384 = vmatmul.mubr.msk.bf16.vlgmr.msra.gmra.mxu1 %vm1436_vm2, %v2630_v3  ;;  %2391 = vmatmul.mubr.msk.bf16.vlgmr.msra.gmra.mxu0 %vm1436_vm2, %v2631_v34 }
 0xa37   : > { %2160 = vmatprep.mubr.bf16.mxu1 %v3752_v26  ;;  %2226 = vmatprep.mubr.bf16.mxu0 %v3752_v26 }
 0xaf6   : > { %v1946_v50 = vpop.f32.mrf.mxu1  ;;  %v2053_v32 = vpop.f32.mrf.mxu0 }
 0xaf7   : > { %v3650_v1 = vadd.f32 %v1946_v50, %v1891_v45  ;;  %v3652_v42 = vadd.f32 %v2053_v32, %v2004_v4 }
 0xaf8   : > { %v1948_v2 = vpop.f32.mrf.mxu1  ;;  %v2055_v33 = vpop.f32.mrf.mxu0 }
 0xaf9   : > { %v1959_v39 = vmul.f32 0.044715, %v3650_v1  ;;  %v2066_v22 = vmul.f32 0.044715, %v3652_v42  ;;  %v1949_v57 = vadd.f32 %v1948_v2, %v1891_v45  ;;  %v3656_v15 = vadd.f32 %v2055_v33, %v2004_v4 }
 0xafa   : > { %v1950_v36 = vpop.f32.mrf.mxu1  ;;  %v2057_v9 = vpop.f32.mrf.mxu0  ;;  %v1955_v33 = vmul.f32 0.5, %v3650_v1 }
 0xafb   : > { %v1963_v59 = vmul.f32 %v1959_v39, %v3650_v1  ;;  %v2070_v49 = vmul.f32 %v2066_v22, %v3652_v42  ;;  %v1960_v61 = vmul.f32 0.044715, %v1949_v57  ;;  %v2067_v63 = vmul.f32 0.044715, %v3656_v15 }
 0xafc   : > { %v1951_v6 = vadd.f32 %v1950_v36, %v1896_v29  ;;  %v3661_v25 = vadd.f32 %v2057_v9, %v2009_v38  ;;  %v1952_v43 = vpop.f32.mrf.mxu1  ;;  %v2059_v51 = vpop.f32.mrf.mxu0  ;;  %v1956_v32 = vmul.f32 0.5, %v1949_v57 }
 0xafd   : > { %v1967_v11 = vmul.f32 %v1963_v59, %v3650_v1  ;;  %v2074_v53 = vmul.f32 %v2070_v49, %v3652_v42  ;;  %v1964_v10 = vmul.f32 %v1960_v61, %v1949_v57  ;;  %v2071_v16 = vmul.f32 %v2067_v63, %v3656_v15 }
 0xafe   : > { %v1961_v23 = vmul.f32 0.044715, %v1951_v6  ;;  %v2068_v46 = vmul.f32 0.044715, %v3661_v25  ;;  %v1953_v26 = vadd.f32 %v1952_v43, %v1896_v29  ;;  %v2060_v5 = vadd.f32 %v2059_v51, %v2009_v38 }
 0xaff   : > { %v1971_v28 = vadd.f32 %v1967_v11, %v3650_v1  ;;  %v2078_v60 = vadd.f32 %v2074_v53, %v3652_v42  ;;  %v1968_v48 = vmul.f32 %v1964_v10, %v1949_v57  ;;  %v2075_v47 = vmul.f32 %v2071_v16, %v3656_v15 }
 0xb00   : > { %v1965_v14 = vmul.f32 %v1961_v23, %v1951_v6  ;;  %v2072_v62 = vmul.f32 %v2068_v46, %v3661_v25  ;;  %v1962_v52 = vmul.f32 0.044715, %v1953_v26  ;;  %v2069_v27 = vmul.f32 0.044715, %v2060_v5 }
 0xb01   : > { %v1975_v35 = vmul.f32 0.7978846, %v1971_v28  ;;  %v2082_v55 = vmul.f32 0.7978846, %v2078_v60  ;;  %v2079_v8 = vadd.f32 %v2075_v47, %v3656_v15  ;;  %v1972_v37 = vadd.f32 %v1968_v48, %v1949_v57 }
 0xb02   : > { %v1969_v31 = vmul.f32 %v1965_v14, %v1951_v6  ;;  %v2076_v12 = vmul.f32 %v2072_v62, %v3661_v25  ;;  %v1966_v30 = vmul.f32 %v1962_v52, %v1953_v26  ;;  %v2073_v40 = vmul.f32 %v2069_v27, %v2060_v5 }
 0xb03   : > { %v2083_v17 = vmul.f32 0.7978846, %v2079_v8  ;;  %2640 = vtanh.f32 %v1975_v35  ;;  %v1976_v58 = vmul.f32 0.7978846, %v1972_v37  ;;  %v1957_v38 = vmul.f32 0.5, %v1951_v6 }
 0xb04   : > { %v1973_v18 = vadd.f32 %v1969_v31, %v1951_v6  ;;  %v2080_v44 = vadd.f32 %v2076_v12, %v3661_v25  ;;  %v1970_v54 = vmul.f32 %v1966_v30, %v1953_v26  ;;  %2642 = vtanh.f32 %v2082_v55 }
 0xb05   : > { %v2077_v0 = vmul.f32 %v2073_v40, %v2060_v5  ;;  %2644 = vtanh.f32 %v2083_v17  ;;  %v1958_v61 = vmul.f32 0.5, %v1953_v26  ;;  %v2064_v43 = vmul.f32 0.5, %v3661_v25 }
 0xb06   : > { %v1977_v20 = vmul.f32 0.7978846, %v1973_v18  ;;  %v2084_v19 = vmul.f32 0.7978846, %v2080_v44  ;;  %v1974_v24 = vadd.f32 %v1970_v54, %v1953_v26  ;;  %2646 = vtanh.f32 %v1976_v58 }
 0xb07   : > { %v2081_v7 = vadd.f32 %v2077_v0, %v2060_v5  ;;  %v2063_v11 = vmul.f32 0.5, %v3656_v15  ;;  %v2065_v53 = vmul.f32 0.5, %v2060_v5  ;;  %v2062_v1 = vmul.f32 0.5, %v3652_v42  ;;  %v2183_v15 = vpop.trf.xlu0  ;;  %v2117_v5 = vpop.trf.xlu1 }
 0xb08   : > { %2648 = vtanh.f32 %v1977_v20  ;;  %v1978_v3 = vmul.f32 0.7978846, %v1974_v24 }
 0xb09   : > { %2650 = vtanh.f32 %v2084_v19  ;;  %v2085_v34 = vmul.f32 0.7978846, %v2081_v7 }
 0xb0a   : > { %2652 = vtanh.f32 %v1978_v3 }
 0xb0b   : > { %2654 = vtanh.f32 %v2085_v34  ;;  %v2237_v42 = vpop.permute.xlu1 %2236 }
 0xb0f   : > { %v2243_v8 = vpop.permute.xlu1 %2242 }
 0xb10   : > { %v2641_v13 = vpop.eup %2640 }
 0xb11   : > { %v2643_v21 = vpop.eup %2642  ;;  %v1983_v59 = vadd.f32 1.0, %v2641_v13 }
 0xb12   : > { %v2645_v45 = vpop.eup %2644  ;;  %v2090_v51 = vadd.f32 1.0, %v2643_v21 }
 0xb13   : > { %v2647_v29 = vpop.eup %2646  ;;  %v2091_v36 = vadd.f32 1.0, %v2645_v45  ;;  %v1987_v6 = vmul.f32 %v1983_v59, %v1955_v33 }
 0xb14   : > { %v1984_v2 = vadd.f32 1.0, %v2647_v29  ;;  %v2094_v26 = vmul.f32 %v2090_v51, %v2062_v1 }
 0xb15   : > { %v2649_v4 = vpop.eup %2648  ;;  %v2095_v28 = vmul.f32 %v2091_v36, %v2063_v11 }
 0xb16   : > { %v2651_v50 = vpop.eup %2650  ;;  %v1985_v39 = vadd.f32 1.0, %v2649_v4  ;;  %v1988_v16 = vmul.f32 %v1984_v2, %v1956_v32 }
 0xb17   : > { %v2653_v22 = vpop.eup %2652  ;;  %v2092_v9 = vadd.f32 1.0, %v2651_v50 }
 0xb18   : > { %v2655_v49 = vpop.eup %2654  ;;  %v1986_v63 = vadd.f32 1.0, %v2653_v22  ;;  %v1989_v57 = vmul.f32 %v1985_v39, %v1957_v38 }
 0xb19   : > { %v2093_v10 = vadd.f32 1.0, %v2655_v49  ;;  %v2096_v46 = vmul.f32 %v2092_v9, %v2064_v43 }
 0xb1a   : > { %v1990_v23 = vmul.f32 %v1986_v63, %v1958_v61  ;;  %v1991_v14 = vpack.c.bf16 %v1989_v57, %v1987_v6 }
 0xb1b   : > { %v2097_v60 = vmul.f32 %v2093_v10, %v2065_v53  ;;  %v2098_v25 = vpack.c.bf16 %v2096_v46, %v2094_v26 }
 0xb1c   : > { %v1992_v48 = vpack.c.bf16 %v1990_v23, %v1988_v16 }
 0xb1d   : > { %v2099_v47 = vpack.c.bf16 %v2097_v60, %v2095_v28 }
 0xb1e   : > { %2208 = vmatprep.subr.bf16.mxu0 %v1992_v48 }
 0xb1f   : > { %2142 = vmatprep.subr.bf16.mxu1 %v2099_v47  ;;  %2209 = vmatpush1.bf16.msra.mxu0 %v1991_v14 }
 0xb20   : > { %2143 = vmatpush1.bf16.msra.mxu1 %v2098_v25 }
 0xb22   : > { %2397 = vmatmul.mubr.msk.bf16.vlgmr.msra.gmra.mxu0 %vm902_vm0, %v2183_v15 }
 0xb23   : > { %2395 = vmatmul.mubr.msk.bf16.vlgmr.msra.gmra.mxu1 %vm902_vm0, %v2117_v5 }
 0xbe2   : > { %v2228_v62 = vpop.f32.mrf.mxu0 }
 0xbe3   : > { %v2162_v52 = vpop.f32.mrf.mxu1 }
 0xbe4   : > { %v2229_v27 = vadd.f32 %v2228_v62, %v2162_v52  ;;  %v2230_v35 = vpop.f32.mrf.mxu0 }
 0xbe5   : > { %v2164_v55 = vpop.f32.mrf.mxu1 }
 0xbe6   : > { %v2231_v31 = vadd.f32 %v2230_v35, %v2164_v55  ;;  %v2239_v12 = vadd.f32 %v2237_v42, %v2229_v27  ;;  %v2232_v30 = vpop.f32.mrf.mxu0 }
 0xbe7   : > { %v2166_v40 = vpop.f32.mrf.mxu1 }
 0xbe8   : > { %v2240_v17 = vadd.f32 %v2237_v42, %v2231_v31  ;;  %v2245_v37 = vmul.f32 %v2243_v8, %v2239_v12  ;;  %v2233_v18 = vpop.f32.mrf.mxu0 }
 0xbe9   : > { %v2167_v44 = vpop.f32.mrf.mxu1 }
 0xbea   : > { %v2246_v54 = vmul.f32 %v2243_v8, %v2240_v17  ;;  %v2247_v0 = vadd.f32 %v2245_v37, %v3605_v41 }
 0xbec   : > { %v2248_v58 = vadd.f32 %v2246_v54, %v3608_v56  ;;  %2249 = vst [vmem:[%s379_s29] sm:$0xff] %v2247_v0 }
 0xbee   : > { %2250 = vst [vmem:[%s379_s29 + $0x8] sm:$0xff] %v2248_v58 }
 0xbef   : > { %2672 = shalt.err (!%p2669_p3)
}
 0xbf0   : > { %s2673_s15 = scalar_lea.hbm %s2264_s26, 256  ;;  %s2677_s25 = scalar_lea.hbm %s3727_s11, 512 }
 0xbf1   : > { %p2674_p4 = scmp.ne.s32.totalorder %s2264_s26, %s2673_s15  ;;  %p2678_p9 = scmp.lt.s32.totalorder %s2264_s26, %s3727_s11 }
 0xbf2   : > { %p2679_p10 = scmp.lt.s32.totalorder %s2677_s25, %s2673_s15 }
 0xbf3   : > { %p2675_p7 = pnand %p2674_p4, %p2865_p5 }
 0xbf4   : > { %p2680_p11 = por %p2679_p10, %p2678_p9 }
 0xbf5   : > { %p2676_p8 = pneg %p2675_p7 }
 0xbf7   : > { %p2681_p12 = pnand %p2680_p11, %p2676_p8 }
 0xbf9   : > { %2684 = shalt.err (!%p2681_p12)
}
 0xbfa   : > { %2467 = dma.vmem_to_hbm [thread:$0]  (%p2865_p5), %s2267_s0, 256, %s2264_s26, %s2252_s24  }
 0xbfb PF: > { %p2473_p13 = scmp.ge.s32.totalorder %s2719_s20, 2  ;;  %s2278_s14 = sand.u32 1, %s2707_s17  }
 0xbfc   : > { %s2279_s30 = scalar_lea.sflag [#allocation3], %s2278_s14 }
 0xbfd   : > { %p2470_p0 = pnand %p2473_p13, %p2869_p6 }
 0xbff   : > { %p2471_p1 = pneg %p2470_p0 }
 0xc01   : > { %2702 = dma.done.wait (%p2471_p1), %s2279_s30, 256  }
 0xc02   : > { %2704 = vsyncadd (%p2471_p1), %s2279_s30, 4294967040  ;;  %s3753_s21 = sld [smem:[#allocation5_spill]]  ;;  %p21_p2 = scmp.ge.s32.totalorder %s2852_s23, 4  }
 0xc03   : > { %s3754_s19 = sld [smem:[#allocation6_spill]]  ;;  %s3755_s17 = smov %s2711_s18 }
 0xc04   : > { %s3757_s20 = smov %s2852_s23  ;;  %23 = sbr.rel (!%p21_p2) target bundleno = 5 (0x5), region = 106 }
 0xc08   : > { %s3756_s18 = smov %s3753_s21 }
 0xc09   :  { %2284 = vsyncpa [#allocation3], 1 }
 0xc0a   :  { %2286 = vsyncpa [#allocation3 + $0x1], 1 }

</bundles_post_ra>
